<compile_context>
chip_gen: v7x
topology: tpu7x:2x2x1
jax: 0.10.0
libtpu: 0.0.40
codegen_flags: <defaults>
</compile_context>

<pallas_src>
import numpy as np
import jax
import jax.numpy as jnp
from jax.experimental import pallas as pl
from jax.experimental.pallas import tpu as pltpu

_TILE_CAP = 512  # spatial (lane-axis) tile; sweep 512-2048 for large inputs.


def _compiler_params(**kw):
    cp = getattr(pltpu, "CompilerParams", None) or getattr(pltpu, "TPUCompilerParams", None)
    return cp(**kw) if cp is not None else None


def _pick_tile(m, cap=_TILE_CAP):
    """Largest legal tile: the full dim, or a 128-multiple divisor <= cap."""
    if m <= cap:
        return m
    for t in range(cap - cap % 128, 127, -128):
        if m % t == 0:
            return t
    return m


# --------------------------------------------------------------------------------------
# Kernels
# --------------------------------------------------------------------------------------
def _head_kernel(x_ref, w1_ref, b1_ref, wf_ref, bf_ref, c1_ref, cf_ref):
    """conv1 (1x1) and conv_f (1x1) fused; channels-first so spatial sits on lanes."""
    c1 = jnp.dot(w1_ref[...], x_ref[...], preferred_element_type=jnp.float32) + b1_ref[...]
    cf = jnp.dot(wf_ref[...], c1, preferred_element_type=jnp.float32) + bf_ref[...]
    c1_ref[...] = c1
    cf_ref[...] = cf


def _mm_bias_kernel(p_ref, w_ref, b_ref, o_ref):
    """o = w @ p + b   (conv2 on im2col patches, spatial on lanes)."""
    o_ref[...] = jnp.dot(w_ref[...], p_ref[...],
                         preferred_element_type=jnp.float32) + b_ref[...]


def _lowres_kernel(c1_ref, wm_ref, bm_ref, w3_ref, b3_ref, w3p_ref, b3p_ref, s_ref,
                   o_ref, vflat_ref):
    """max_pool2d(7,3) + relu(conv_max) + relu(conv3) + conv3_, all intermediates in VMEM.

    3x3/pad-1 convs on the tiny pooled grid are computed as
        out = sum_t  W_t @ V @ S_t + b
    where S_t are constant (Hm*Wm, Hm*Wm) shift matrices (zero rows encode padding),
    so no in-kernel pad / reshape is needed.
    """
    f = c1_ref.shape[0]
    H2, W2 = c1_ref.shape[1], c1_ref.shape[2]
    Hm = (H2 - 7) // 3 + 1
    Wm = (W2 - 7) // 3 + 1
    hwm = s_ref.shape[1]

    # 7x7 / stride-3 max pool, written directly in flattened (f, Hm*Wm) form.
    for i in range(Hm):
        for j in range(Wm):
            win = c1_ref[:, 3 * i:3 * i + 7, 3 * j:3 * j + 7]          # (f, 7, 7)
            m = jnp.max(jnp.max(win, axis=2), axis=1, keepdims=True)   # (f, 1)
            k = i * Wm + j
            vflat_ref[:, k:k + 1] = m
    v = vflat_ref[...]                                                 # (f, Hm*Wm)

    def conv3x3(vin, w_taps, b):
        acc = jnp.zeros((f, hwm), jnp.float32)
        for t in range(9):
            acc = acc + jnp.dot(
                jnp.dot(w_taps[t], vin, preferred_element_type=jnp.float32),
                s_ref[t], preferred_element_type=jnp.float32)
        return acc + b[...]

    v_range = jnp.maximum(conv3x3(v, wm_ref, bm_ref), 0.0)
    c3 = jnp.maximum(conv3x3(v_range, w3_ref, b3_ref), 0.0)
    o_ref[...] = conv3x3(c3, w3p_ref, b3p_ref)


def _tail_kernel(c3s_ref, rk_ref, cf_ref, x_ref, w4_ref, b4_ref, o_ref):
    """bilinear-upsample(c3) + cf -> conv4 (1x1) -> sigmoid -> x * m, fused & tiled."""
    c3_up = jnp.dot(c3s_ref[...], rk_ref[...], preferred_element_type=jnp.float32)
    s = c3_up + cf_ref[...]
    c4 = jnp.dot(w4_ref[...], s, preferred_element_type=jnp.float32) + b4_ref[...]
    if hasattr(pl, "reciprocal"):
        m = pl.reciprocal(1.0 + jnp.exp(-c4), approx=True)   # divide on EUP, VALU stays free
    else:
        m = jax.nn.sigmoid(c4)
    o_ref[...] = x_ref[...] * m


# --------------------------------------------------------------------------------------
# Constant matrices (built from static shapes only -> constant-folded under jit)
# --------------------------------------------------------------------------------------
def _bilinear_matrix(out_size, in_size):
    """PyTorch F.interpolate(mode='bilinear', align_corners=False) as an (out, in) matrix."""
    scale = in_size / out_size
    dst = np.arange(out_size, dtype=np.float64)
    src = np.maximum((dst + 0.5) * scale - 0.5, 0.0)
    i0 = np.clip(np.floor(src).astype(np.int64), 0, in_size - 1)
    i1 = np.minimum(i0 + 1, in_size - 1)
    frac = src - i0
    rows = np.arange(out_size)
    R = np.zeros((out_size, in_size), np.float32)
    R[rows, i0] += (1.0 - frac)
    R[rows, i1] += frac
    return R


def _bilinear_kron(Hm, Wm, H, W):
    """Separable resize folded into one (Hm*Wm, H*W) matrix (tiny low-res grid assumed)."""
    Rh = _bilinear_matrix(H, Hm)          # (H, Hm)
    Rw = _bilinear_matrix(W, Wm)          # (W, Wm)
    Rk = np.einsum("im,jn->mnij", Rh, Rw).reshape(Hm * Wm, H * W)
    return Rk.astype(np.float32)


def _shift_matrices(Hm, Wm):
    """S[t, p, q] = 1 iff flat input pos p feeds flat output pos q for tap t of a 3x3 pad-1 conv."""
    hwm = Hm * Wm
    S = np.zeros((9, hwm, hwm), np.float32)
    for ky in range(3):
        for kx in range(3):
            t = ky * 3 + kx
            for i in range(Hm):
                for j in range(Wm):
                    yi, xj = i + ky - 1, j + kx - 1
                    if 0 <= yi < Hm and 0 <= xj < Wm:
                        S[t, yi * Wm + xj, i * Wm + j] = 1.0
    return S


# --------------------------------------------------------------------------------------
# ESA forward (NCHW in / NCHW out, same semantics as the PyTorch module)
# --------------------------------------------------------------------------------------
def esa_forward(x_nchw, p):
    x = x_nchw.astype(jnp.float32)
    B, C, H, W = x.shape
    f = p["w1"].shape[0]
    HW = H * W
    xf = x.reshape(B, C, HW)                       # channels-first, spatial on lanes

    tile_m = _pick_tile(HW)
    n_m = HW // tile_m
    par2 = _compiler_params(dimension_semantics=("parallel", "parallel"))
    par1 = _compiler_params(dimension_semantics=("parallel",))

    # ---- 1) head: conv1 (1x1) + conv_f (1x1), tiled over (batch, spatial) --------------
    c1_, cf = pl.pallas_call(
        _head_kernel,
        out_shape=(jax.ShapeDtypeStruct((B, f, HW), jnp.float32),
                   jax.ShapeDtypeStruct((B, f, HW), jnp.float32)),
        grid=(B, n_m),
        in_specs=[
            pl.BlockSpec((None, C, tile_m), lambda b, m: (b, 0, m)),
            pl.BlockSpec((f, C), lambda b, m: (0, 0)),
            pl.BlockSpec((f, 1), lambda b, m: (0, 0)),
            pl.BlockSpec((f, f), lambda b, m: (0, 0)),
            pl.BlockSpec((f, 1), lambda b, m: (0, 0)),
        ],
        out_specs=(pl.BlockSpec((None, f, tile_m), lambda b, m: (b, 0, m)),
                   pl.BlockSpec((None, f, tile_m), lambda b, m: (b, 0, m))),
        compiler_params=par2,
    )(xf, p["w1"], p["b1"], p["wf"], p["bf"])

    # ---- 2) conv2: 3x3 stride-2 pad-0 as a lane-dense matmul over patches --------------
    H2 = (H - 3) // 2 + 1
    W2 = (W - 3) // 2 + 1
    hw2 = H2 * W2
    c1_img = c1_.reshape(B, f, H, W)
    # im2col at the already-downsampled output resolution; tap-major (ky, kx, cin) order.
    cols = [c1_img[:, :, ky:ky + 2 * H2 - 1:2, kx:kx + 2 * W2 - 1:2]
            for ky in range(3) for kx in range(3)]
    patches = jnp.concatenate(cols, axis=1).reshape(B, 9 * f, hw2)

    tile2 = _pick_tile(hw2)
    c1_lr = pl.pallas_call(
        _mm_bias_kernel,
        out_shape=jax.ShapeDtypeStruct((B, f, hw2), jnp.float32),
        grid=(B, hw2 // tile2),
        in_specs=[
            pl.BlockSpec((None, 9 * f, tile2), lambda b, m: (b, 0, m)),
            pl.BlockSpec((f, 9 * f), lambda b, m: (0, 0)),
            pl.BlockSpec((f, 1), lambda b, m: (0, 0)),
        ],
        out_specs=pl.BlockSpec((None, f, tile2), lambda b, m: (b, 0, m)),
        compiler_params=par2,
    )(patches, p["w2"], p["b2"]).reshape(B, f, H2, W2)

    # ---- 3) fused low-res branch: maxpool(7,3) + conv_max + conv3 + conv3_ -------------
    Hm = (H2 - 7) // 3 + 1
    Wm = (W2 - 7) // 3 + 1
    hwm = Hm * Wm
    S = jnp.asarray(_shift_matrices(Hm, Wm))
    c3s = pl.pallas_call(
        _lowres_kernel,
        out_shape=jax.ShapeDtypeStruct((B, f, hwm), jnp.float32),
        grid=(B,),
        in_specs=[
            pl.BlockSpec((None, f, H2, W2), lambda b: (b, 0, 0, 0)),
            pl.BlockSpec((9, f, f), lambda b: (0, 0, 0)),
            pl.BlockSpec((f, 1), lambda b: (0, 0)),
            pl.BlockSpec((9, f, f), lambda b: (0, 0, 0)),
            pl.BlockSpec((f, 1), lambda b: (0, 0)),
            pl.BlockSpec((9, f, f), lambda b: (0, 0, 0)),
            pl.BlockSpec((f, 1), lambda b: (0, 0)),
            pl.BlockSpec((9, hwm, hwm), lambda b: (0, 0, 0)),
        ],
        out_specs=pl.BlockSpec((None, f, hwm), lambda b: (b, 0, 0)),
        scratch_shapes=[pltpu.VMEM((f, hwm), jnp.float32)],
        compiler_params=par1,
    )(c1_lr, p["wm"], p["bm"], p["w3"], p["b3"], p["w3_"], p["b3_"], S)

    # ---- 4) fused tail: bilinear upsample + conv4 + sigmoid + x*m ----------------------
    # TODO(synk): the combined resize matrix scales as (Hm*Wm) x (H*W); for very large
    #             inputs switch to a separable (row-matrix, col-matrix) formulation.
    Rk = jnp.asarray(_bilinear_kron(Hm, Wm, H, W))
    out = pl.pallas_call(
        _tail_kernel,
        out_shape=jax.ShapeDtypeStruct((B, C, HW), jnp.float32),
        grid=(B, n_m),
        in_specs=[
            pl.BlockSpec((None, f, hwm), lambda b, m: (b, 0, 0)),
            pl.BlockSpec((hwm, tile_m), lambda b, m: (0, m)),
            pl.BlockSpec((None, f, tile_m), lambda b, m: (b, 0, m)),
            pl.BlockSpec((None, C, tile_m), lambda b, m: (b, 0, m)),
            pl.BlockSpec((C, f), lambda b, m: (0, 0)),
            pl.BlockSpec((C, 1), lambda b, m: (0, 0)),
        ],
        out_specs=pl.BlockSpec((None, C, tile_m), lambda b, m: (b, 0, m)),
        compiler_params=par2,
    )(c3s, Rk, cf, xf, p["w4"], p["b4"])

    return out.reshape(B, C, H, W)


# --------------------------------------------------------------------------------------
# Deterministic synthetic parameters (shapes match ESA's conv layers, in kernel layout)
# --------------------------------------------------------------------------------------
def init_params(key, n_feats):
    """Synthetic weights in the kernel's layout.

    Mapping from real PyTorch ESA weights (addresses the weight-ordering concern):
      w1  = conv1.weight[:, :, 0, 0]                            -> (f, n_feats)
      wf  = conv_f.weight[:, :, 0, 0]                           -> (f, f)
      w2  = conv2.weight.permute(0, 2, 3, 1).reshape(f, 9*f)    -> (co, ky, kx, ci) flat
      wm/w3/w3_ = weight.permute(2, 3, 0, 1).reshape(9, f, f)   -> tap-major (ky*3+kx)
      w4  = conv4.weight[:, :, 0, 0]                            -> (n_feats, f)
      b*  = bias.reshape(-1, 1)
    """
    f = n_feats // 4
    specs = [
        ("w1", (f, n_feats)), ("b1", (f, 1)),
        ("wf", (f, f)),       ("bf", (f, 1)),
        ("w2", (f, 9 * f)),   ("b2", (f, 1)),
        ("wm", (9, f, f)),    ("bm", (f, 1)),
        ("w3", (9, f, f)),    ("b3", (f, 1)),
        ("w3_", (9, f, f)),   ("b3_", (f, 1)),
        ("w4", (n_feats, f)), ("b4", (n_feats, 1)),
    ]
    keys = jax.random.split(key, len(specs))
    params = {}
    for (name, shape), k in zip(specs, keys):
        fan_in = float(np.prod(shape[1:])) if name.startswith("w") else 1.0
        params[name] = jax.random.normal(k, shape, jnp.float32) / np.sqrt(fan_in)
    return params


# --------------------------------------------------------------------------------------
if __name__ == "__main__":
    n_feats = 16                  # f = n_feats // 4 = 4
    B, H, W = 2, 32, 32           # keeps the stride-2 conv + 7/3 pool path non-degenerate

    key = jax.random.PRNGKey(0)
    kx, kp = jax.random.split(key)
    x = jax.random.normal(kx, (B, n_feats, H, W), jnp.float32)    # NCHW, like PyTorch
    params = init_params(kp, n_feats)

    out = jax.block_until_ready(jax.jit(esa_forward)(x, params))

    assert out.shape == (B, n_feats, H, W)
    assert bool(jnp.all(jnp.isfinite(out)))
    print("KERNEL_OK")
</pallas_src>

<mosaic_0001>
module attributes {stable_mosaic.version = 11 : i64} {
  func.func @_head_kernel(%arg0: i32, %arg1: i32, %arg2: memref<1x16x512xf32, #tpu.memory_space<vmem>>, %arg3: memref<4x16xf32, #tpu.memory_space<vmem>>, %arg4: memref<4x1xf32, #tpu.memory_space<vmem>>, %arg5: memref<4x4xf32, #tpu.memory_space<vmem>>, %arg6: memref<4x1xf32, #tpu.memory_space<vmem>>, %arg7: memref<1x4x512xf32, #tpu.memory_space<vmem>>, %arg8: memref<1x4x512xf32, #tpu.memory_space<vmem>>) attributes {dimension_semantics = [#tpu.dimension_semantics<parallel>, #tpu.dimension_semantics<parallel>], iteration_bounds = array<i64: 2, 2>, scalar_prefetch = 0 : i64, scratch_operands = 0 : i64, tpu.core_type = #tpu.core_type<tc>, window_params = [{transform_indices = @transform_0, window_bounds = array<i64: 1, 16, 512>}, {pipeline_mode = #tpu.pipeline_mode<synchronous>, transform_indices = @transform_1, window_bounds = array<i64: 4, 16>}, {pipeline_mode = #tpu.pipeline_mode<synchronous>, transform_indices = @transform_2, window_bounds = array<i64: 4, 1>}, {pipeline_mode = #tpu.pipeline_mode<synchronous>, transform_indices = @transform_3, window_bounds = array<i64: 4, 4>}, {pipeline_mode = #tpu.pipeline_mode<synchronous>, transform_indices = @transform_4, window_bounds = array<i64: 4, 1>}, {transform_indices = @transform_5, window_bounds = array<i64: 1, 4, 512>}, {transform_indices = @transform_6, window_bounds = array<i64: 1, 4, 512>}]} {
    %c0 = arith.constant 0 : index
    %c0_0 = arith.constant 0 : index
    %0 = vector.load %arg3[%c0, %c0_0] : memref<4x16xf32, #tpu.memory_space<vmem>>, vector<4x16xf32>
    %c0_1 = arith.constant 0 : index
    %c0_2 = arith.constant 0 : index
    %c0_3 = arith.constant 0 : index
    %1 = vector.load %arg2[%c0_1, %c0_2, %c0_3] : memref<1x16x512xf32, #tpu.memory_space<vmem>>, vector<1x16x512xf32>
    %2 = vector.shape_cast %1 : vector<1x16x512xf32> to vector<16x512xf32>
    %cst = arith.constant dense<0.000000e+00> : vector<4x512xf32>
    %3 = tpu.matmul %0, %2, %cst {dimension_numbers = #tpu.dot_dimension_numbers<[1], [0], [0], [1], [0, 0, 1, 1], [], []>} : vector<4x16xf32>, vector<16x512xf32>, vector<4x512xf32> -> vector<4x512xf32>
    %c0_4 = arith.constant 0 : index
    %c0_5 = arith.constant 0 : index
    %4 = vector.load %arg4[%c0_4, %c0_5] : memref<4x1xf32, #tpu.memory_space<vmem>>, vector<4x1xf32>
    %5 = vector.broadcast %4 : vector<4x1xf32> to vector<4x512xf32>
    %6 = arith.addf %3, %5 : vector<4x512xf32>
    %c0_6 = arith.constant 0 : index
    %c0_7 = arith.constant 0 : index
    %7 = vector.load %arg5[%c0_6, %c0_7] : memref<4x4xf32, #tpu.memory_space<vmem>>, vector<4x4xf32>
    %cst_8 = arith.constant dense<0.000000e+00> : vector<4x512xf32>
    %8 = tpu.matmul %7, %6, %cst_8 {dimension_numbers = #tpu.dot_dimension_numbers<[1], [0], [0], [1], [0, 0, 1, 1], [], []>} : vector<4x4xf32>, vector<4x512xf32>, vector<4x512xf32> -> vector<4x512xf32>
    %c0_9 = arith.constant 0 : index
    %c0_10 = arith.constant 0 : index
    %9 = vector.load %arg6[%c0_9, %c0_10] : memref<4x1xf32, #tpu.memory_space<vmem>>, vector<4x1xf32>
    %10 = vector.broadcast %9 : vector<4x1xf32> to vector<4x512xf32>
    %11 = arith.addf %8, %10 : vector<4x512xf32>
    %c0_11 = arith.constant 0 : index
    %c0_12 = arith.constant 0 : index
    %c0_13 = arith.constant 0 : index
    %12 = vector.load %arg7[%c0_11, %c0_12, %c0_13] : memref<1x4x512xf32, #tpu.memory_space<vmem>>, vector<1x4x512xf32>
    %13 = vector.shape_cast %12 : vector<1x4x512xf32> to vector<4x512xf32>
    %14 = vector.shape_cast %6 : vector<4x512xf32> to vector<1x4x512xf32>
    tpu.vector_store %arg7[%c0_11, %c0_12, %c0_13], %14 {strides = array<i32>} : memref<1x4x512xf32, #tpu.memory_space<vmem>>, vector<1x4x512xf32>,
    %c0_14 = arith.constant 0 : index
    %c0_15 = arith.constant 0 : index
    %c0_16 = arith.constant 0 : index
    %15 = vector.load %arg8[%c0_14, %c0_15, %c0_16] : memref<1x4x512xf32, #tpu.memory_space<vmem>>, vector<1x4x512xf32>
    %16 = vector.shape_cast %15 : vector<1x4x512xf32> to vector<4x512xf32>
    %17 = vector.shape_cast %11 : vector<4x512xf32> to vector<1x4x512xf32>
    tpu.vector_store %arg8[%c0_14, %c0_15, %c0_16], %17 {strides = array<i32>} : memref<1x4x512xf32, #tpu.memory_space<vmem>>, vector<1x4x512xf32>,
    return
  }
  func.func @transform_0(%arg0: i32, %arg1: i32) -> (i32, i32, i32) {
    %c0_i32 = arith.constant 0 : i32
    %c0_i32_0 = arith.constant 0 : i32
    return %arg0, %c0_i32, %arg1 : i32, i32, i32
  }
  func.func @transform_1(%arg0: i32, %arg1: i32) -> (i32, i32) {
    %c0_i32 = arith.constant 0 : i32
    %c0_i32_0 = arith.constant 0 : i32
    %c0_i32_1 = arith.constant 0 : i32
    return %c0_i32, %c0_i32_0 : i32, i32
  }
  func.func @transform_2(%arg0: i32, %arg1: i32) -> (i32, i32) {
    %c0_i32 = arith.constant 0 : i32
    %c0_i32_0 = arith.constant 0 : i32
    %c0_i32_1 = arith.constant 0 : i32
    return %c0_i32, %c0_i32_0 : i32, i32
  }
  func.func @transform_3(%arg0: i32, %arg1: i32) -> (i32, i32) {
    %c0_i32 = arith.constant 0 : i32
    %c0_i32_0 = arith.constant 0 : i32
    %c0_i32_1 = arith.constant 0 : i32
    return %c0_i32, %c0_i32_0 : i32, i32
  }
  func.func @transform_4(%arg0: i32, %arg1: i32) -> (i32, i32) {
    %c0_i32 = arith.constant 0 : i32
    %c0_i32_0 = arith.constant 0 : i32
    %c0_i32_1 = arith.constant 0 : i32
    return %c0_i32, %c0_i32_0 : i32, i32
  }
  func.func @transform_5(%arg0: i32, %arg1: i32) -> (i32, i32, i32) {
    %c0_i32 = arith.constant 0 : i32
    %c0_i32_0 = arith.constant 0 : i32
    return %arg0, %c0_i32, %arg1 : i32, i32, i32
  }
  func.func @transform_6(%arg0: i32, %arg1: i32) -> (i32, i32, i32) {
    %c0_i32 = arith.constant 0 : i32
    %c0_i32_0 = arith.constant 0 : i32
    return %arg0, %c0_i32, %arg1 : i32, i32, i32
  }
}

module attributes {stable_mosaic.version = 11 : i64} {
  func.func @_mm_bias_kernel(%arg0: i32, %arg1: i32, %arg2: memref<1x36x225xf32, #tpu.memory_space<vmem>>, %arg3: memref<4x36xf32, #tpu.memory_space<vmem>>, %arg4: memref<4x1xf32, #tpu.memory_space<vmem>>, %arg5: memref<1x4x225xf32, #tpu.memory_space<vmem>>) attributes {dimension_semantics = [#tpu.dimension_semantics<parallel>, #tpu.dimension_semantics<parallel>], iteration_bounds = array<i64: 2, 1>, scalar_prefetch = 0 : i64, scratch_operands = 0 : i64, tpu.core_type = #tpu.core_type<tc>, window_params = [{transform_indices = @transform_0, window_bounds = array<i64: 1, 36, 225>}, {pipeline_mode = #tpu.pipeline_mode<synchronous>, transform_indices = @transform_1, window_bounds = array<i64: 4, 36>}, {pipeline_mode = #tpu.pipeline_mode<synchronous>, transform_indices = @transform_2, window_bounds = array<i64: 4, 1>}, {transform_indices = @transform_3, window_bounds = array<i64: 1, 4, 225>}]} {
    %c0 = arith.constant 0 : index
    %c0_0 = arith.constant 0 : index
    %0 = vector.load %arg3[%c0, %c0_0] : memref<4x36xf32, #tpu.memory_space<vmem>>, vector<4x36xf32>
    %c0_1 = arith.constant 0 : index
    %c0_2 = arith.constant 0 : index
    %c0_3 = arith.constant 0 : index
    %1 = vector.load %arg2[%c0_1, %c0_2, %c0_3] : memref<1x36x225xf32, #tpu.memory_space<vmem>>, vector<1x36x225xf32>
    %2 = vector.shape_cast %1 : vector<1x36x225xf32> to vector<36x225xf32>
    %cst = arith.constant dense<0.000000e+00> : vector<4x225xf32>
    %3 = tpu.matmul %0, %2, %cst {dimension_numbers = #tpu.dot_dimension_numbers<[1], [0], [0], [1], [0, 0, 1, 1], [], []>} : vector<4x36xf32>, vector<36x225xf32>, vector<4x225xf32> -> vector<4x225xf32>
    %c0_4 = arith.constant 0 : index
    %c0_5 = arith.constant 0 : index
    %4 = vector.load %arg4[%c0_4, %c0_5] : memref<4x1xf32, #tpu.memory_space<vmem>>, vector<4x1xf32>
    %5 = vector.broadcast %4 : vector<4x1xf32> to vector<4x225xf32>
    %6 = arith.addf %3, %5 : vector<4x225xf32>
    %c0_6 = arith.constant 0 : index
    %c0_7 = arith.constant 0 : index
    %c0_8 = arith.constant 0 : index
    %7 = vector.load %arg5[%c0_6, %c0_7, %c0_8] : memref<1x4x225xf32, #tpu.memory_space<vmem>>, vector<1x4x225xf32>
    %8 = vector.shape_cast %7 : vector<1x4x225xf32> to vector<4x225xf32>
    %9 = vector.shape_cast %6 : vector<4x225xf32> to vector<1x4x225xf32>
    tpu.vector_store %arg5[%c0_6, %c0_7, %c0_8], %9 {strides = array<i32>} : memref<1x4x225xf32, #tpu.memory_space<vmem>>, vector<1x4x225xf32>,
    return
  }
  func.func @transform_0(%arg0: i32, %arg1: i32) -> (i32, i32, i32) {
    %c0_i32 = arith.constant 0 : i32
    %c0_i32_0 = arith.constant 0 : i32
    return %arg0, %c0_i32, %arg1 : i32, i32, i32
  }
  func.func @transform_1(%arg0: i32, %arg1: i32) -> (i32, i32) {
    %c0_i32 = arith.constant 0 : i32
    %c0_i32_0 = arith.constant 0 : i32
    %c0_i32_1 = arith.constant 0 : i32
    return %c0_i32, %c0_i32_0 : i32, i32
  }
  func.func @transform_2(%arg0: i32, %arg1: i32) -> (i32, i32) {
    %c0_i32 = arith.constant 0 : i32
    %c0_i32_0 = arith.constant 0 : i32
    %c0_i32_1 = arith.constant 0 : i32
    return %c0_i32, %c0_i32_0 : i32, i32
  }
  func.func @transform_3(%arg0: i32, %arg1: i32) -> (i32, i32, i32) {
    %c0_i32 = arith.constant 0 : i32
    %c0_i32_0 = arith.constant 0 : i32
    return %arg0, %c0_i32, %arg1 : i32, i32, i32
  }
}

module attributes {stable_mosaic.version = 11 : i64} {
  func.func @_lowres_kernel(%arg0: i32, %arg1: memref<1x4x15x15xf32, #tpu.memory_space<vmem>>, %arg2: memref<9x4x4xf32, #tpu.memory_space<vmem>>, %arg3: memref<4x1xf32, #tpu.memory_space<vmem>>, %arg4: memref<9x4x4xf32, #tpu.memory_space<vmem>>, %arg5: memref<4x1xf32, #tpu.memory_space<vmem>>, %arg6: memref<9x4x4xf32, #tpu.memory_space<vmem>>, %arg7: memref<4x1xf32, #tpu.memory_space<vmem>>, %arg8: memref<9x9x9xf32, #tpu.memory_space<vmem>>, %arg9: memref<1x4x9xf32, #tpu.memory_space<vmem>>, %arg10: memref<4x9xf32, #tpu.memory_space<vmem>>) attributes {dimension_semantics = [#tpu.dimension_semantics<parallel>], iteration_bounds = array<i64: 2>, scalar_prefetch = 0 : i64, scratch_operands = 1 : i64, tpu.core_type = #tpu.core_type<tc>, window_params = [{transform_indices = @transform_0, window_bounds = array<i64: 1, 4, 15, 15>}, {pipeline_mode = #tpu.pipeline_mode<synchronous>, transform_indices = @transform_1, window_bounds = array<i64: 9, 4, 4>}, {pipeline_mode = #tpu.pipeline_mode<synchronous>, transform_indices = @transform_2, window_bounds = array<i64: 4, 1>}, {pipeline_mode = #tpu.pipeline_mode<synchronous>, transform_indices = @transform_3, window_bounds = array<i64: 9, 4, 4>}, {pipeline_mode = #tpu.pipeline_mode<synchronous>, transform_indices = @transform_4, window_bounds = array<i64: 4, 1>}, {pipeline_mode = #tpu.pipeline_mode<synchronous>, transform_indices = @transform_5, window_bounds = array<i64: 9, 4, 4>}, {pipeline_mode = #tpu.pipeline_mode<synchronous>, transform_indices = @transform_6, window_bounds = array<i64: 4, 1>}, {pipeline_mode = #tpu.pipeline_mode<synchronous>, transform_indices = @transform_7, window_bounds = array<i64: 9, 9, 9>}, {transform_indices = @transform_8, window_bounds = array<i64: 1, 4, 9>}]} {
    %c0 = arith.constant 0 : index
    %c0_0 = arith.constant 0 : index
    %c0_1 = arith.constant 0 : index
    %c0_2 = arith.constant 0 : index
    %0 = vector.load %arg1[%c0, %c0_0, %c0_1, %c0_2] : memref<1x4x15x15xf32, #tpu.memory_space<vmem>>, vector<1x4x7x7xf32>
    %1 = vector.shape_cast %0 : vector<1x4x7x7xf32> to vector<4x7x7xf32>
    %cst = arith.constant dense<0xFF800000> : vector<4x7xf32>
    %2 = vector.multi_reduction <maximumf>, %1, %cst [2] : vector<4x7x7xf32> to vector<4x7xf32>
    %cst_3 = arith.constant dense<0xFF800000> : vector<4xf32>
    %3 = vector.multi_reduction <maximumf>, %2, %cst_3 [1] : vector<4x7xf32> to vector<4xf32>
    %4 = vector.shape_cast %3 : vector<4xf32> to vector<4x1xf32>
    %c0_4 = arith.constant 0 : index
    %c0_5 = arith.constant 0 : index
    %5 = vector.load %arg10[%c0_4, %c0_5] : memref<4x9xf32, #tpu.memory_space<vmem>>, vector<4x1xf32>
    tpu.vector_store %arg10[%c0_4, %c0_5], %4 {strides = array<i32>} : memref<4x9xf32, #tpu.memory_space<vmem>>, vector<4x1xf32>,
    %c0_6 = arith.constant 0 : index
    %c0_7 = arith.constant 0 : index
    %c0_8 = arith.constant 0 : index
    %c3 = arith.constant 3 : index
    %6 = vector.load %arg1[%c0_6, %c0_7, %c0_8, %c3] : memref<1x4x15x15xf32, #tpu.memory_space<vmem>>, vector<1x4x7x7xf32>
    %7 = vector.shape_cast %6 : vector<1x4x7x7xf32> to vector<4x7x7xf32>
    %cst_9 = arith.constant dense<0xFF800000> : vector<4x7xf32>
    %8 = vector.multi_reduction <maximumf>, %7, %cst_9 [2] : vector<4x7x7xf32> to vector<4x7xf32>
    %cst_10 = arith.constant dense<0xFF800000> : vector<4xf32>
    %9 = vector.multi_reduction <maximumf>, %8, %cst_10 [1] : vector<4x7xf32> to vector<4xf32>
    %10 = vector.shape_cast %9 : vector<4xf32> to vector<4x1xf32>
    %c0_11 = arith.constant 0 : index
    %c1 = arith.constant 1 : index
    %11 = vector.load %arg10[%c0_11, %c1] : memref<4x9xf32, #tpu.memory_space<vmem>>, vector<4x1xf32>
    tpu.vector_store %arg10[%c0_11, %c1], %10 {strides = array<i32>} : memref<4x9xf32, #tpu.memory_space<vmem>>, vector<4x1xf32>,
    %c0_12 = arith.constant 0 : index
    %c0_13 = arith.constant 0 : index
    %c0_14 = arith.constant 0 : index
    %c6 = arith.constant 6 : index
    %12 = vector.load %arg1[%c0_12, %c0_13, %c0_14, %c6] : memref<1x4x15x15xf32, #tpu.memory_space<vmem>>, vector<1x4x7x7xf32>
    %13 = vector.shape_cast %12 : vector<1x4x7x7xf32> to vector<4x7x7xf32>
    %cst_15 = arith.constant dense<0xFF800000> : vector<4x7xf32>
    %14 = vector.multi_reduction <maximumf>, %13, %cst_15 [2] : vector<4x7x7xf32> to vector<4x7xf32>
    %cst_16 = arith.constant dense<0xFF800000> : vector<4xf32>
    %15 = vector.multi_reduction <maximumf>, %14, %cst_16 [1] : vector<4x7xf32> to vector<4xf32>
    %16 = vector.shape_cast %15 : vector<4xf32> to vector<4x1xf32>
    %c0_17 = arith.constant 0 : index
    %c2 = arith.constant 2 : index
    %17 = vector.load %arg10[%c0_17, %c2] : memref<4x9xf32, #tpu.memory_space<vmem>>, vector<4x1xf32>
    tpu.vector_store %arg10[%c0_17, %c2], %16 {strides = array<i32>} : memref<4x9xf32, #tpu.memory_space<vmem>>, vector<4x1xf32>,
    %c0_18 = arith.constant 0 : index
    %c0_19 = arith.constant 0 : index
    %c3_20 = arith.constant 3 : index
    %c0_21 = arith.constant 0 : index
    %18 = vector.load %arg1[%c0_18, %c0_19, %c3_20, %c0_21] : memref<1x4x15x15xf32, #tpu.memory_space<vmem>>, vector<1x4x7x7xf32>
    %19 = vector.shape_cast %18 : vector<1x4x7x7xf32> to vector<4x7x7xf32>
    %cst_22 = arith.constant dense<0xFF800000> : vector<4x7xf32>
    %20 = vector.multi_reduction <maximumf>, %19, %cst_22 [2] : vector<4x7x7xf32> to vector<4x7xf32>
    %cst_23 = arith.constant dense<0xFF800000> : vector<4xf32>
    %21 = vector.multi_reduction <maximumf>, %20, %cst_23 [1] : vector<4x7xf32> to vector<4xf32>
    %22 = vector.shape_cast %21 : vector<4xf32> to vector<4x1xf32>
    %c0_24 = arith.constant 0 : index
    %c3_25 = arith.constant 3 : index
    %23 = vector.load %arg10[%c0_24, %c3_25] : memref<4x9xf32, #tpu.memory_space<vmem>>, vector<4x1xf32>
    tpu.vector_store %arg10[%c0_24, %c3_25], %22 {strides = array<i32>} : memref<4x9xf32, #tpu.memory_space<vmem>>, vector<4x1xf32>,
    %c0_26 = arith.constant 0 : index
    %c0_27 = arith.constant 0 : index
    %c3_28 = arith.constant 3 : index
    %c3_29 = arith.constant 3 : index
    %24 = vector.load %arg1[%c0_26, %c0_27, %c3_28, %c3_29] : memref<1x4x15x15xf32, #tpu.memory_space<vmem>>, vector<1x4x7x7xf32>
    %25 = vector.shape_cast %24 : vector<1x4x7x7xf32> to vector<4x7x7xf32>
    %cst_30 = arith.constant dense<0xFF800000> : vector<4x7xf32>
    %26 = vector.multi_reduction <maximumf>, %25, %cst_30 [2] : vector<4x7x7xf32> to vector<4x7xf32>
    %cst_31 = arith.constant dense<0xFF800000> : vector<4xf32>
    %27 = vector.multi_reduction <maximumf>, %26, %cst_31 [1] : vector<4x7xf32> to vector<4xf32>
    %28 = vector.shape_cast %27 : vector<4xf32> to vector<4x1xf32>
    %c0_32 = arith.constant 0 : index
    %c4 = arith.constant 4 : index
    %29 = vector.load %arg10[%c0_32, %c4] : memref<4x9xf32, #tpu.memory_space<vmem>>, vector<4x1xf32>
    tpu.vector_store %arg10[%c0_32, %c4], %28 {strides = array<i32>} : memref<4x9xf32, #tpu.memory_space<vmem>>, vector<4x1xf32>,
    %c0_33 = arith.constant 0 : index
    %c0_34 = arith.constant 0 : index
    %c3_35 = arith.constant 3 : index
    %c6_36 = arith.constant 6 : index
    %30 = vector.load %arg1[%c0_33, %c0_34, %c3_35, %c6_36] : memref<1x4x15x15xf32, #tpu.memory_space<vmem>>, vector<1x4x7x7xf32>
    %31 = vector.shape_cast %30 : vector<1x4x7x7xf32> to vector<4x7x7xf32>
    %cst_37 = arith.constant dense<0xFF800000> : vector<4x7xf32>
    %32 = vector.multi_reduction <maximumf>, %31, %cst_37 [2] : vector<4x7x7xf32> to vector<4x7xf32>
    %cst_38 = arith.constant dense<0xFF800000> : vector<4xf32>
    %33 = vector.multi_reduction <maximumf>, %32, %cst_38 [1] : vector<4x7xf32> to vector<4xf32>
    %34 = vector.shape_cast %33 : vector<4xf32> to vector<4x1xf32>
    %c0_39 = arith.constant 0 : index
    %c5 = arith.constant 5 : index
    %35 = vector.load %arg10[%c0_39, %c5] : memref<4x9xf32, #tpu.memory_space<vmem>>, vector<4x1xf32>
    tpu.vector_store %arg10[%c0_39, %c5], %34 {strides = array<i32>} : memref<4x9xf32, #tpu.memory_space<vmem>>, vector<4x1xf32>,
    %c0_40 = arith.constant 0 : index
    %c0_41 = arith.constant 0 : index
    %c6_42 = arith.constant 6 : index
    %c0_43 = arith.constant 0 : index
    %36 = vector.load %arg1[%c0_40, %c0_41, %c6_42, %c0_43] : memref<1x4x15x15xf32, #tpu.memory_space<vmem>>, vector<1x4x7x7xf32>
    %37 = vector.shape_cast %36 : vector<1x4x7x7xf32> to vector<4x7x7xf32>
    %cst_44 = arith.constant dense<0xFF800000> : vector<4x7xf32>
    %38 = vector.multi_reduction <maximumf>, %37, %cst_44 [2] : vector<4x7x7xf32> to vector<4x7xf32>
    %cst_45 = arith.constant dense<0xFF800000> : vector<4xf32>
    %39 = vector.multi_reduction <maximumf>, %38, %cst_45 [1] : vector<4x7xf32> to vector<4xf32>
    %40 = vector.shape_cast %39 : vector<4xf32> to vector<4x1xf32>
    %c0_46 = arith.constant 0 : index
    %c6_47 = arith.constant 6 : index
    %41 = vector.load %arg10[%c0_46, %c6_47] : memref<4x9xf32, #tpu.memory_space<vmem>>, vector<4x1xf32>
    tpu.vector_store %arg10[%c0_46, %c6_47], %40 {strides = array<i32>} : memref<4x9xf32, #tpu.memory_space<vmem>>, vector<4x1xf32>,
    %c0_48 = arith.constant 0 : index
    %c0_49 = arith.constant 0 : index
    %c6_50 = arith.constant 6 : index
    %c3_51 = arith.constant 3 : index
    %42 = vector.load %arg1[%c0_48, %c0_49, %c6_50, %c3_51] : memref<1x4x15x15xf32, #tpu.memory_space<vmem>>, vector<1x4x7x7xf32>
    %43 = vector.shape_cast %42 : vector<1x4x7x7xf32> to vector<4x7x7xf32>
    %cst_52 = arith.constant dense<0xFF800000> : vector<4x7xf32>
    %44 = vector.multi_reduction <maximumf>, %43, %cst_52 [2] : vector<4x7x7xf32> to vector<4x7xf32>
    %cst_53 = arith.constant dense<0xFF800000> : vector<4xf32>
    %45 = vector.multi_reduction <maximumf>, %44, %cst_53 [1] : vector<4x7xf32> to vector<4xf32>
    %46 = vector.shape_cast %45 : vector<4xf32> to vector<4x1xf32>
    %c0_54 = arith.constant 0 : index
    %c7 = arith.constant 7 : index
    %47 = vector.load %arg10[%c0_54, %c7] : memref<4x9xf32, #tpu.memory_space<vmem>>, vector<4x1xf32>
    tpu.vector_store %arg10[%c0_54, %c7], %46 {strides = array<i32>} : memref<4x9xf32, #tpu.memory_space<vmem>>, vector<4x1xf32>,
    %c0_55 = arith.constant 0 : index
    %c0_56 = arith.constant 0 : index
    %c6_57 = arith.constant 6 : index
    %c6_58 = arith.constant 6 : index
    %48 = vector.load %arg1[%c0_55, %c0_56, %c6_57, %c6_58] : memref<1x4x15x15xf32, #tpu.memory_space<vmem>>, vector<1x4x7x7xf32>
    %49 = vector.shape_cast %48 : vector<1x4x7x7xf32> to vector<4x7x7xf32>
    %cst_59 = arith.constant dense<0xFF800000> : vector<4x7xf32>
    %50 = vector.multi_reduction <maximumf>, %49, %cst_59 [2] : vector<4x7x7xf32> to vector<4x7xf32>
    %cst_60 = arith.constant dense<0xFF800000> : vector<4xf32>
    %51 = vector.multi_reduction <maximumf>, %50, %cst_60 [1] : vector<4x7xf32> to vector<4xf32>
    %52 = vector.shape_cast %51 : vector<4xf32> to vector<4x1xf32>
    %c0_61 = arith.constant 0 : index
    %c8 = arith.constant 8 : index
    %53 = vector.load %arg10[%c0_61, %c8] : memref<4x9xf32, #tpu.memory_space<vmem>>, vector<4x1xf32>
    tpu.vector_store %arg10[%c0_61, %c8], %52 {strides = array<i32>} : memref<4x9xf32, #tpu.memory_space<vmem>>, vector<4x1xf32>,
    %c0_62 = arith.constant 0 : index
    %c0_63 = arith.constant 0 : index
    %54 = vector.load %arg10[%c0_62, %c0_63] : memref<4x9xf32, #tpu.memory_space<vmem>>, vector<4x9xf32>
    %cst_64 = arith.constant 0.000000e+00 : f32
    %55 = vector.broadcast %cst_64 : f32 to vector<4x9xf32>
    %c0_65 = arith.constant 0 : index
    %c0_66 = arith.constant 0 : index
    %c0_67 = arith.constant 0 : index
    %56 = vector.load %arg2[%c0_65, %c0_66, %c0_67] : memref<9x4x4xf32, #tpu.memory_space<vmem>>, vector<1x4x4xf32>
    %57 = vector.shape_cast %56 : vector<1x4x4xf32> to vector<4x4xf32>
    %cst_68 = arith.constant dense<0.000000e+00> : vector<4x9xf32>
    %58 = tpu.matmul %57, %54, %cst_68 {dimension_numbers = #tpu.dot_dimension_numbers<[1], [0], [0], [1], [0, 0, 1, 1], [], []>} : vector<4x4xf32>, vector<4x9xf32>, vector<4x9xf32> -> vector<4x9xf32>
    %c0_69 = arith.constant 0 : index
    %c0_70 = arith.constant 0 : index
    %c0_71 = arith.constant 0 : index
    %59 = vector.load %arg8[%c0_69, %c0_70, %c0_71] : memref<9x9x9xf32, #tpu.memory_space<vmem>>, vector<1x9x9xf32>
    %60 = vector.shape_cast %59 : vector<1x9x9xf32> to vector<9x9xf32>
    %cst_72 = arith.constant dense<0.000000e+00> : vector<4x9xf32>
    %61 = tpu.matmul %58, %60, %cst_72 {dimension_numbers = #tpu.dot_dimension_numbers<[1], [0], [0], [1], [0, 0, 1, 1], [], []>} : vector<4x9xf32>, vector<9x9xf32>, vector<4x9xf32> -> vector<4x9xf32>
    %62 = arith.addf %55, %61 : vector<4x9xf32>
    %c1_73 = arith.constant 1 : index
    %c0_74 = arith.constant 0 : index
    %c0_75 = arith.constant 0 : index
    %63 = vector.load %arg2[%c1_73, %c0_74, %c0_75] : memref<9x4x4xf32, #tpu.memory_space<vmem>>, vector<1x4x4xf32>
    %64 = vector.shape_cast %63 : vector<1x4x4xf32> to vector<4x4xf32>
    %cst_76 = arith.constant dense<0.000000e+00> : vector<4x9xf32>
    %65 = tpu.matmul %64, %54, %cst_76 {dimension_numbers = #tpu.dot_dimension_numbers<[1], [0], [0], [1], [0, 0, 1, 1], [], []>} : vector<4x4xf32>, vector<4x9xf32>, vector<4x9xf32> -> vector<4x9xf32>
    %c1_77 = arith.constant 1 : index
    %c0_78 = arith.constant 0 : index
    %c0_79 = arith.constant 0 : index
    %66 = vector.load %arg8[%c1_77, %c0_78, %c0_79] : memref<9x9x9xf32, #tpu.memory_space<vmem>>, vector<1x9x9xf32>
    %67 = vector.shape_cast %66 : vector<1x9x9xf32> to vector<9x9xf32>
    %cst_80 = arith.constant dense<0.000000e+00> : vector<4x9xf32>
    %68 = tpu.matmul %65, %67, %cst_80 {dimension_numbers = #tpu.dot_dimension_numbers<[1], [0], [0], [1], [0, 0, 1, 1], [], []>} : vector<4x9xf32>, vector<9x9xf32>, vector<4x9xf32> -> vector<4x9xf32>
    %69 = arith.addf %62, %68 : vector<4x9xf32>
    %c2_81 = arith.constant 2 : index
    %c0_82 = arith.constant 0 : index
    %c0_83 = arith.constant 0 : index
    %70 = vector.load %arg2[%c2_81, %c0_82, %c0_83] : memref<9x4x4xf32, #tpu.memory_space<vmem>>, vector<1x4x4xf32>
    %71 = vector.shape_cast %70 : vector<1x4x4xf32> to vector<4x4xf32>
    %cst_84 = arith.constant dense<0.000000e+00> : vector<4x9xf32>
    %72 = tpu.matmul %71, %54, %cst_84 {dimension_numbers = #tpu.dot_dimension_numbers<[1], [0], [0], [1], [0, 0, 1, 1], [], []>} : vector<4x4xf32>, vector<4x9xf32>, vector<4x9xf32> -> vector<4x9xf32>
    %c2_85 = arith.constant 2 : index
    %c0_86 = arith.constant 0 : index
    %c0_87 = arith.constant 0 : index
    %73 = vector.load %arg8[%c2_85, %c0_86, %c0_87] : memref<9x9x9xf32, #tpu.memory_space<vmem>>, vector<1x9x9xf32>
    %74 = vector.shape_cast %73 : vector<1x9x9xf32> to vector<9x9xf32>
    %cst_88 = arith.constant dense<0.000000e+00> : vector<4x9xf32>
    %75 = tpu.matmul %72, %74, %cst_88 {dimension_numbers = #tpu.dot_dimension_numbers<[1], [0], [0], [1], [0, 0, 1, 1], [], []>} : vector<4x9xf32>, vector<9x9xf32>, vector<4x9xf32> -> vector<4x9xf32>
    %76 = arith.addf %69, %75 : vector<4x9xf32>
    %c3_89 = arith.constant 3 : index
    %c0_90 = arith.constant 0 : index
    %c0_91 = arith.constant 0 : index
    %77 = vector.load %arg2[%c3_89, %c0_90, %c0_91] : memref<9x4x4xf32, #tpu.memory_space<vmem>>, vector<1x4x4xf32>
    %78 = vector.shape_cast %77 : vector<1x4x4xf32> to vector<4x4xf32>
    %cst_92 = arith.constant dense<0.000000e+00> : vector<4x9xf32>
    %79 = tpu.matmul %78, %54, %cst_92 {dimension_numbers = #tpu.dot_dimension_numbers<[1], [0], [0], [1], [0, 0, 1, 1], [], []>} : vector<4x4xf32>, vector<4x9xf32>, vector<4x9xf32> -> vector<4x9xf32>
    %c3_93 = arith.constant 3 : index
    %c0_94 = arith.constant 0 : index
    %c0_95 = arith.constant 0 : index
    %80 = vector.load %arg8[%c3_93, %c0_94, %c0_95] : memref<9x9x9xf32, #tpu.memory_space<vmem>>, vector<1x9x9xf32>
    %81 = vector.shape_cast %80 : vector<1x9x9xf32> to vector<9x9xf32>
    %cst_96 = arith.constant dense<0.000000e+00> : vector<4x9xf32>
    %82 = tpu.matmul %79, %81, %cst_96 {dimension_numbers = #tpu.dot_dimension_numbers<[1], [0], [0], [1], [0, 0, 1, 1], [], []>} : vector<4x9xf32>, vector<9x9xf32>, vector<4x9xf32> -> vector<4x9xf32>
    %83 = arith.addf %76, %82 : vector<4x9xf32>
    %c4_97 = arith.constant 4 : index
    %c0_98 = arith.constant 0 : index
    %c0_99 = arith.constant 0 : index
    %84 = vector.load %arg2[%c4_97, %c0_98, %c0_99] : memref<9x4x4xf32, #tpu.memory_space<vmem>>, vector<1x4x4xf32>
    %85 = vector.shape_cast %84 : vector<1x4x4xf32> to vector<4x4xf32>
    %cst_100 = arith.constant dense<0.000000e+00> : vector<4x9xf32>
    %86 = tpu.matmul %85, %54, %cst_100 {dimension_numbers = #tpu.dot_dimension_numbers<[1], [0], [0], [1], [0, 0, 1, 1], [], []>} : vector<4x4xf32>, vector<4x9xf32>, vector<4x9xf32> -> vector<4x9xf32>
    %c4_101 = arith.constant 4 : index
    %c0_102 = arith.constant 0 : index
    %c0_103 = arith.constant 0 : index
    %87 = vector.load %arg8[%c4_101, %c0_102, %c0_103] : memref<9x9x9xf32, #tpu.memory_space<vmem>>, vector<1x9x9xf32>
    %88 = vector.shape_cast %87 : vector<1x9x9xf32> to vector<9x9xf32>
    %cst_104 = arith.constant dense<0.000000e+00> : vector<4x9xf32>
    %89 = tpu.matmul %86, %88, %cst_104 {dimension_numbers = #tpu.dot_dimension_numbers<[1], [0], [0], [1], [0, 0, 1, 1], [], []>} : vector<4x9xf32>, vector<9x9xf32>, vector<4x9xf32> -> vector<4x9xf32>
    %90 = arith.addf %83, %89 : vector<4x9xf32>
    %c5_105 = arith.constant 5 : index
    %c0_106 = arith.constant 0 : index
    %c0_107 = arith.constant 0 : index
    %91 = vector.load %arg2[%c5_105, %c0_106, %c0_107] : memref<9x4x4xf32, #tpu.memory_space<vmem>>, vector<1x4x4xf32>
    %92 = vector.shape_cast %91 : vector<1x4x4xf32> to vector<4x4xf32>
    %cst_108 = arith.constant dense<0.000000e+00> : vector<4x9xf32>
    %93 = tpu.matmul %92, %54, %cst_108 {dimension_numbers = #tpu.dot_dimension_numbers<[1], [0], [0], [1], [0, 0, 1, 1], [], []>} : vector<4x4xf32>, vector<4x9xf32>, vector<4x9xf32> -> vector<4x9xf32>
    %c5_109 = arith.constant 5 : index
    %c0_110 = arith.constant 0 : index
    %c0_111 = arith.constant 0 : index
    %94 = vector.load %arg8[%c5_109, %c0_110, %c0_111] : memref<9x9x9xf32, #tpu.memory_space<vmem>>, vector<1x9x9xf32>
    %95 = vector.shape_cast %94 : vector<1x9x9xf32> to vector<9x9xf32>
    %cst_112 = arith.constant dense<0.000000e+00> : vector<4x9xf32>
    %96 = tpu.matmul %93, %95, %cst_112 {dimension_numbers = #tpu.dot_dimension_numbers<[1], [0], [0], [1], [0, 0, 1, 1], [], []>} : vector<4x9xf32>, vector<9x9xf32>, vector<4x9xf32> -> vector<4x9xf32>
    %97 = arith.addf %90, %96 : vector<4x9xf32>
    %c6_113 = arith.constant 6 : index
    %c0_114 = arith.constant 0 : index
    %c0_115 = arith.constant 0 : index
    %98 = vector.load %arg2[%c6_113, %c0_114, %c0_115] : memref<9x4x4xf32, #tpu.memory_space<vmem>>, vector<1x4x4xf32>
    %99 = vector.shape_cast %98 : vector<1x4x4xf32> to vector<4x4xf32>
    %cst_116 = arith.constant dense<0.000000e+00> : vector<4x9xf32>
    %100 = tpu.matmul %99, %54, %cst_116 {dimension_numbers = #tpu.dot_dimension_numbers<[1], [0], [0], [1], [0, 0, 1, 1], [], []>} : vector<4x4xf32>, vector<4x9xf32>, vector<4x9xf32> -> vector<4x9xf32>
    %c6_117 = arith.constant 6 : index
    %c0_118 = arith.constant 0 : index
    %c0_119 = arith.constant 0 : index
    %101 = vector.load %arg8[%c6_117, %c0_118, %c0_119] : memref<9x9x9xf32, #tpu.memory_space<vmem>>, vector<1x9x9xf32>
    %102 = vector.shape_cast %101 : vector<1x9x9xf32> to vector<9x9xf32>
    %cst_120 = arith.constant dense<0.000000e+00> : vector<4x9xf32>
    %103 = tpu.matmul %100, %102, %cst_120 {dimension_numbers = #tpu.dot_dimension_numbers<[1], [0], [0], [1], [0, 0, 1, 1], [], []>} : vector<4x9xf32>, vector<9x9xf32>, vector<4x9xf32> -> vector<4x9xf32>
    %104 = arith.addf %97, %103 : vector<4x9xf32>
    %c7_121 = arith.constant 7 : index
    %c0_122 = arith.constant 0 : index
    %c0_123 = arith.constant 0 : index
    %105 = vector.load %arg2[%c7_121, %c0_122, %c0_123] : memref<9x4x4xf32, #tpu.memory_space<vmem>>, vector<1x4x4xf32>
    %106 = vector.shape_cast %105 : vector<1x4x4xf32> to vector<4x4xf32>
    %cst_124 = arith.constant dense<0.000000e+00> : vector<4x9xf32>
    %107 = tpu.matmul %106, %54, %cst_124 {dimension_numbers = #tpu.dot_dimension_numbers<[1], [0], [0], [1], [0, 0, 1, 1], [], []>} : vector<4x4xf32>, vector<4x9xf32>, vector<4x9xf32> -> vector<4x9xf32>
    %c7_125 = arith.constant 7 : index
    %c0_126 = arith.constant 0 : index
    %c0_127 = arith.constant 0 : index
    %108 = vector.load %arg8[%c7_125, %c0_126, %c0_127] : memref<9x9x9xf32, #tpu.memory_space<vmem>>, vector<1x9x9xf32>
    %109 = vector.shape_cast %108 : vector<1x9x9xf32> to vector<9x9xf32>
    %cst_128 = arith.constant dense<0.000000e+00> : vector<4x9xf32>
    %110 = tpu.matmul %107, %109, %cst_128 {dimension_numbers = #tpu.dot_dimension_numbers<[1], [0], [0], [1], [0, 0, 1, 1], [], []>} : vector<4x9xf32>, vector<9x9xf32>, vector<4x9xf32> -> vector<4x9xf32>
    %111 = arith.addf %104, %110 : vector<4x9xf32>
    %c8_129 = arith.constant 8 : index
    %c0_130 = arith.constant 0 : index
    %c0_131 = arith.constant 0 : index
    %112 = vector.load %arg2[%c8_129, %c0_130, %c0_131] : memref<9x4x4xf32, #tpu.memory_space<vmem>>, vector<1x4x4xf32>
    %113 = vector.shape_cast %112 : vector<1x4x4xf32> to vector<4x4xf32>
    %cst_132 = arith.constant dense<0.000000e+00> : vector<4x9xf32>
    %114 = tpu.matmul %113, %54, %cst_132 {dimension_numbers = #tpu.dot_dimension_numbers<[1], [0], [0], [1], [0, 0, 1, 1], [], []>} : vector<4x4xf32>, vector<4x9xf32>, vector<4x9xf32> -> vector<4x9xf32>
    %c8_133 = arith.constant 8 : index
    %c0_134 = arith.constant 0 : index
    %c0_135 = arith.constant 0 : index
    %115 = vector.load %arg8[%c8_133, %c0_134, %c0_135] : memref<9x9x9xf32, #tpu.memory_space<vmem>>, vector<1x9x9xf32>
    %116 = vector.shape_cast %115 : vector<1x9x9xf32> to vector<9x9xf32>
    %cst_136 = arith.constant dense<0.000000e+00> : vector<4x9xf32>
    %117 = tpu.matmul %114, %116, %cst_136 {dimension_numbers = #tpu.dot_dimension_numbers<[1], [0], [0], [1], [0, 0, 1, 1], [], []>} : vector<4x9xf32>, vector<9x9xf32>, vector<4x9xf32> -> vector<4x9xf32>
    %118 = arith.addf %111, %117 : vector<4x9xf32>
    %c0_137 = arith.constant 0 : index
    %c0_138 = arith.constant 0 : index
    %119 = vector.load %arg3[%c0_137, %c0_138] : memref<4x1xf32, #tpu.memory_space<vmem>>, vector<4x1xf32>
    %120 = vector.broadcast %119 : vector<4x1xf32> to vector<4x9xf32>
    %121 = arith.addf %118, %120 : vector<4x9xf32>
    %cst_139 = arith.constant 0.000000e+00 : f32
    %122 = vector.broadcast %cst_139 : f32 to vector<4x9xf32>
    %123 = arith.maximumf %121, %122 : vector<4x9xf32>
    %cst_140 = arith.constant 0.000000e+00 : f32
    %124 = vector.broadcast %cst_140 : f32 to vector<4x9xf32>
    %c0_141 = arith.constant 0 : index
    %c0_142 = arith.constant 0 : index
    %c0_143 = arith.constant 0 : index
    %125 = vector.load %arg4[%c0_141, %c0_142, %c0_143] : memref<9x4x4xf32, #tpu.memory_space<vmem>>, vector<1x4x4xf32>
    %126 = vector.shape_cast %125 : vector<1x4x4xf32> to vector<4x4xf32>
    %cst_144 = arith.constant dense<0.000000e+00> : vector<4x9xf32>
    %127 = tpu.matmul %126, %123, %cst_144 {dimension_numbers = #tpu.dot_dimension_numbers<[1], [0], [0], [1], [0, 0, 1, 1], [], []>} : vector<4x4xf32>, vector<4x9xf32>, vector<4x9xf32> -> vector<4x9xf32>
    %c0_145 = arith.constant 0 : index
    %c0_146 = arith.constant 0 : index
    %c0_147 = arith.constant 0 : index
    %128 = vector.load %arg8[%c0_145, %c0_146, %c0_147] : memref<9x9x9xf32, #tpu.memory_space<vmem>>, vector<1x9x9xf32>
    %129 = vector.shape_cast %128 : vector<1x9x9xf32> to vector<9x9xf32>
    %cst_148 = arith.constant dense<0.000000e+00> : vector<4x9xf32>
    %130 = tpu.matmul %127, %129, %cst_148 {dimension_numbers = #tpu.dot_dimension_numbers<[1], [0], [0], [1], [0, 0, 1, 1], [], []>} : vector<4x9xf32>, vector<9x9xf32>, vector<4x9xf32> -> vector<4x9xf32>
    %131 = arith.addf %124, %130 : vector<4x9xf32>
    %c1_149 = arith.constant 1 : index
    %c0_150 = arith.constant 0 : index
    %c0_151 = arith.constant 0 : index
    %132 = vector.load %arg4[%c1_149, %c0_150, %c0_151] : memref<9x4x4xf32, #tpu.memory_space<vmem>>, vector<1x4x4xf32>
    %133 = vector.shape_cast %132 : vector<1x4x4xf32> to vector<4x4xf32>
    %cst_152 = arith.constant dense<0.000000e+00> : vector<4x9xf32>
    %134 = tpu.matmul %133, %123, %cst_152 {dimension_numbers = #tpu.dot_dimension_numbers<[1], [0], [0], [1], [0, 0, 1, 1], [], []>} : vector<4x4xf32>, vector<4x9xf32>, vector<4x9xf32> -> vector<4x9xf32>
    %c1_153 = arith.constant 1 : index
    %c0_154 = arith.constant 0 : index
    %c0_155 = arith.constant 0 : index
    %135 = vector.load %arg8[%c1_153, %c0_154, %c0_155] : memref<9x9x9xf32, #tpu.memory_space<vmem>>, vector<1x9x9xf32>
    %136 = vector.shape_cast %135 : vector<1x9x9xf32> to vector<9x9xf32>
    %cst_156 = arith.constant dense<0.000000e+00> : vector<4x9xf32>
    %137 = tpu.matmul %134, %136, %cst_156 {dimension_numbers = #tpu.dot_dimension_numbers<[1], [0], [0], [1], [0, 0, 1, 1], [], []>} : vector<4x9xf32>, vector<9x9xf32>, vector<4x9xf32> -> vector<4x9xf32>
    %138 = arith.addf %131, %137 : vector<4x9xf32>
    %c2_157 = arith.constant 2 : index
    %c0_158 = arith.constant 0 : index
    %c0_159 = arith.constant 0 : index
    %139 = vector.load %arg4[%c2_157, %c0_158, %c0_159] : memref<9x4x4xf32, #tpu.memory_space<vmem>>, vector<1x4x4xf32>
    %140 = vector.shape_cast %139 : vector<1x4x4xf32> to vector<4x4xf32>
    %cst_160 = arith.constant dense<0.000000e+00> : vector<4x9xf32>
    %141 = tpu.matmul %140, %123, %cst_160 {dimension_numbers = #tpu.dot_dimension_numbers<[1], [0], [0], [1], [0, 0, 1, 1], [], []>} : vector<4x4xf32>, vector<4x9xf32>, vector<4x9xf32> -> vector<4x9xf32>
    %c2_161 = arith.constant 2 : index
    %c0_162 = arith.constant 0 : index
    %c0_163 = arith.constant 0 : index
    %142 = vector.load %arg8[%c2_161, %c0_162, %c0_163] : memref<9x9x9xf32, #tpu.memory_space<vmem>>, vector<1x9x9xf32>
    %143 = vector.shape_cast %142 : vector<1x9x9xf32> to vector<9x9xf32>
    %cst_164 = arith.constant dense<0.000000e+00> : vector<4x9xf32>
    %144 = tpu.matmul %141, %143, %cst_164 {dimension_numbers = #tpu.dot_dimension_numbers<[1], [0], [0], [1], [0, 0, 1, 1], [], []>} : vector<4x9xf32>, vector<9x9xf32>, vector<4x9xf32> -> vector<4x9xf32>
    %145 = arith.addf %138, %144 : vector<4x9xf32>
    %c3_165 = arith.constant 3 : index
    %c0_166 = arith.constant 0 : index
    %c0_167 = arith.constant 0 : index
    %146 = vector.load %arg4[%c3_165, %c0_166, %c0_167] : memref<9x4x4xf32, #tpu.memory_space<vmem>>, vector<1x4x4xf32>
    %147 = vector.shape_cast %146 : vector<1x4x4xf32> to vector<4x4xf32>
    %cst_168 = arith.constant dense<0.000000e+00> : vector<4x9xf32>
    %148 = tpu.matmul %147, %123, %cst_168 {dimension_numbers = #tpu.dot_dimension_numbers<[1], [0], [0], [1], [0, 0, 1, 1], [], []>} : vector<4x4xf32>, vector<4x9xf32>, vector<4x9xf32> -> vector<4x9xf32>
    %c3_169 = arith.constant 3 : index
    %c0_170 = arith.constant 0 : index
    %c0_171 = arith.constant 0 : index
    %149 = vector.load %arg8[%c3_169, %c0_170, %c0_171] : memref<9x9x9xf32, #tpu.memory_space<vmem>>, vector<1x9x9xf32>
    %150 = vector.shape_cast %149 : vector<1x9x9xf32> to vector<9x9xf32>
    %cst_172 = arith.constant dense<0.000000e+00> : vector<4x9xf32>
    %151 = tpu.matmul %148, %150, %cst_172 {dimension_numbers = #tpu.dot_dimension_numbers<[1], [0], [0], [1], [0, 0, 1, 1], [], []>} : vector<4x9xf32>, vector<9x9xf32>, vector<4x9xf32> -> vector<4x9xf32>
    %152 = arith.addf %145, %151 : vector<4x9xf32>
    %c4_173 = arith.constant 4 : index
    %c0_174 = arith.constant 0 : index
    %c0_175 = arith.constant 0 : index
    %153 = vector.load %arg4[%c4_173, %c0_174, %c0_175] : memref<9x4x4xf32, #tpu.memory_space<vmem>>, vector<1x4x4xf32>
    %154 = vector.shape_cast %153 : vector<1x4x4xf32> to vector<4x4xf32>
    %cst_176 = arith.constant dense<0.000000e+00> : vector<4x9xf32>
    %155 = tpu.matmul %154, %123, %cst_176 {dimension_numbers = #tpu.dot_dimension_numbers<[1], [0], [0], [1], [0, 0, 1, 1], [], []>} : vector<4x4xf32>, vector<4x9xf32>, vector<4x9xf32> -> vector<4x9xf32>
    %c4_177 = arith.constant 4 : index
    %c0_178 = arith.constant 0 : index
    %c0_179 = arith.constant 0 : index
    %156 = vector.load %arg8[%c4_177, %c0_178, %c0_179] : memref<9x9x9xf32, #tpu.memory_space<vmem>>, vector<1x9x9xf32>
    %157 = vector.shape_cast %156 : vector<1x9x9xf32> to vector<9x9xf32>
    %cst_180 = arith.constant dense<0.000000e+00> : vector<4x9xf32>
    %158 = tpu.matmul %155, %157, %cst_180 {dimension_numbers = #tpu.dot_dimension_numbers<[1], [0], [0], [1], [0, 0, 1, 1], [], []>} : vector<4x9xf32>, vector<9x9xf32>, vector<4x9xf32> -> vector<4x9xf32>
    %159 = arith.addf %152, %158 : vector<4x9xf32>
    %c5_181 = arith.constant 5 : index
    %c0_182 = arith.constant 0 : index
    %c0_183 = arith.constant 0 : index
    %160 = vector.load %arg4[%c5_181, %c0_182, %c0_183] : memref<9x4x4xf32, #tpu.memory_space<vmem>>, vector<1x4x4xf32>
    %161 = vector.shape_cast %160 : vector<1x4x4xf32> to vector<4x4xf32>
    %cst_184 = arith.constant dense<0.000000e+00> : vector<4x9xf32>
    %162 = tpu.matmul %161, %123, %cst_184 {dimension_numbers = #tpu.dot_dimension_numbers<[1], [0], [0], [1], [0, 0, 1, 1], [], []>} : vector<4x4xf32>, vector<4x9xf32>, vector<4x9xf32> -> vector<4x9xf32>
    %c5_185 = arith.constant 5 : index
    %c0_186 = arith.constant 0 : index
    %c0_187 = arith.constant 0 : index
    %163 = vector.load %arg8[%c5_185, %c0_186, %c0_187] : memref<9x9x9xf32, #tpu.memory_space<vmem>>, vector<1x9x9xf32>
    %164 = vector.shape_cast %163 : vector<1x9x9xf32> to vector<9x9xf32>
    %cst_188 = arith.constant dense<0.000000e+00> : vector<4x9xf32>
    %165 = tpu.matmul %162, %164, %cst_188 {dimension_numbers = #tpu.dot_dimension_numbers<[1], [0], [0], [1], [0, 0, 1, 1], [], []>} : vector<4x9xf32>, vector<9x9xf32>, vector<4x9xf32> -> vector<4x9xf32>
    %166 = arith.addf %159, %165 : vector<4x9xf32>
    %c6_189 = arith.constant 6 : index
    %c0_190 = arith.constant 0 : index
    %c0_191 = arith.constant 0 : index
    %167 = vector.load %arg4[%c6_189, %c0_190, %c0_191] : memref<9x4x4xf32, #tpu.memory_space<vmem>>, vector<1x4x4xf32>
    %168 = vector.shape_cast %167 : vector<1x4x4xf32> to vector<4x4xf32>
    %cst_192 = arith.constant dense<0.000000e+00> : vector<4x9xf32>
    %169 = tpu.matmul %168, %123, %cst_192 {dimension_numbers = #tpu.dot_dimension_numbers<[1], [0], [0], [1], [0, 0, 1, 1], [], []>} : vector<4x4xf32>, vector<4x9xf32>, vector<4x9xf32> -> vector<4x9xf32>
    %c6_193 = arith.constant 6 : index
    %c0_194 = arith.constant 0 : index
    %c0_195 = arith.constant 0 : index
    %170 = vector.load %arg8[%c6_193, %c0_194, %c0_195] : memref<9x9x9xf32, #tpu.memory_space<vmem>>, vector<1x9x9xf32>
    %171 = vector.shape_cast %170 : vector<1x9x9xf32> to vector<9x9xf32>
    %cst_196 = arith.constant dense<0.000000e+00> : vector<4x9xf32>
    %172 = tpu.matmul %169, %171, %cst_196 {dimension_numbers = #tpu.dot_dimension_numbers<[1], [0], [0], [1], [0, 0, 1, 1], [], []>} : vector<4x9xf32>, vector<9x9xf32>, vector<4x9xf32> -> vector<4x9xf32>
    %173 = arith.addf %166, %172 : vector<4x9xf32>
    %c7_197 = arith.constant 7 : index
    %c0_198 = arith.constant 0 : index
    %c0_199 = arith.constant 0 : index
    %174 = vector.load %arg4[%c7_197, %c0_198, %c0_199] : memref<9x4x4xf32, #tpu.memory_space<vmem>>, vector<1x4x4xf32>
    %175 = vector.shape_cast %174 : vector<1x4x4xf32> to vector<4x4xf32>
    %cst_200 = arith.constant dense<0.000000e+00> : vector<4x9xf32>
    %176 = tpu.matmul %175, %123, %cst_200 {dimension_numbers = #tpu.dot_dimension_numbers<[1], [0], [0], [1], [0, 0, 1, 1], [], []>} : vector<4x4xf32>, vector<4x9xf32>, vector<4x9xf32> -> vector<4x9xf32>
    %c7_201 = arith.constant 7 : index
    %c0_202 = arith.constant 0 : index
    %c0_203 = arith.constant 0 : index
    %177 = vector.load %arg8[%c7_201, %c0_202, %c0_203] : memref<9x9x9xf32, #tpu.memory_space<vmem>>, vector<1x9x9xf32>
    %178 = vector.shape_cast %177 : vector<1x9x9xf32> to vector<9x9xf32>
    %cst_204 = arith.constant dense<0.000000e+00> : vector<4x9xf32>
    %179 = tpu.matmul %176, %178, %cst_204 {dimension_numbers = #tpu.dot_dimension_numbers<[1], [0], [0], [1], [0, 0, 1, 1], [], []>} : vector<4x9xf32>, vector<9x9xf32>, vector<4x9xf32> -> vector<4x9xf32>
    %180 = arith.addf %173, %179 : vector<4x9xf32>
    %c8_205 = arith.constant 8 : index
    %c0_206 = arith.constant 0 : index
    %c0_207 = arith.constant 0 : index
    %181 = vector.load %arg4[%c8_205, %c0_206, %c0_207] : memref<9x4x4xf32, #tpu.memory_space<vmem>>, vector<1x4x4xf32>
    %182 = vector.shape_cast %181 : vector<1x4x4xf32> to vector<4x4xf32>
    %cst_208 = arith.constant dense<0.000000e+00> : vector<4x9xf32>
    %183 = tpu.matmul %182, %123, %cst_208 {dimension_numbers = #tpu.dot_dimension_numbers<[1], [0], [0], [1], [0, 0, 1, 1], [], []>} : vector<4x4xf32>, vector<4x9xf32>, vector<4x9xf32> -> vector<4x9xf32>
    %c8_209 = arith.constant 8 : index
    %c0_210 = arith.constant 0 : index
    %c0_211 = arith.constant 0 : index
    %184 = vector.load %arg8[%c8_209, %c0_210, %c0_211] : memref<9x9x9xf32, #tpu.memory_space<vmem>>, vector<1x9x9xf32>
    %185 = vector.shape_cast %184 : vector<1x9x9xf32> to vector<9x9xf32>
    %cst_212 = arith.constant dense<0.000000e+00> : vector<4x9xf32>
    %186 = tpu.matmul %183, %185, %cst_212 {dimension_numbers = #tpu.dot_dimension_numbers<[1], [0], [0], [1], [0, 0, 1, 1], [], []>} : vector<4x9xf32>, vector<9x9xf32>, vector<4x9xf32> -> vector<4x9xf32>
    %187 = arith.addf %180, %186 : vector<4x9xf32>
    %c0_213 = arith.constant 0 : index
    %c0_214 = arith.constant 0 : index
    %188 = vector.load %arg5[%c0_213, %c0_214] : memref<4x1xf32, #tpu.memory_space<vmem>>, vector<4x1xf32>
    %189 = vector.broadcast %188 : vector<4x1xf32> to vector<4x9xf32>
    %190 = arith.addf %187, %189 : vector<4x9xf32>
    %cst_215 = arith.constant 0.000000e+00 : f32
    %191 = vector.broadcast %cst_215 : f32 to vector<4x9xf32>
    %192 = arith.maximumf %190, %191 : vector<4x9xf32>
    %cst_216 = arith.constant 0.000000e+00 : f32
    %193 = vector.broadcast %cst_216 : f32 to vector<4x9xf32>
    %c0_217 = arith.constant 0 : index
    %c0_218 = arith.constant 0 : index
    %c0_219 = arith.constant 0 : index
    %194 = vector.load %arg6[%c0_217, %c0_218, %c0_219] : memref<9x4x4xf32, #tpu.memory_space<vmem>>, vector<1x4x4xf32>
    %195 = vector.shape_cast %194 : vector<1x4x4xf32> to vector<4x4xf32>
    %cst_220 = arith.constant dense<0.000000e+00> : vector<4x9xf32>
    %196 = tpu.matmul %195, %192, %cst_220 {dimension_numbers = #tpu.dot_dimension_numbers<[1], [0], [0], [1], [0, 0, 1, 1], [], []>} : vector<4x4xf32>, vector<4x9xf32>, vector<4x9xf32> -> vector<4x9xf32>
    %c0_221 = arith.constant 0 : index
    %c0_222 = arith.constant 0 : index
    %c0_223 = arith.constant 0 : index
    %197 = vector.load %arg8[%c0_221, %c0_222, %c0_223] : memref<9x9x9xf32, #tpu.memory_space<vmem>>, vector<1x9x9xf32>
    %198 = vector.shape_cast %197 : vector<1x9x9xf32> to vector<9x9xf32>
    %cst_224 = arith.constant dense<0.000000e+00> : vector<4x9xf32>
    %199 = tpu.matmul %196, %198, %cst_224 {dimension_numbers = #tpu.dot_dimension_numbers<[1], [0], [0], [1], [0, 0, 1, 1], [], []>} : vector<4x9xf32>, vector<9x9xf32>, vector<4x9xf32> -> vector<4x9xf32>
    %200 = arith.addf %193, %199 : vector<4x9xf32>
    %c1_225 = arith.constant 1 : index
    %c0_226 = arith.constant 0 : index
    %c0_227 = arith.constant 0 : index
    %201 = vector.load %arg6[%c1_225, %c0_226, %c0_227] : memref<9x4x4xf32, #tpu.memory_space<vmem>>, vector<1x4x4xf32>
    %202 = vector.shape_cast %201 : vector<1x4x4xf32> to vector<4x4xf32>
    %cst_228 = arith.constant dense<0.000000e+00> : vector<4x9xf32>
    %203 = tpu.matmul %202, %192, %cst_228 {dimension_numbers = #tpu.dot_dimension_numbers<[1], [0], [0], [1], [0, 0, 1, 1], [], []>} : vector<4x4xf32>, vector<4x9xf32>, vector<4x9xf32> -> vector<4x9xf32>
    %c1_229 = arith.constant 1 : index
    %c0_230 = arith.constant 0 : index
    %c0_231 = arith.constant 0 : index
    %204 = vector.load %arg8[%c1_229, %c0_230, %c0_231] : memref<9x9x9xf32, #tpu.memory_space<vmem>>, vector<1x9x9xf32>
    %205 = vector.shape_cast %204 : vector<1x9x9xf32> to vector<9x9xf32>
    %cst_232 = arith.constant dense<0.000000e+00> : vector<4x9xf32>
    %206 = tpu.matmul %203, %205, %cst_232 {dimension_numbers = #tpu.dot_dimension_numbers<[1], [0], [0], [1], [0, 0, 1, 1], [], []>} : vector<4x9xf32>, vector<9x9xf32>, vector<4x9xf32> -> vector<4x9xf32>
    %207 = arith.addf %200, %206 : vector<4x9xf32>
    %c2_233 = arith.constant 2 : index
    %c0_234 = arith.constant 0 : index
    %c0_235 = arith.constant 0 : index
    %208 = vector.load %arg6[%c2_233, %c0_234, %c0_235] : memref<9x4x4xf32, #tpu.memory_space<vmem>>, vector<1x4x4xf32>
    %209 = vector.shape_cast %208 : vector<1x4x4xf32> to vector<4x4xf32>
    %cst_236 = arith.constant dense<0.000000e+00> : vector<4x9xf32>
    %210 = tpu.matmul %209, %192, %cst_236 {dimension_numbers = #tpu.dot_dimension_numbers<[1], [0], [0], [1], [0, 0, 1, 1], [], []>} : vector<4x4xf32>, vector<4x9xf32>, vector<4x9xf32> -> vector<4x9xf32>
    %c2_237 = arith.constant 2 : index
    %c0_238 = arith.constant 0 : index
    %c0_239 = arith.constant 0 : index
    %211 = vector.load %arg8[%c2_237, %c0_238, %c0_239] : memref<9x9x9xf32, #tpu.memory_space<vmem>>, vector<1x9x9xf32>
    %212 = vector.shape_cast %211 : vector<1x9x9xf32> to vector<9x9xf32>
    %cst_240 = arith.constant dense<0.000000e+00> : vector<4x9xf32>
    %213 = tpu.matmul %210, %212, %cst_240 {dimension_numbers = #tpu.dot_dimension_numbers<[1], [0], [0], [1], [0, 0, 1, 1], [], []>} : vector<4x9xf32>, vector<9x9xf32>, vector<4x9xf32> -> vector<4x9xf32>
    %214 = arith.addf %207, %213 : vector<4x9xf32>
    %c3_241 = arith.constant 3 : index
    %c0_242 = arith.constant 0 : index
    %c0_243 = arith.constant 0 : index
    %215 = vector.load %arg6[%c3_241, %c0_242, %c0_243] : memref<9x4x4xf32, #tpu.memory_space<vmem>>, vector<1x4x4xf32>
    %216 = vector.shape_cast %215 : vector<1x4x4xf32> to vector<4x4xf32>
    %cst_244 = arith.constant dense<0.000000e+00> : vector<4x9xf32>
    %217 = tpu.matmul %216, %192, %cst_244 {dimension_numbers = #tpu.dot_dimension_numbers<[1], [0], [0], [1], [0, 0, 1, 1], [], []>} : vector<4x4xf32>, vector<4x9xf32>, vector<4x9xf32> -> vector<4x9xf32>
    %c3_245 = arith.constant 3 : index
    %c0_246 = arith.constant 0 : index
    %c0_247 = arith.constant 0 : index
    %218 = vector.load %arg8[%c3_245, %c0_246, %c0_247] : memref<9x9x9xf32, #tpu.memory_space<vmem>>, vector<1x9x9xf32>
    %219 = vector.shape_cast %218 : vector<1x9x9xf32> to vector<9x9xf32>
    %cst_248 = arith.constant dense<0.000000e+00> : vector<4x9xf32>
    %220 = tpu.matmul %217, %219, %cst_248 {dimension_numbers = #tpu.dot_dimension_numbers<[1], [0], [0], [1], [0, 0, 1, 1], [], []>} : vector<4x9xf32>, vector<9x9xf32>, vector<4x9xf32> -> vector<4x9xf32>
    %221 = arith.addf %214, %220 : vector<4x9xf32>
    %c4_249 = arith.constant 4 : index
    %c0_250 = arith.constant 0 : index
    %c0_251 = arith.constant 0 : index
    %222 = vector.load %arg6[%c4_249, %c0_250, %c0_251] : memref<9x4x4xf32, #tpu.memory_space<vmem>>, vector<1x4x4xf32>
    %223 = vector.shape_cast %222 : vector<1x4x4xf32> to vector<4x4xf32>
    %cst_252 = arith.constant dense<0.000000e+00> : vector<4x9xf32>
    %224 = tpu.matmul %223, %192, %cst_252 {dimension_numbers = #tpu.dot_dimension_numbers<[1], [0], [0], [1], [0, 0, 1, 1], [], []>} : vector<4x4xf32>, vector<4x9xf32>, vector<4x9xf32> -> vector<4x9xf32>
    %c4_253 = arith.constant 4 : index
    %c0_254 = arith.constant 0 : index
    %c0_255 = arith.constant 0 : index
    %225 = vector.load %arg8[%c4_253, %c0_254, %c0_255] : memref<9x9x9xf32, #tpu.memory_space<vmem>>, vector<1x9x9xf32>
    %226 = vector.shape_cast %225 : vector<1x9x9xf32> to vector<9x9xf32>
    %cst_256 = arith.constant dense<0.000000e+00> : vector<4x9xf32>
    %227 = tpu.matmul %224, %226, %cst_256 {dimension_numbers = #tpu.dot_dimension_numbers<[1], [0], [0], [1], [0, 0, 1, 1], [], []>} : vector<4x9xf32>, vector<9x9xf32>, vector<4x9xf32> -> vector<4x9xf32>
    %228 = arith.addf %221, %227 : vector<4x9xf32>
    %c5_257 = arith.constant 5 : index
    %c0_258 = arith.constant 0 : index
    %c0_259 = arith.constant 0 : index
    %229 = vector.load %arg6[%c5_257, %c0_258, %c0_259] : memref<9x4x4xf32, #tpu.memory_space<vmem>>, vector<1x4x4xf32>
    %230 = vector.shape_cast %229 : vector<1x4x4xf32> to vector<4x4xf32>
    %cst_260 = arith.constant dense<0.000000e+00> : vector<4x9xf32>
    %231 = tpu.matmul %230, %192, %cst_260 {dimension_numbers = #tpu.dot_dimension_numbers<[1], [0], [0], [1], [0, 0, 1, 1], [], []>} : vector<4x4xf32>, vector<4x9xf32>, vector<4x9xf32> -> vector<4x9xf32>
    %c5_261 = arith.constant 5 : index
    %c0_262 = arith.constant 0 : index
    %c0_263 = arith.constant 0 : index
    %232 = vector.load %arg8[%c5_261, %c0_262, %c0_263] : memref<9x9x9xf32, #tpu.memory_space<vmem>>, vector<1x9x9xf32>
    %233 = vector.shape_cast %232 : vector<1x9x9xf32> to vector<9x9xf32>
    %cst_264 = arith.constant dense<0.000000e+00> : vector<4x9xf32>
    %234 = tpu.matmul %231, %233, %cst_264 {dimension_numbers = #tpu.dot_dimension_numbers<[1], [0], [0], [1], [0, 0, 1, 1], [], []>} : vector<4x9xf32>, vector<9x9xf32>, vector<4x9xf32> -> vector<4x9xf32>
    %235 = arith.addf %228, %234 : vector<4x9xf32>
    %c6_265 = arith.constant 6 : index
    %c0_266 = arith.constant 0 : index
    %c0_267 = arith.constant 0 : index
    %236 = vector.load %arg6[%c6_265, %c0_266, %c0_267] : memref<9x4x4xf32, #tpu.memory_space<vmem>>, vector<1x4x4xf32>
    %237 = vector.shape_cast %236 : vector<1x4x4xf32> to vector<4x4xf32>
    %cst_268 = arith.constant dense<0.000000e+00> : vector<4x9xf32>
    %238 = tpu.matmul %237, %192, %cst_268 {dimension_numbers = #tpu.dot_dimension_numbers<[1], [0], [0], [1], [0, 0, 1, 1], [], []>} : vector<4x4xf32>, vector<4x9xf32>, vector<4x9xf32> -> vector<4x9xf32>
    %c6_269 = arith.constant 6 : index
    %c0_270 = arith.constant 0 : index
    %c0_271 = arith.constant 0 : index
    %239 = vector.load %arg8[%c6_269, %c0_270, %c0_271] : memref<9x9x9xf32, #tpu.memory_space<vmem>>, vector<1x9x9xf32>
    %240 = vector.shape_cast %239 : vector<1x9x9xf32> to vector<9x9xf32>
    %cst_272 = arith.constant dense<0.000000e+00> : vector<4x9xf32>
    %241 = tpu.matmul %238, %240, %cst_272 {dimension_numbers = #tpu.dot_dimension_numbers<[1], [0], [0], [1], [0, 0, 1, 1], [], []>} : vector<4x9xf32>, vector<9x9xf32>, vector<4x9xf32> -> vector<4x9xf32>
    %242 = arith.addf %235, %241 : vector<4x9xf32>
    %c7_273 = arith.constant 7 : index
    %c0_274 = arith.constant 0 : index
    %c0_275 = arith.constant 0 : index
    %243 = vector.load %arg6[%c7_273, %c0_274, %c0_275] : memref<9x4x4xf32, #tpu.memory_space<vmem>>, vector<1x4x4xf32>
    %244 = vector.shape_cast %243 : vector<1x4x4xf32> to vector<4x4xf32>
    %cst_276 = arith.constant dense<0.000000e+00> : vector<4x9xf32>
    %245 = tpu.matmul %244, %192, %cst_276 {dimension_numbers = #tpu.dot_dimension_numbers<[1], [0], [0], [1], [0, 0, 1, 1], [], []>} : vector<4x4xf32>, vector<4x9xf32>, vector<4x9xf32> -> vector<4x9xf32>
    %c7_277 = arith.constant 7 : index
    %c0_278 = arith.constant 0 : index
    %c0_279 = arith.constant 0 : index
    %246 = vector.load %arg8[%c7_277, %c0_278, %c0_279] : memref<9x9x9xf32, #tpu.memory_space<vmem>>, vector<1x9x9xf32>
    %247 = vector.shape_cast %246 : vector<1x9x9xf32> to vector<9x9xf32>
    %cst_280 = arith.constant dense<0.000000e+00> : vector<4x9xf32>
    %248 = tpu.matmul %245, %247, %cst_280 {dimension_numbers = #tpu.dot_dimension_numbers<[1], [0], [0], [1], [0, 0, 1, 1], [], []>} : vector<4x9xf32>, vector<9x9xf32>, vector<4x9xf32> -> vector<4x9xf32>
    %249 = arith.addf %242, %248 : vector<4x9xf32>
    %c8_281 = arith.constant 8 : index
    %c0_282 = arith.constant 0 : index
    %c0_283 = arith.constant 0 : index
    %250 = vector.load %arg6[%c8_281, %c0_282, %c0_283] : memref<9x4x4xf32, #tpu.memory_space<vmem>>, vector<1x4x4xf32>
    %251 = vector.shape_cast %250 : vector<1x4x4xf32> to vector<4x4xf32>
    %cst_284 = arith.constant dense<0.000000e+00> : vector<4x9xf32>
    %252 = tpu.matmul %251, %192, %cst_284 {dimension_numbers = #tpu.dot_dimension_numbers<[1], [0], [0], [1], [0, 0, 1, 1], [], []>} : vector<4x4xf32>, vector<4x9xf32>, vector<4x9xf32> -> vector<4x9xf32>
    %c8_285 = arith.constant 8 : index
    %c0_286 = arith.constant 0 : index
    %c0_287 = arith.constant 0 : index
    %253 = vector.load %arg8[%c8_285, %c0_286, %c0_287] : memref<9x9x9xf32, #tpu.memory_space<vmem>>, vector<1x9x9xf32>
    %254 = vector.shape_cast %253 : vector<1x9x9xf32> to vector<9x9xf32>
    %cst_288 = arith.constant dense<0.000000e+00> : vector<4x9xf32>
    %255 = tpu.matmul %252, %254, %cst_288 {dimension_numbers = #tpu.dot_dimension_numbers<[1], [0], [0], [1], [0, 0, 1, 1], [], []>} : vector<4x9xf32>, vector<9x9xf32>, vector<4x9xf32> -> vector<4x9xf32>
    %256 = arith.addf %249, %255 : vector<4x9xf32>
    %c0_289 = arith.constant 0 : index
    %c0_290 = arith.constant 0 : index
    %257 = vector.load %arg7[%c0_289, %c0_290] : memref<4x1xf32, #tpu.memory_space<vmem>>, vector<4x1xf32>
    %258 = vector.broadcast %257 : vector<4x1xf32> to vector<4x9xf32>
    %259 = arith.addf %256, %258 : vector<4x9xf32>
    %c0_291 = arith.constant 0 : index
    %c0_292 = arith.constant 0 : index
    %c0_293 = arith.constant 0 : index
    %260 = vector.load %arg9[%c0_291, %c0_292, %c0_293] : memref<1x4x9xf32, #tpu.memory_space<vmem>>, vector<1x4x9xf32>
    %261 = vector.shape_cast %260 : vector<1x4x9xf32> to vector<4x9xf32>
    %262 = vector.shape_cast %259 : vector<4x9xf32> to vector<1x4x9xf32>
    tpu.vector_store %arg9[%c0_291, %c0_292, %c0_293], %262 {strides = array<i32>} : memref<1x4x9xf32, #tpu.memory_space<vmem>>, vector<1x4x9xf32>,
    return
  }
  func.func @transform_0(%arg0: i32) -> (i32, i32, i32, i32) {
    %c0_i32 = arith.constant 0 : i32
    %c0_i32_0 = arith.constant 0 : i32
    %c0_i32_1 = arith.constant 0 : i32
    %c0_i32_2 = arith.constant 0 : i32
    return %arg0, %c0_i32, %c0_i32_0, %c0_i32_1 : i32, i32, i32, i32
  }
  func.func @transform_1(%arg0: i32) -> (i32, i32, i32) {
    %c0_i32 = arith.constant 0 : i32
    %c0_i32_0 = arith.constant 0 : i32
    %c0_i32_1 = arith.constant 0 : i32
    %c0_i32_2 = arith.constant 0 : i32
    return %c0_i32, %c0_i32_0, %c0_i32_1 : i32, i32, i32
  }
  func.func @transform_2(%arg0: i32) -> (i32, i32) {
    %c0_i32 = arith.constant 0 : i32
    %c0_i32_0 = arith.constant 0 : i32
    %c0_i32_1 = arith.constant 0 : i32
    return %c0_i32, %c0_i32_0 : i32, i32
  }
  func.func @transform_3(%arg0: i32) -> (i32, i32, i32) {
    %c0_i32 = arith.constant 0 : i32
    %c0_i32_0 = arith.constant 0 : i32
    %c0_i32_1 = arith.constant 0 : i32
    %c0_i32_2 = arith.constant 0 : i32
    return %c0_i32, %c0_i32_0, %c0_i32_1 : i32, i32, i32
  }
  func.func @transform_4(%arg0: i32) -> (i32, i32) {
    %c0_i32 = arith.constant 0 : i32
    %c0_i32_0 = arith.constant 0 : i32
    %c0_i32_1 = arith.constant 0 : i32
    return %c0_i32, %c0_i32_0 : i32, i32
  }
  func.func @transform_5(%arg0: i32) -> (i32, i32, i32) {
    %c0_i32 = arith.constant 0 : i32
    %c0_i32_0 = arith.constant 0 : i32
    %c0_i32_1 = arith.constant 0 : i32
    %c0_i32_2 = arith.constant 0 : i32
    return %c0_i32, %c0_i32_0, %c0_i32_1 : i32, i32, i32
  }
  func.func @transform_6(%arg0: i32) -> (i32, i32) {
    %c0_i32 = arith.constant 0 : i32
    %c0_i32_0 = arith.constant 0 : i32
    %c0_i32_1 = arith.constant 0 : i32
    return %c0_i32, %c0_i32_0 : i32, i32
  }
  func.func @transform_7(%arg0: i32) -> (i32, i32, i32) {
    %c0_i32 = arith.constant 0 : i32
    %c0_i32_0 = arith.constant 0 : i32
    %c0_i32_1 = arith.constant 0 : i32
    %c0_i32_2 = arith.constant 0 : i32
    return %c0_i32, %c0_i32_0, %c0_i32_1 : i32, i32, i32
  }
  func.func @transform_8(%arg0: i32) -> (i32, i32, i32) {
    %c0_i32 = arith.constant 0 : i32
    %c0_i32_0 = arith.constant 0 : i32
    %c0_i32_1 = arith.constant 0 : i32
    return %arg0, %c0_i32, %c0_i32_0 : i32, i32, i32
  }
}

module attributes {stable_mosaic.version = 11 : i64} {
  func.func @_tail_kernel(%arg0: i32, %arg1: i32, %arg2: memref<1x4x9xf32, #tpu.memory_space<vmem>>, %arg3: memref<9x512xf32, #tpu.memory_space<vmem>>, %arg4: memref<1x4x512xf32, #tpu.memory_space<vmem>>, %arg5: memref<1x16x512xf32, #tpu.memory_space<vmem>>, %arg6: memref<16x4xf32, #tpu.memory_space<vmem>>, %arg7: memref<16x1xf32, #tpu.memory_space<vmem>>, %arg8: memref<1x16x512xf32, #tpu.memory_space<vmem>>) attributes {dimension_semantics = [#tpu.dimension_semantics<parallel>, #tpu.dimension_semantics<parallel>], iteration_bounds = array<i64: 2, 2>, scalar_prefetch = 0 : i64, scratch_operands = 0 : i64, tpu.core_type = #tpu.core_type<tc>, window_params = [{transform_indices = @transform_0, window_bounds = array<i64: 1, 4, 9>}, {transform_indices = @transform_1, window_bounds = array<i64: 9, 512>}, {transform_indices = @transform_2, window_bounds = array<i64: 1, 4, 512>}, {transform_indices = @transform_3, window_bounds = array<i64: 1, 16, 512>}, {pipeline_mode = #tpu.pipeline_mode<synchronous>, transform_indices = @transform_4, window_bounds = array<i64: 16, 4>}, {pipeline_mode = #tpu.pipeline_mode<synchronous>, transform_indices = @transform_5, window_bounds = array<i64: 16, 1>}, {transform_indices = @transform_6, window_bounds = array<i64: 1, 16, 512>}]} {
    %c0 = arith.constant 0 : index
    %c0_0 = arith.constant 0 : index
    %c0_1 = arith.constant 0 : index
    %0 = vector.load %arg2[%c0, %c0_0, %c0_1] : memref<1x4x9xf32, #tpu.memory_space<vmem>>, vector<1x4x9xf32>
    %1 = vector.shape_cast %0 : vector<1x4x9xf32> to vector<4x9xf32>
    %c0_2 = arith.constant 0 : index
    %c0_3 = arith.constant 0 : index
    %2 = vector.load %arg3[%c0_2, %c0_3] : memref<9x512xf32, #tpu.memory_space<vmem>>, vector<9x512xf32>
    %cst = arith.constant dense<0.000000e+00> : vector<4x512xf32>
    %3 = tpu.matmul %1, %2, %cst {dimension_numbers = #tpu.dot_dimension_numbers<[1], [0], [0], [1], [0, 0, 1, 1], [], []>} : vector<4x9xf32>, vector<9x512xf32>, vector<4x512xf32> -> vector<4x512xf32>
    %c0_4 = arith.constant 0 : index
    %c0_5 = arith.constant 0 : index
    %c0_6 = arith.constant 0 : index
    %4 = vector.load %arg4[%c0_4, %c0_5, %c0_6] : memref<1x4x512xf32, #tpu.memory_space<vmem>>, vector<1x4x512xf32>
    %5 = vector.shape_cast %4 : vector<1x4x512xf32> to vector<4x512xf32>
    %6 = arith.addf %3, %5 : vector<4x512xf32>
    %c0_7 = arith.constant 0 : index
    %c0_8 = arith.constant 0 : index
    %7 = vector.load %arg6[%c0_7, %c0_8] : memref<16x4xf32, #tpu.memory_space<vmem>>, vector<16x4xf32>
    %cst_9 = arith.constant dense<0.000000e+00> : vector<16x512xf32>
    %8 = tpu.matmul %7, %6, %cst_9 {dimension_numbers = #tpu.dot_dimension_numbers<[1], [0], [0], [1], [0, 0, 1, 1], [], []>} : vector<16x4xf32>, vector<4x512xf32>, vector<16x512xf32> -> vector<16x512xf32>
    %c0_10 = arith.constant 0 : index
    %c0_11 = arith.constant 0 : index
    %9 = vector.load %arg7[%c0_10, %c0_11] : memref<16x1xf32, #tpu.memory_space<vmem>>, vector<16x1xf32>
    %10 = vector.broadcast %9 : vector<16x1xf32> to vector<16x512xf32>
    %11 = arith.addf %8, %10 : vector<16x512xf32>
    %cst_12 = arith.constant 0.000000e+00 : f32
    %12 = vector.broadcast %cst_12 : f32 to vector<16x512xf32>
    %13 = arith.subf %12, %11 : vector<16x512xf32>
    %14 = math.exp %13 : vector<16x512xf32>
    %cst_13 = arith.constant 1.000000e+00 : f32
    %15 = vector.broadcast %cst_13 : f32 to vector<16x512xf32>
    %16 = arith.addf %15, %14 : vector<16x512xf32>
    %17 = tpu.reciprocal %16 {approx = true} : vector<16x512xf32> -> vector<16x512xf32>
    %c0_14 = arith.constant 0 : index
    %c0_15 = arith.constant 0 : index
    %c0_16 = arith.constant 0 : index
    %18 = vector.load %arg5[%c0_14, %c0_15, %c0_16] : memref<1x16x512xf32, #tpu.memory_space<vmem>>, vector<1x16x512xf32>
    %19 = vector.shape_cast %18 : vector<1x16x512xf32> to vector<16x512xf32>
    %20 = arith.mulf %19, %17 : vector<16x512xf32>
    %c0_17 = arith.constant 0 : index
    %c0_18 = arith.constant 0 : index
    %c0_19 = arith.constant 0 : index
    %21 = vector.load %arg8[%c0_17, %c0_18, %c0_19] : memref<1x16x512xf32, #tpu.memory_space<vmem>>, vector<1x16x512xf32>
    %22 = vector.shape_cast %21 : vector<1x16x512xf32> to vector<16x512xf32>
    %23 = vector.shape_cast %20 : vector<16x512xf32> to vector<1x16x512xf32>
    tpu.vector_store %arg8[%c0_17, %c0_18, %c0_19], %23 {strides = array<i32>} : memref<1x16x512xf32, #tpu.memory_space<vmem>>, vector<1x16x512xf32>,
    return
  }
  func.func @transform_0(%arg0: i32, %arg1: i32) -> (i32, i32, i32) {
    %c0_i32 = arith.constant 0 : i32
    %c0_i32_0 = arith.constant 0 : i32
    %c0_i32_1 = arith.constant 0 : i32
    return %arg0, %c0_i32, %c0_i32_0 : i32, i32, i32
  }
  func.func @transform_1(%arg0: i32, %arg1: i32) -> (i32, i32) {
    %c0_i32 = arith.constant 0 : i32
    %c0_i32_0 = arith.constant 0 : i32
    return %c0_i32, %arg1 : i32, i32
  }
  func.func @transform_2(%arg0: i32, %arg1: i32) -> (i32, i32, i32) {
    %c0_i32 = arith.constant 0 : i32
    %c0_i32_0 = arith.constant 0 : i32
    return %arg0, %c0_i32, %arg1 : i32, i32, i32
  }
  func.func @transform_3(%arg0: i32, %arg1: i32) -> (i32, i32, i32) {
    %c0_i32 = arith.constant 0 : i32
    %c0_i32_0 = arith.constant 0 : i32
    return %arg0, %c0_i32, %arg1 : i32, i32, i32
  }
  func.func @transform_4(%arg0: i32, %arg1: i32) -> (i32, i32) {
    %c0_i32 = arith.constant 0 : i32
    %c0_i32_0 = arith.constant 0 : i32
    %c0_i32_1 = arith.constant 0 : i32
    return %c0_i32, %c0_i32_0 : i32, i32
  }
  func.func @transform_5(%arg0: i32, %arg1: i32) -> (i32, i32) {
    %c0_i32 = arith.constant 0 : i32
    %c0_i32_0 = arith.constant 0 : i32
    %c0_i32_1 = arith.constant 0 : i32
    return %c0_i32, %c0_i32_0 : i32, i32
  }
  func.func @transform_6(%arg0: i32, %arg1: i32) -> (i32, i32, i32) {
    %c0_i32 = arith.constant 0 : i32
    %c0_i32_0 = arith.constant 0 : i32
    return %arg0, %c0_i32, %arg1 : i32, i32, i32
  }
}

</mosaic_0001>

<bundles_post_ra>
// kernel: esa_forward.4
= control target key start
LH: loop header
LB: loop body
LE: loop exit
PB: predicated region body
PF: predicated region fallthrough
CT: control target
= control target key end

     0   :  { %s1010_s21 = smov 0   ;;  %s1012_s22 = smov 0   ;;  %s1122_s0 = inlined_call_operand.vmem [shape: f32[2,16,1024], index: 0, kind: input, shape index: {}]   ;;  %s1123_s1 = inlined_call_operand.vmem [shape: f32[4,16], index: 1, kind: input, shape index: {}]   ;;  %s1124_s2 = inlined_call_operand.vmem [shape: f32[4,1], index: 2, kind: input, shape index: {}]   ;;  %s1125_s3 = inlined_call_operand.vmem [shape: f32[4,4], index: 3, kind: input, shape index: {}]   ;;  %s1126_s4 = inlined_call_operand.vmem [shape: f32[4,1], index: 4, kind: input, shape index: {}]   ;;  %s1127_s5 = inlined_call_operand.vmem [shape: f32[2,4,1024], index: 5, kind: output, shape index: {0}]   ;;  %s1128_s6 = inlined_call_operand.vmem [shape: f32[2,4,1024], index: 6, kind: output, shape index: {1}]  }
   0x1   :  { %s1014_s23 = smov 0   ;;  %s1016_s24 = smov 0  }
   0x2   :  { %s1018_s25 = smov 0   ;;  %s1020_s26 = smov 0  }
   0x3   :  { %s1022_s27 = smov 0  }
   0x4 LB: > { %s26_s28 = sadd.s32 1, %s963_s25  ;;  %s29_s29 = sadd.s32 1, %s967_s26  ;;  %s971_s27 = sphi %s1022_s27, %s17_s27   ;;  %s967_s26 = sphi %s1020_s26, %s1134_s26   ;;  %s963_s25 = sphi %s1018_s25, %s1133_s25   ;;  %s959_s24 = sphi %s1016_s24, %s1132_s24   ;;  %s955_s23 = sphi %s1014_s23, %s1131_s23   ;;  %s951_s22 = sphi %s1012_s22, %s1130_s22   ;;  %s947_s21 = sphi %s1010_s21, %s1129_s21  }
   0x5   : > { %p27_p0 = scmp.ge.s32.totalorder %s26_s28, 2  ;;  %p45_p1 = scmp.ne.s32.totalorder %s951_s22, %s947_s21 }
   0x6   : > { %p46_p2 = scmp.eq.s32.totalorder %s971_s27, 0  ;;  %s38_s9 = sadd.s32 1, %s951_s22 }
   0x7   : > { %s1136_s28 = smov (%p27_p0, %s26_s28), 0  ;;  %s1138_s29 = smov (!%p27_p0, %s29_s29), %s967_s26 }
   0x8   : > { %p47_p3 = por %p46_p2, %p45_p1  ;;  %p31_p4 = scmp.ge.s32.totalorder %s1138_s29, 2 }
   0x9   : > { %s34_s30 = ssub.s32 %s963_s25, %s1136_s28  ;;  %p827_p6 = scmp.ge.s32.totalorder %s971_s27, 4 }
   0xa   : > { %s1140_s29 = smov (%p31_p4, %s1138_s29), 0 }
   0xb   : > { %s33_s7 = ssub.s32 %s967_s26, %s1140_s29  ;;  %223 = sbr.rel (%p827_p6) target bundleno = 29 (0x1d), region = 32 }
   0xc   : > { %s35_s8 = sor.u32 %s34_s30, %s33_s7 }
   0xd   : > { %p36_p5 = scmp.eq.s32.totalorder %s35_s8, 0 }
   0xf   : > { %s1061_s10 = scalar_select %p36_p5, %s951_s22, %s38_s9  }
  0x12   : > { %226 = sbr.rel (!%p47_p3) target bundleno = 29 (0x1d), region = 36  ;;  %s228_s11 = sand.u32 (%p47_p3), 1, %s951_s22  }
  0x13   : > { %s829_s12 = sshll.u32 (%p47_p3), %s963_s25, 2  ;;  %s828_s13 = sshll.u32 (%p47_p3), %s228_s11, 6 }
  0x14   : > { %s830_s14 = sshll.u32 (%p47_p3), %s967_s26, 4  ;;  %s230_s20 = scalar_lea.vmem (%p47_p3), [#allocation2], %s828_s13 }
  0x15   : > { %s233_s15 = sadd.s32 (%p47_p3), %s830_s14, %s829_s12 }
  0x16   : > { %s831_s16 = sshll.u32 (%p47_p3), %s233_s15, 3 }
  0x17   : > { %s235_s19 = scalar_lea.vmem (%p47_p3), %s1122_s0, %s831_s16 }
  0x18   : > { %v248_v0 = vld [vmem:[%s235_s19] sm:$0xff] (%p47_p3)  ;;  %v250_v1 = vld [vmem:[%s235_s19 + $0x8] sm:$0xff] (%p47_p3)  ;;  %v252_v2 = vld [vmem:[%s235_s19 + $0x10] sm:$0xff] (%p47_p3) }
  0x19   : > { %249 = vst [vmem:[%s230_s20] sm:$0xff] %v248_v0  ;;  %251 = vst [vmem:[%s230_s20 + $0x8] sm:$0xff] %v250_v1  ;;  %v254_v3 = vld [vmem:[%s235_s19 + $0x18] sm:$0xff]  ;;  %v256_v4 = vld [vmem:[%s235_s19 + $0x40] sm:$0xff] }
  0x1a   : > { %253 = vst [vmem:[%s230_s20 + $0x10] sm:$0xff] %v252_v2  ;;  %v258_v5 = vld [vmem:[%s235_s19 + $0x48] sm:$0xff]  ;;  %255 = vst [vmem:[%s230_s20 + $0x18] sm:$0xff] %v254_v3  ;;  %v260_v6 = vld [vmem:[%s235_s19 + $0x50] sm:$0xff] }
  0x1b   : > { %257 = vst [vmem:[%s230_s20 + $0x20] sm:$0xff] %v256_v4  ;;  %259 = vst [vmem:[%s230_s20 + $0x28] sm:$0xff] %v258_v5  ;;  %v262_v7 = vld [vmem:[%s235_s19 + $0x58] sm:$0xff] }
  0x1c   : > { %261 = vst [vmem:[%s230_s20 + $0x30] sm:$0xff] %v260_v6  ;;  %263 = vst [vmem:[%s230_s20 + $0x38] sm:$0xff] %v262_v7 }
  0x1d PF: > { %p832_p7 = scmp.ge.s32.totalorder %s971_s27, 1  ;;  %p268_p8 = scmp.lt.s32.totalorder %s971_s27, 5 }
  0x1f   : > { %p269_p9 = pnand %p832_p7, %p268_p8 }
  0x20   : > { %s275_s30 = sand.u32 (!%p269_p9), 1, %s947_s21   ;;  %v973_v8 = vmov (!%p269_p9), 0.0   ;;  %v347_v9 = vld [vmem:[%s1124_s2] sm:$0xf] (!%p269_p9)  ;;  %v974_v10 = vmov (!%p269_p9), 0   ;;  %vm353_vm0 = vcmask (!%p269_p9), 130048  }
  0x21   : > { %272 = sbr.rel (%p269_p9) target bundleno = 479 (0x1df), region = 59  ;;  %s833_s7 = sshll.u32 (!%p269_p9), %s275_s30, 6  ;;  %421 = vmatprep.mubr.f32.mxu0 (!%p269_p9), %v973_v8  ;;  %492 = vmatprep.mubr.f32.mxu1 (!%p269_p9), %v973_v8  ;;  %v500_v22 = vld [vmem:[%s1126_s4] sm:$0xf] (!%p269_p9)  ;;  %vm510_vm1 = vcmask (!%p269_p9), 1043456   ;;  %vm506_vm2 = vcmask (!%p269_p9), 31744  }
  0x22   : > { %916 = vset.pattern.permute.xlu0 (!%p269_p9), %v974_v10  ;;  %s277_s11 = scalar_lea.vmem (!%p269_p9), [#allocation2], %s833_s7  ;;  %v338_v24 = vld [vmem:[%s1123_s1] sm:$0xf] (!%p269_p9)  ;;  %s834_s15 = sshll.u32 (!%p269_p9), %s955_s23, 2 }
  0x23   : > { %v340_v11 = vld [vmem:[%s277_s11 + $0x8] sm:$0xff] (!%p269_p9)  ;;  %v342_v13 = vld [vmem:[%s277_s11 + $0x18] sm:$0xff] (!%p269_p9)  ;;  %350 = vperm.xlu0 (!%p269_p9), %916, %v347_v9   ;;  %v339_v16 = vld [vmem:[%s277_s11] sm:$0xff] (!%p269_p9)  ;;  %p319_p10 = scmp.lt.s32.totalorder (!%p269_p9), %s959_s24, 1  ;;  %p321_p11 = scmp.lt.s32.totalorder (!%p269_p9), %s834_s15, 7 }
  0x24   : > { %v344_v12 = vld [vmem:[%s277_s11 + $0x28] sm:$0xff] (!%p269_p9)  ;;  %v346_v15 = vld [vmem:[%s277_s11 + $0x38] sm:$0xff] (!%p269_p9)  ;;  %v343_v17 = vld [vmem:[%s277_s11 + $0x20] sm:$0xff] (!%p269_p9) }
  0x25   : > { %v850_v14 = vpack.c.bf16 (!%p269_p9), %v344_v12, %v340_v11  ;;  %v854_v18 = vpack.c.bf16 (!%p269_p9), %v346_v15, %v342_v13  ;;  %v852_v19 = vpack.c.bf16 (!%p269_p9), %v343_v17, %v339_v16  ;;  %v341_v20 = vld [vmem:[%s277_s11 + $0x10] sm:$0xff] (!%p269_p9)  ;;  %v499_v34 = vld [vmem:[%s1125_s3] sm:$0xf] (!%p269_p9) }
  0x26   : > { %v345_v21 = vld [vmem:[%s277_s11 + $0x30] sm:$0xff] (!%p269_p9) }
  0x27   : > { %851 = vmatprep.subr.bf16.mxu0 (!%p269_p9), %v850_v14  ;;  %v856_v23 = vpack.c.bf16 (!%p269_p9), %v345_v21, %v341_v20  ;;  %855 = vmatprep.subr.bf16.mxu1 (!%p269_p9), %v854_v18 }
  0x28   : > { %853 = vmatpush1.bf16.msra.mxu0 %v852_v19  ;;  %503 = vperm.xlu0 %916, %v500_v22   ;;  %s1142_s24 = smov (!%p319_p10, %s959_s24), 1  ;;  %s1144_s15 = smov (!%p321_p11, %s834_s15), 7 }
  0x29   : > { %857 = vmatpush1.bf16.msra.mxu1 %v856_v23  ;;  %s835_s16 = sshll.u32 %s1142_s24, 3 }
  0x2a   : > { %s1085_s17 = sadd.s32 %s835_s16, %s1144_s15 }
  0x2b   : > { %840 = vmatmul.mubr.msk.f32.vlgmr.msra.gmra.mrb[0].mxu0 %vm353_vm0, %v338_v24  ;;  %s836_s18 = sshll.u32 %s1085_s17, 2 }
  0x2c   : > { %841 = vmatmul.mubr.msk.f32.vlgmr.msra.gmra.mrb[0].mxu1 %vm353_vm0, %v338_v24  ;;  %587 = vmatprep.mubr.f32.mxu0 %v973_v8  ;;  %s326_s20 = scalar_lea.vmem %s1127_s5, %s836_s18  ;;  %s336_s9 = scalar_lea.vmem %s1128_s6, %s836_s18 }
  0x2d   : > { %658 = vmatprep.mubr.f32.mxu1 %v973_v8 }
  0xa2   : > { %v351_v25 = vpop.permute.xlu0 %350 }
  0xa7   : > { %v504_v37 = vpop.permute.xlu0 %503 }
  0xfe   : > { %v423_v26 = vpop.f32.mrb[0].mxu0 }
  0xff   : > { %v424_v27 = vadd.f32 %v423_v26, %v351_v25  ;;  %v494_v28 = vpop.f32.mrb[0].mxu1  ;;  %v425_v29 = vpop.f32.mrb[1].mxu0 }
 0x100   : > { %v495_v30 = vadd.f32 %v494_v28, %v351_v25  ;;  %v426_v31 = vadd.f32 %v425_v29, %v351_v25  ;;  %v496_v32 = vpop.f32.mrb[1].mxu1 }
 0x101   : > { %v497_v33 = vadd.f32 %v496_v32, %v351_v25 }
 0x102   : > { %v665_v35 = vcombine.low %v424_v27, %v426_v31  ;;  %842 = vmatprep.subr.msk.mxu0 %vm510_vm1, %v426_v31 }
 0x103   : > { %v666_v36 = vcombine.low %v495_v30, %v497_v33  ;;  %845 = vmatprep.subr.msk.mxu1 %vm510_vm1, %v497_v33  ;;  %843 = vmatpush1.msk.msra.mxu0 %vm510_vm1, %v424_v27 }
 0x104   : > { %669 = vst [vmem:[%s326_s20] sm:$0xff] %v665_v35  ;;  %846 = vmatpush1.msk.msra.mxu1 %vm510_vm1, %v495_v30  ;;  %844 = vmatmul.mubr.msk.f32.vlgmr.msra.gmra.mrb[2].mxu0 %vm506_vm2, %v499_v34 }
 0x105   : > { %670 = vst [vmem:[%s326_s20 + $0x8] sm:$0xff] %v666_v36  ;;  %847 = vmatmul.mubr.msk.f32.vlgmr.msra.gmra.mrb[2].mxu1 %vm506_vm2, %v499_v34 }
 0x1d7   : > { %v589_v38 = vpop.f32.mrb[2].mxu0 }
 0x1d8   : > { %v590_v39 = vadd.f32 %v589_v38, %v504_v37  ;;  %v660_v40 = vpop.f32.mrb[2].mxu1  ;;  %v591_v41 = vpop.f32.mrb[3].mxu0 }
 0x1d9   : > { %v661_v42 = vadd.f32 %v660_v40, %v504_v37  ;;  %v592_v43 = vadd.f32 %v591_v41, %v504_v37  ;;  %v662_v44 = vpop.f32.mrb[3].mxu1 }
 0x1da   : > { %v663_v45 = vadd.f32 %v662_v44, %v504_v37 }
 0x1db   : > { %v675_v46 = vcombine.low %v590_v39, %v592_v43 }
 0x1dc   : > { %v676_v47 = vcombine.low %v661_v42, %v663_v45 }
 0x1dd   : > { %679 = vst [vmem:[%s336_s9] sm:$0xff] %v675_v46 }
 0x1de   : > { %680 = vst [vmem:[%s336_s9 + $0x8] sm:$0xff] %v676_v47 }
 0x1df PF: > { %s17_s27 = sadd.s32 1, %s971_s27   ;;  %s1129_s21 = smov %s951_s22 }
 0x1e0   : > { %p14_p12 = scmp.ge.s32.totalorder %s17_s27, 6   ;;  %s1130_s22 = smov %s1061_s10 }
 0x1e1   : > { %s1131_s23 = smov %s963_s25  ;;  %s1132_s24 = smov %s967_s26 }
 0x1e2   : > { %s1133_s25 = smov %s1136_s28  ;;  %s1134_s26 = smov %s1140_s29 }
 0x1e3   :  { %16 = sbr.rel (!%p14_p12) target bundleno = 4 (0x4), region = 110 }

// kernel: esa_forward.5
= control target key start
LH: loop header
LB: loop body
LE: loop exit
PB: predicated region body
PF: predicated region fallthrough
CT: control target
= control target key end

     0   :  { %s499_s12 = smov 0   ;;  %s501_s13 = smov 0   ;;  %s545_s0 = inlined_call_operand.vmem [shape: f32[2,36,225], index: 0, kind: input, shape index: {}]   ;;  %s546_s1 = inlined_call_operand.vmem [shape: f32[4,36], index: 1, kind: input, shape index: {}]   ;;  %s547_s2 = inlined_call_operand.vmem [shape: f32[4,1], index: 2, kind: input, shape index: {}]   ;;  %s548_s3 = inlined_call_operand.vmem [shape: f32[2,4,225], index: 3, kind: output, shape index: {}]  }
   0x1   :  { %s503_s14 = smov 0  }
   0x2 LB: > { %s25_s15 = sadd.s32 1, %s471_s13  ;;  %p407_p0 = scmp.ge.s32.totalorder %s475_s14, 1  ;;  %s475_s14 = sphi %s503_s14, %s13_s14   ;;  %s471_s13 = sphi %s501_s13, %s550_s13   ;;  %s467_s12 = sphi %s499_s12, %s549_s12  }
   0x3   : > { %p27_p1 = scmp.ge.s32.totalorder %s25_s15, 2  ;;  %p158_p2 = scmp.lt.s32.totalorder %s475_s14, 3 }
   0x5   : > { %s552_s15 = smov (%p27_p1, %s25_s15), 0  ;;  %p159_p3 = pnand %p407_p0, %p158_p2 }
   0x6   : > { %p191_p4 = scmp.lt.s32.totalorder (!%p159_p3), %s467_s12, 1  ;;  %v477_v0 = vmov (!%p159_p3), 0.0   ;;  %v221_v1 = vld [vmem:[%s547_s2] sm:$0xf] (!%p159_p3)  ;;  %v478_v2 = vmov (!%p159_p3), 0   ;;  %vm231_vm0 = vcmask (!%p159_p3), 1043456  }
   0x7   : > { %162 = sbr.rel (%p159_p3) target bundleno = 249 (0xf9), region = 32  ;;  %302 = vmatprep.mubr.f32.mxu0 (!%p159_p3), %v477_v0  ;;  %452 = vset.pattern.permute.xlu0 (!%p159_p3), %v478_v2  ;;  %v210_v17 = vld [vmem:[%s546_s1] sm:$0xf] (!%p159_p3)  ;;  %vm227_vm1 = vcmask (!%p159_p3), 293888   ;;  %vm313_vm2 = vcmask (!%p159_p3), 793604  }
   0x8   : > { %224 = vperm.xlu0 (!%p159_p3), %452, %v221_v1   ;;  %vm314_vm3 = vmor (!%p159_p3), %vm313_vm2, %vm231_vm0 }
   0xe   : > { %s554_s12 = smov (!%p191_p4, %s467_s12), 1 }
   0xf   : > { %s425_s18 = smul.u32 80, %s554_s12  ;;  %s416_s24 = sshll.u32 %s554_s12, 3 }
  0x10   : > { %s208_s27 = scalar_lea.vmem %s548_s3, %s416_s24 }
  0x11   : > { %s198_s21 = scalar_lea.vmem %s545_s0, %s425_s18 }
  0x12   : > { %v212_v3 = vld [vmem:[%s198_s21 + $0x8] sm:$0xff]  ;;  %v214_v4 = vld [vmem:[%s198_s21 + $0x18] sm:$0xff]  ;;  %v211_v5 = vld [vmem:[%s198_s21] sm:$0xff] }
  0x13   : > { %v417_v6 = vpack.c.bf16 %v214_v4, %v212_v3  ;;  %v213_v7 = vld [vmem:[%s198_s21 + $0x10] sm:$0xff]  ;;  %v216_v8 = vld [vmem:[%s198_s21 + $0x28] sm:$0xff]  ;;  %v218_v9 = vld [vmem:[%s198_s21 + $0x38] sm:$0xff] }
  0x14   : > { %v419_v10 = vpack.c.bf16 %v213_v7, %v211_v5  ;;  %v421_v11 = vpack.c.bf16 %v218_v9, %v216_v8  ;;  %v215_v12 = vld [vmem:[%s198_s21 + $0x20] sm:$0xff]  ;;  %v217_v13 = vld [vmem:[%s198_s21 + $0x30] sm:$0xff]  ;;  %v220_v15 = vld [vmem:[%s198_s21 + $0x48] sm:$0xf] }
  0x15   : > { %418 = vmatprep.subr.bf16.mxu0 %v417_v6  ;;  %v423_v14 = vpack.c.bf16 %v217_v13, %v215_v12  ;;  %v219_v16 = vld [vmem:[%s198_s21 + $0x40] sm:$0xf] }
  0x16   : > { %420 = vmatpush1.bf16.msra.mxu0 %v419_v10 }
  0x17   : > { %422 = vmatprep.subr.bf16.mxu0 %v421_v11 }
  0x1a   : > { %424 = vmatpush1.bf16.msra.mxu0 %v423_v14 }
  0x1b   : > { %411 = vmatprep.subr.msk.mxu0 %vm231_vm0, %v220_v15 }
  0x1e   : > { %412 = vmatpush1.msk.msra.mxu0 %vm231_vm0, %v219_v16 }
  0x1f   : > { %413 = vmatmul.mubr.msk.f32.vlgmr.msra.gmra.mrb[0].mxu0 %vm227_vm1, %v210_v17 }
  0x87   : > { %v225_v18 = vpop.permute.xlu0 %224 }
  0xf2   : > { %v304_v19 = vpop.f32.mrb[0].mxu0 }
  0xf3   : > { %v305_v20 = vadd.f32 %v304_v19, %v225_v18  ;;  %v306_v21 = vpop.f32.mrb[1].mxu0 }
  0xf4   : > { %v307_v22 = vadd.f32 %v306_v21, %v225_v18 }
  0xf6   : > { %v311_v23 = vcombine.low %v305_v20, %v307_v22 }
  0xf8   : > { %315 = vst.msk [vmem:[%s208_s27] sm:$0xff] %vm314_vm3, %v311_v23 }
  0xf9 PF: > { %s13_s14 = sadd.s32 1, %s475_s14   ;;  %s549_s12 = smov %s471_s13 }
  0xfa   : > { %p10_p5 = scmp.ge.s32.totalorder %s13_s14, 4   ;;  %s550_s13 = smov %s552_s15 }
  0xfc   :  { %12 = sbr.rel (!%p10_p5) target bundleno = 2 (0x2), region = 62 }

// kernel: esa_forward.7
= control target key start
LH: loop header
LB: loop body
LE: loop exit
PB: predicated region body
PF: predicated region fallthrough
CT: control target
= control target key end

     0   :  { %s1474_s0 = inlined_call_operand.vmem [shape: f32[2,4,9], index: 0, kind: input, shape index: {}]   ;;  %s1475_s1 = inlined_call_operand.vmem [shape: f32[9,1024], index: 1, kind: input, shape index: {}]   ;;  %s1476_s2 = inlined_call_operand.vmem [shape: f32[2,4,1024], index: 2, kind: input, shape index: {}]   ;;  %s1477_s3 = inlined_call_operand.vmem [shape: f32[2,16,1024], index: 3, kind: input, shape index: {}]   ;;  %s1478_s4 = inlined_call_operand.vmem [shape: f32[16,4], index: 4, kind: input, shape index: {}]   ;;  %s1479_s5 = inlined_call_operand.vmem [shape: f32[16,1], index: 5, kind: input, shape index: {}]   ;;  %s1480_s6 = inlined_call_operand.vmem [shape: f32[2,16,1024], index: 6, kind: output, shape index: {}]  }
   0x1   :  { %1482 = sst [smem:[#allocation6_spill]] %s1475_s1 }
   0x2   :  { %s1273_s21 = smov 0   ;;  %s1275_s22 = smov 0  }
   0x3   :  { %s1277_s23 = smov 0   ;;  %s1279_s24 = smov 0  }
   0x4   :  { %s1281_s25 = smov 0   ;;  %s1283_s26 = smov 0  }
   0x5   :  { %s1285_s27 = smov 0   ;;  %s1287_s28 = smov 0  }
   0x6   :  { %s1289_s29 = smov 0  }
   0x7 LB: > { %s1001_s30 = sadd.s32 4294967295, %s1233_s29   ;;  %s25_s7 = sadd.s32 1, %s1225_s27  ;;  %s1233_s29 = sphi %s1289_s29, %s16_s29   ;;  %s1229_s28 = sphi %s1287_s28, %s1498_s28   ;;  %s1225_s27 = sphi %s1285_s27, %s1497_s27   ;;  %s1221_s26 = sphi %s1283_s26, %s1496_s26   ;;  %s1217_s25 = sphi %s1281_s25, %s1495_s25   ;;  %s1213_s24 = sphi %s1279_s24, %s1494_s24   ;;  %s1209_s23 = sphi %s1277_s23, %s1493_s23   ;;  %s1205_s22 = sphi %s1275_s22, %s1492_s22   ;;  %s1201_s21 = sphi %s1273_s21, %s1491_s21  }
   0x8   : > { %p26_p0 = scmp.ge.s32.totalorder %s25_s7, 2  ;;  %s28_s8 = sadd.s32 1, %s1229_s28 }
   0x9   : > { %s61_s9 = sadd.s32 1, %s1213_s24  ;;  %p68_p1 = scmp.ne.s32.totalorder %s1213_s24, %s1209_s23 }
   0xa   : > { %s1500_s7 = smov (%p26_p0, %s25_s7), 0  ;;  %s1502_s8 = smov (!%p26_p0, %s28_s8), %s1229_s28 }
   0xb   : > { %s58_s10 = ssub.s32 %s1225_s27, %s1500_s7  ;;  %p69_p2 = scmp.eq.s32.totalorder %s1233_s29, 0 }
   0xc   : > { %p30_p3 = scmp.ge.s32.totalorder %s1502_s8, 2  ;;  %p59_p4 = scmp.eq.s32.totalorder %s58_s10, 0 }
   0xd   : > { %p1330_p5 = por %p69_p2, %p68_p1  ;;  %s117_s12 = sadd.s32 1, %s1205_s22 }
   0xe   : > { %s1504_s8 = smov (%p30_p3, %s1502_s8), 0  ;;  %p124_p6 = scmp.ne.s32.totalorder %s1205_s22, %s1201_s21 }
   0xf   : > { %1484 = sst [smem:[#allocation5_spill]] %s1504_s8  ;;  %s112_s14 = ssub.s32 %s1229_s28, %s1504_s8 }
  0x10   : > { %s1338_s13 = scalar_select %p59_p4, %s1213_s24, %s61_s9  }
  0x11   : > { %s114_s15 = sor.u32 %s112_s14, %s58_s10  ;;  %p198_p7 = scmp.eq.s32.totalorder %s1001_s30, 3 }
  0x12   : > { %p115_p8 = scmp.eq.s32.totalorder %s114_s15, 0  ;;  %p1344_p9 = por %p124_p6, %p69_p2 }
  0x13   : > { %p1348_p10 = por %p198_p7, %p124_p6  ;;  %p1004_p11 = scmp.ge.s32.totalorder %s1233_s29, 4 }
  0x14   : > { %s1353_s18 = scalar_select %p115_p8, %s1205_s22, %s117_s12  }
  0x15   : > { %226 = sbr.rel (%p1004_p11) target bundleno = 53 (0x35), region = 24 }
  0x1c   : > { %236 = sbr.rel (!%p1330_p5) target bundleno = 42 (0x2a), region = 32  ;;  %s238_s19 = sand.u32 (%p1330_p5), 1, %s1213_s24  }
  0x1d   : > { %s1040_s20 = sshll.u32 (%p1330_p5), %s1225_s27, 5  ;;  %s1005_s30 = sshll.u32 (%p1330_p5), %s238_s19, 6 }
  0x1e   : > { %s1487_s1 = sld [smem:[#allocation6_spill]] (%p1330_p5)  ;;  %s240_s12 = scalar_lea.vmem (%p1330_p5), [#allocation2], %s1005_s30 }
  0x24   : > { %s243_s14 = scalar_lea.vmem %s1487_s1, %s1040_s20 }
  0x25   : > { %v256_v0 = vld [vmem:[%s243_s14] sm:$0xff]  ;;  %v258_v1 = vld [vmem:[%s243_s14 + $0x8] sm:$0xff]  ;;  %v260_v2 = vld [vmem:[%s243_s14 + $0x10] sm:$0xff] }
  0x26   : > { %257 = vst [vmem:[%s240_s12] sm:$0xff] %v256_v0  ;;  %259 = vst [vmem:[%s240_s12 + $0x8] sm:$0xff] %v258_v1  ;;  %v262_v3 = vld [vmem:[%s243_s14 + $0x18] sm:$0xff]  ;;  %v264_v4 = vld [vmem:[%s243_s14 + $0x40] sm:$0xff] }
  0x27   : > { %261 = vst [vmem:[%s240_s12 + $0x10] sm:$0xff] %v260_v2  ;;  %v266_v5 = vld [vmem:[%s243_s14 + $0x48] sm:$0xff]  ;;  %263 = vst [vmem:[%s240_s12 + $0x18] sm:$0xff] %v262_v3  ;;  %v268_v6 = vld [vmem:[%s243_s14 + $0x50] sm:$0xff] }
  0x28   : > { %265 = vst [vmem:[%s240_s12 + $0x20] sm:$0xff] %v264_v4  ;;  %267 = vst [vmem:[%s240_s12 + $0x28] sm:$0xff] %v266_v5  ;;  %v270_v7 = vld [vmem:[%s243_s14 + $0x58] sm:$0xff] }
  0x29   : > { %269 = vst [vmem:[%s240_s12 + $0x30] sm:$0xff] %v268_v6  ;;  %271 = vst [vmem:[%s240_s12 + $0x38] sm:$0xff] %v270_v7 }
  0x2a PF: > { %290 = sbr.rel (!%p1344_p9) target bundleno = 53 (0x35), region = 59  ;;  %s292_s11 = sand.u32 (%p1344_p9), 1, %s1205_s22  }
  0x2b   : > { %s1009_s15 = sshll.u32 (%p1344_p9), %s1225_s27, 2  ;;  %s1008_s19 = sshll.u32 (%p1344_p9), %s292_s11, 6 }
  0x2c   : > { %s1010_s20 = sshll.u32 (%p1344_p9), %s1229_s28, 4  ;;  %s294_s14 = scalar_lea.vmem (%p1344_p9), [#allocation3], %s1008_s19 }
  0x2d   : > { %s297_s30 = sadd.s32 (%p1344_p9), %s1010_s20, %s1009_s15 }
  0x2e   : > { %s1011_s9 = sshll.u32 (%p1344_p9), %s297_s30, 3 }
  0x2f   : > { %s299_s8 = scalar_lea.vmem (%p1344_p9), %s1477_s3, %s1011_s9 }
  0x30   : > { %v312_v8 = vld [vmem:[%s299_s8] sm:$0xff] (%p1344_p9)  ;;  %v314_v9 = vld [vmem:[%s299_s8 + $0x8] sm:$0xff] (%p1344_p9)  ;;  %v316_v10 = vld [vmem:[%s299_s8 + $0x10] sm:$0xff] (%p1344_p9) }
  0x31   : > { %313 = vst [vmem:[%s294_s14] sm:$0xff] %v312_v8  ;;  %315 = vst [vmem:[%s294_s14 + $0x8] sm:$0xff] %v314_v9  ;;  %v318_v11 = vld [vmem:[%s299_s8 + $0x18] sm:$0xff]  ;;  %v320_v12 = vld [vmem:[%s299_s8 + $0x40] sm:$0xff] }
  0x32   : > { %317 = vst [vmem:[%s294_s14 + $0x10] sm:$0xff] %v316_v10  ;;  %v322_v13 = vld [vmem:[%s299_s8 + $0x48] sm:$0xff]  ;;  %319 = vst [vmem:[%s294_s14 + $0x18] sm:$0xff] %v318_v11  ;;  %v324_v14 = vld [vmem:[%s299_s8 + $0x50] sm:$0xff] }
  0x33   : > { %321 = vst [vmem:[%s294_s14 + $0x20] sm:$0xff] %v320_v12  ;;  %323 = vst [vmem:[%s294_s14 + $0x28] sm:$0xff] %v322_v13  ;;  %v326_v15 = vld [vmem:[%s299_s8 + $0x58] sm:$0xff] }
  0x34   : > { %325 = vst [vmem:[%s294_s14 + $0x30] sm:$0xff] %v324_v14  ;;  %327 = vst [vmem:[%s294_s14 + $0x38] sm:$0xff] %v326_v15 }
  0x35 PF: > { %p1012_p12 = scmp.ge.s32.totalorder %s1233_s29, 1  ;;  %p332_p13 = scmp.lt.s32.totalorder %s1233_s29, 5 }
  0x37   : > { %p333_p0 = pnand %p1012_p12, %p332_p13 }
  0x38   : > { %s339_s1 = sand.u32 (!%p333_p0), 1, %s1209_s23   ;;  %vm429_vm0 = vcmask (!%p333_p0), 1040384   ;;  %p391_p1 = scmp.lt.s32.totalorder (!%p333_p0), %s1221_s26, 1  ;;  %v1235_v16 = vmov (!%p333_p0), 0.0   ;;  %vm1236_vm1 = vmmov (!%p333_p0), 1   ;;  %vm425_vm3 = vcmask (!%p333_p0), 72704  }
  0x39   : > { %336 = sbr.rel (%p333_p0) target bundleno = 546 (0x222), region = 82  ;;  %s1013_s16 = sshll.u32 (!%p333_p0), %s339_s1, 6  ;;  %506 = vmatprep.mubr.f32.mxu0 (!%p333_p0), %v1235_v16  ;;  %577 = vmatprep.mubr.f32.mxu1 (!%p333_p0), %v1235_v16  ;;  %vm1377_vm2 = vmpackc.low (!%p333_p0), %vm429_vm0, %vm1236_vm1  ;;  %v586_v31 = vld [vmem:[%s1479_s5] sm:$0xff] (!%p333_p0)  ;;  %v1237_v32 = vmov (!%p333_p0), 0   ;;  %v587_v33 = vld [vmem:[%s1479_s5 + $0x8] sm:$0xff] (!%p333_p0)  ;;  %vm605_vm4 = vcmask (!%p333_p0), 1043456  }
  0x3a   : > { %s341_s8 = scalar_lea.vmem (!%p333_p0), [#allocation2], %s1013_s16  ;;  %1128 = vset.pattern.permute.xlu0 (!%p333_p0), %v1237_v32  ;;  %s1405_s14 = sshll.u32 (!%p333_p0), %s1217_s25, 2  ;;  %v584_v46 = vld [vmem:[%s1478_s4] sm:$0xff] (!%p333_p0)  ;;  %vm598_vm5 = vcmask (!%p333_p0), 31744   ;;  %v585_v47 = vld [vmem:[%s1478_s4 + $0x8] sm:$0xff] (!%p333_p0) }
  0x3b   : > { %v410_v18 = vld [vmem:[%s341_s8 + $0x8] sm:$0xff] (!%p333_p0)  ;;  %v412_v20 = vld [vmem:[%s341_s8 + $0x18] sm:$0xff] (!%p333_p0)  ;;  %v409_v23 = vld [vmem:[%s341_s8] sm:$0xff] (!%p333_p0)  ;;  %590 = vperm.xlu0 (!%p333_p0), %1128, %v586_v31   ;;  %p399_p2 = scmp.lt.s32.totalorder (!%p333_p0), %s1405_s14, 7  ;;  %s346_s9 = sand.u32 (!%p333_p0), 1, %s1201_s21  }
  0x3c   : > { %v414_v19 = vld [vmem:[%s341_s8 + $0x28] sm:$0x1] (!%p333_p0)  ;;  %v416_v22 = vld [vmem:[%s341_s8 + $0x38] sm:$0x1] (!%p333_p0)  ;;  %v413_v24 = vld [vmem:[%s341_s8 + $0x20] sm:$0x1] (!%p333_p0) }
  0x3d   : > { %v1041_v21 = vpack.c.bf16 (!%p333_p0), %v414_v19, %v410_v18  ;;  %v1047_v25 = vpack.c.bf16 (!%p333_p0), %v416_v22, %v412_v20  ;;  %v1044_v26 = vpack.c.bf16 (!%p333_p0), %v413_v24, %v409_v23  ;;  %v411_v27 = vld [vmem:[%s341_s8 + $0x10] sm:$0xff] (!%p333_p0)  ;;  %s1014_s10 = sshll.u32 (!%p333_p0), %s346_s9, 6 }
  0x3e   : > { %v415_v28 = vld [vmem:[%s341_s8 + $0x30] sm:$0x1] (!%p333_p0)  ;;  %s348_s21 = scalar_lea.vmem (!%p333_p0), [#allocation3], %s1014_s10 }
  0x3f   : > { %1043 = vmatprep.subr.msk.bf16.mxu0 (!%p333_p0), %vm1377_vm2, %v1041_v21  ;;  %v1050_v29 = vpack.c.bf16 (!%p333_p0), %v415_v28, %v411_v27  ;;  %1049 = vmatprep.subr.msk.bf16.mxu1 (!%p333_p0), %vm1377_vm2, %v1047_v25 }
  0x40   : > { %s1382_s12 = scalar_select %p391_p1, %s1221_s26, 1  ;;  %1046 = vmatpush1.bf16.msk.msra.mxu0 %vm1377_vm2, %v1044_v26  ;;  %595 = vperm.xlu0 %1128, %v587_v33  }
  0x41   : > { %1052 = vmatpush1.bf16.msk.msra.mxu1 %vm1377_vm2, %v1050_v29  ;;  %s400_s1 = scalar_select %p399_p2, %s1405_s14, 7 }
  0x42   : > { %s1016_s23 = sshll.u32 %s1382_s12, 2  ;;  %s1018_s16 = sshll.u32 %s1382_s12, 3 }
  0x43   : > { %s394_s19 = scalar_lea.vmem %s1474_s0, %s1016_s23  ;;  %s402_s8 = sadd.s32 %s1018_s16, %s400_s1 }
  0x44   : > { %v408_v30 = vld [vmem:[%s394_s19] sm:$0xf]  ;;  %s1019_s23 = sshll.u32 %s402_s8, 2  ;;  %s1422_s1 = scalar_lea.vmem [#allocation4], %s1014_s10 }
  0x45   : > { %1022 = vmatmul.mubr.msk.f32.vlgmr.msra.gmra.mrb[0].mxu0 %vm425_vm3, %v408_v30  ;;  %1025 = vmatmul.mubr.msk.f32.vlgmr.msra.gmra.mrb[0].mxu1 %vm425_vm3, %v408_v30  ;;  %s404_s19 = scalar_lea.vmem %s1476_s2, %s1019_s23  ;;  %s1036_s16 = sshll.u32 (%p1348_p10), %s1221_s26, 4 }
  0x46   : > { %682 = vmatprep.mubr.f32.mxu0 %v1235_v16  ;;  %759 = vmatprep.mubr.f32.mxu1 %v1235_v16  ;;  %v417_v34 = vld [vmem:[%s404_s19] sm:$0xff]  ;;  %v418_v35 = vld [vmem:[%s404_s19 + $0x8] sm:$0xff]  ;;  %s845_s8 = sadd.s32 (%p1348_p10), %s1036_s16, %s1405_s14 }
  0x47   : > { %v421_v36 = vcombine.high %v417_v34, %v417_v34  ;;  %v422_v37 = vcombine.high %v418_v35, %v418_v35  ;;  %s1037_s17 = sshll.u32 (%p1348_p10), %s845_s8, 3 }
  0x48   : > { %s847_s15 = scalar_lea.vmem (%p1348_p10), %s1480_s6, %s1037_s17 }
  0xba   : > { %v591_v48 = vpop.permute.xlu0 %590 }
  0xbf   : > { %v596_v60 = vpop.permute.xlu0 %595 }
 0x118   : > { %v508_v38 = vpop.f32.mrb[0].mxu0  ;;  %v579_v40 = vpop.f32.mrb[0].mxu1 }
 0x119   : > { %v509_v39 = vadd.f32 %v508_v38, %v417_v34  ;;  %v510_v41 = vpop.f32.mrb[1].mxu0  ;;  %v580_v42 = vadd.f32 %v579_v40, %v418_v35  ;;  %v581_v44 = vpop.f32.mrb[1].mxu1  ;;  %v812_v34 = vld [vmem:[%s348_s21] sm:$0xff]  ;;  %v814_v35 = vld [vmem:[%s348_s21 + $0x10] sm:$0xff]  ;;  %v815_v40 = vld [vmem:[%s348_s21 + $0x18] sm:$0xff] }
 0x11a   : > { %v511_v43 = vadd.f32 %v510_v41, %v421_v36  ;;  %v582_v45 = vadd.f32 %v581_v44, %v422_v37  ;;  %v813_v37 = vld [vmem:[%s348_s21 + $0x8] sm:$0xff] }
 0x11c   : > { %1026 = vmatprep.subr.msk.mxu0 %vm605_vm4, %v511_v43  ;;  %1030 = vmatprep.subr.msk.mxu1 %vm605_vm4, %v582_v45  ;;  %v816_v43 = vld [vmem:[%s348_s21 + $0x20] sm:$0xff] }
 0x11d   : > { %1027 = vmatpush1.msk.msra.mxu0 %vm605_vm4, %v509_v39  ;;  %1031 = vmatpush1.msk.msra.mxu1 %vm605_vm4, %v580_v42 }
 0x11e   : > { %1028 = vmatmul.mubr.msk.f32.vlgmr.msra.gmra.mrb[2].mxu0 %vm598_vm5, %v584_v46  ;;  %1032 = vmatmul.mubr.msk.f32.vlgmr.msra.gmra.mrb[2].mxu1 %vm598_vm5, %v584_v46  ;;  %v818_v46 = vld [vmem:[%s348_s21 + $0x30] sm:$0xff] }
 0x11f   : > { %688 = vmatprep.mubr.f32.mxu0 %v1235_v16  ;;  %765 = vmatprep.mubr.f32.mxu1 %v1235_v16 }
 0x122   : > { %1029 = vmatmul.mubr.msk.f32.gmra.mrb[4].mxu0 %vm598_vm5, %v585_v47  ;;  %1033 = vmatmul.mubr.msk.f32.gmra.mrb[4].mxu1 %vm598_vm5, %v585_v47 }
 0x1f1   : > { %v684_v49 = vpop.f32.mrb[2].mxu0  ;;  %v761_v51 = vpop.f32.mrb[2].mxu1 }
 0x1f2   : > { %v685_v50 = vadd.f32 %v684_v49, %v591_v48  ;;  %v686_v52 = vpop.f32.mrb[3].mxu0  ;;  %v762_v53 = vadd.f32 %v761_v51, %v591_v48  ;;  %v763_v55 = vpop.f32.mrb[3].mxu1  ;;  %v817_v49 = vld [vmem:[%s348_s21 + $0x28] sm:$0xff] }
 0x1f3   : > { %v687_v54 = vadd.f32 %v686_v52, %v591_v48  ;;  %v764_v57 = vadd.f32 %v763_v55, %v591_v48  ;;  %v819_v52 = vld [vmem:[%s348_s21 + $0x38] sm:$0xff] }
 0x1f4   : > { %v772_v56 = vsub.f32 0.0, %v685_v50  ;;  %v774_v58 = vsub.f32 0.0, %v762_v53 }
 0x1f5   : > { %v773_v59 = vsub.f32 0.0, %v687_v54  ;;  %v690_v61 = vpop.f32.mrb[4].mxu0  ;;  %v775_v63 = vsub.f32 0.0, %v764_v57  ;;  %v767_v1 = vpop.f32.mrb[4].mxu1 }
 0x1f6   : > { %v780_v62 = vmul.f32 1.442695, %v772_v56  ;;  %v691_v0 = vadd.f32 %v690_v61, %v596_v60  ;;  %v692_v2 = vpop.f32.mrb[5].mxu0  ;;  %v784_v3 = vmul.f32 1.442695, %v774_v58  ;;  %v768_v5 = vadd.f32 %v767_v1, %v596_v60  ;;  %v769_v7 = vpop.f32.mrb[5].mxu1 }
 0x1f7   : > { %v782_v4 = vmul.f32 1.442695, %v773_v59  ;;  %v693_v6 = vadd.f32 %v692_v2, %v596_v60  ;;  %v786_v8 = vmul.f32 1.442695, %v775_v63  ;;  %v770_v10 = vadd.f32 %v769_v7, %v596_v60 }
 0x1f8   : > { %1131 = vpow2.f32 %v780_v62  ;;  %v776_v9 = vsub.f32 0.0, %v691_v0  ;;  %v778_v11 = vsub.f32 0.0, %v768_v5 }
 0x1f9   : > { %1133 = vpow2.f32 %v784_v3  ;;  %v777_v12 = vsub.f32 0.0, %v693_v6  ;;  %v779_v14 = vsub.f32 0.0, %v770_v10 }
 0x1fa   : > { %1135 = vpow2.f32 %v782_v4  ;;  %v788_v13 = vmul.f32 1.442695, %v776_v9  ;;  %v792_v15 = vmul.f32 1.442695, %v778_v11 }
 0x1fb   : > { %1137 = vpow2.f32 %v786_v8  ;;  %v790_v16 = vmul.f32 1.442695, %v777_v12  ;;  %v794_v17 = vmul.f32 1.442695, %v779_v14 }
 0x1fc   : > { %1139 = vpow2.f32 %v788_v13 }
 0x1fd   : > { %1141 = vpow2.f32 %v792_v15 }
 0x1fe   : > { %1143 = vpow2.f32 %v790_v16 }
 0x1ff   : > { %1145 = vpow2.f32 %v794_v17 }
 0x202   : > { %v1132_v18 = vpop.eup %1131 }
 0x203   : > { %v1134_v19 = vpop.eup %1133  ;;  %v796_v20 = vadd.f32 1.0, %v1132_v18 }
 0x204   : > { %v1136_v21 = vpop.eup %1135  ;;  %v798_v22 = vadd.f32 1.0, %v1134_v19 }
 0x205   : > { %v1138_v23 = vpop.eup %1137  ;;  %1147 = vrcp.f32 %v796_v20  ;;  %v797_v24 = vadd.f32 1.0, %v1136_v21 }
 0x206   : > { %v1140_v25 = vpop.eup %1139  ;;  %1149 = vrcp.f32 %v798_v22  ;;  %v799_v26 = vadd.f32 1.0, %v1138_v23 }
 0x207   : > { %v1142_v27 = vpop.eup %1141  ;;  %1151 = vrcp.f32 %v797_v24  ;;  %v800_v28 = vadd.f32 1.0, %v1140_v25 }
 0x208   : > { %v1144_v29 = vpop.eup %1143  ;;  %1153 = vrcp.f32 %v799_v26  ;;  %v802_v30 = vadd.f32 1.0, %v1142_v27 }
 0x209   : > { %v1146_v31 = vpop.eup %1145  ;;  %1155 = vrcp.f32 %v800_v28  ;;  %v801_v32 = vadd.f32 1.0, %v1144_v29 }
 0x20a   : > { %1157 = vrcp.f32 %v802_v30  ;;  %v803_v33 = vadd.f32 1.0, %v1146_v31 }
 0x20b   : > { %1159 = vrcp.f32 %v801_v32 }
 0x20c   : > { %1161 = vrcp.f32 %v803_v33 }
 0x20f   : > { %v1148_v36 = vpop.eup %1147 }
 0x210   : > { %v1150_v38 = vpop.eup %1149  ;;  %v820_v39 = vmul.f32 %v1148_v36, %v812_v34 }
 0x211   : > { %v1152_v41 = vpop.eup %1151  ;;  %v822_v42 = vmul.f32 %v1150_v38, %v814_v35 }
 0x212   : > { %v1154_v44 = vpop.eup %1153  ;;  %828 = vst [vmem:[%s1422_s1] sm:$0xff] %v820_v39  ;;  %v821_v45 = vmul.f32 %v1152_v41, %v813_v37 }
 0x213   : > { %v1156_v47 = vpop.eup %1155  ;;  %830 = vst [vmem:[%s1422_s1 + $0x10] sm:$0xff] %v822_v42  ;;  %v823_v48 = vmul.f32 %v1154_v44, %v815_v40  ;;  %842 = sbr.rel (!%p1348_p10) target bundleno = 546 (0x222), region = 94 }
 0x214   : > { %v1158_v50 = vpop.eup %1157  ;;  %829 = vst [vmem:[%s1422_s1 + $0x8] sm:$0xff] %v821_v45  ;;  %v824_v51 = vmul.f32 %v1156_v47, %v816_v43 }
 0x215   : > { %v1160_v53 = vpop.eup %1159  ;;  %831 = vst [vmem:[%s1422_s1 + $0x18] sm:$0xff] %v823_v48  ;;  %v826_v54 = vmul.f32 %v1158_v50, %v818_v46 }
 0x216   : > { %v1162_v55 = vpop.eup %1161  ;;  %832 = vst [vmem:[%s1422_s1 + $0x20] sm:$0xff] %v824_v51  ;;  %v825_v56 = vmul.f32 %v1160_v53, %v817_v49 }
 0x217   : > { %834 = vst [vmem:[%s1422_s1 + $0x30] sm:$0xff] %v826_v54  ;;  %v827_v57 = vmul.f32 %v1162_v55, %v819_v52 }
 0x218   : > { %833 = vst [vmem:[%s1422_s1 + $0x28] sm:$0xff] %v825_v56 }
 0x219   : > { %835 = vst [vmem:[%s1422_s1 + $0x38] sm:$0xff] %v827_v57  ;;  %v860_v58 = vld [vmem:[%s1422_s1] sm:$0xff] (%p1348_p10) }
 0x21a   : > { %v864_v60 = vld [vmem:[%s1422_s1 + $0x10] sm:$0xff]  ;;  %861 = vst [vmem:[%s847_s15] sm:$0xff] %v860_v58 }
 0x21b   : > { %v862_v59 = vld [vmem:[%s1422_s1 + $0x8] sm:$0xff]  ;;  %865 = vst [vmem:[%s847_s15 + $0x10] sm:$0xff] %v864_v60 }
 0x21c   : > { %v866_v61 = vld [vmem:[%s1422_s1 + $0x18] sm:$0xff]  ;;  %863 = vst [vmem:[%s847_s15 + $0x8] sm:$0xff] %v862_v59 }
 0x21d   : > { %v868_v62 = vld [vmem:[%s1422_s1 + $0x20] sm:$0xff]  ;;  %867 = vst [vmem:[%s847_s15 + $0x18] sm:$0xff] %v866_v61 }
 0x21e   : > { %v872_v0 = vld [vmem:[%s1422_s1 + $0x30] sm:$0xff]  ;;  %869 = vst [vmem:[%s847_s15 + $0x40] sm:$0xff] %v868_v62 }
 0x21f   : > { %v870_v63 = vld [vmem:[%s1422_s1 + $0x28] sm:$0xff]  ;;  %873 = vst [vmem:[%s847_s15 + $0x50] sm:$0xff] %v872_v0 }
 0x220   : > { %v874_v1 = vld [vmem:[%s1422_s1 + $0x38] sm:$0xff]  ;;  %871 = vst [vmem:[%s847_s15 + $0x48] sm:$0xff] %v870_v63 }
 0x221   : > { %875 = vst [vmem:[%s847_s15 + $0x58] sm:$0xff] %v874_v1 }
 0x222 PF: > { %s16_s29 = sadd.s32 1, %s1233_s29   ;;  %s1490_s14 = sld [smem:[#allocation5_spill]] }
 0x223   : > { %p13_p3 = scmp.ge.s32.totalorder %s16_s29, 6   ;;  %s1491_s21 = smov %s1205_s22 }
 0x224   : > { %s1492_s22 = smov %s1353_s18  ;;  %s1493_s23 = smov %s1213_s24 }
 0x225   : > { %s1494_s24 = smov %s1338_s13  ;;  %s1495_s25 = smov %s1225_s27 }
 0x226   : > { %s1496_s26 = smov %s1229_s28  ;;  %s1497_s27 = smov %s1500_s7 }
 0x227   :  { %15 = sbr.rel (!%p13_p3) target bundleno = 7 (0x7), region = 162 }
 0x228   : > { %s1498_s28 = smov %s1490_s14 }

// kernel: esa_forward.6
= control target key start
LH: loop header
LB: loop body
LE: loop exit
PB: predicated region body
PF: predicated region fallthrough
CT: control target
= control target key end

     0   :  { %s5676_s27 = smov 0   ;;  %s6335_s0 = inlined_call_operand.vmem [shape: f32[2,4,15,15], index: 0, kind: input, shape index: {}]   ;;  %s6336_s1 = inlined_call_operand.vmem [shape: f32[9,4,4], index: 1, kind: input, shape index: {}]   ;;  %s6337_s2 = inlined_call_operand.vmem [shape: f32[4,1], index: 2, kind: input, shape index: {}]   ;;  %s6338_s3 = inlined_call_operand.vmem [shape: f32[9,4,4], index: 3, kind: input, shape index: {}]   ;;  %s6339_s4 = inlined_call_operand.vmem [shape: f32[4,1], index: 4, kind: input, shape index: {}]   ;;  %s6340_s5 = inlined_call_operand.vmem [shape: f32[9,4,4], index: 5, kind: input, shape index: {}]   ;;  %s6341_s6 = inlined_call_operand.vmem [shape: f32[4,1], index: 6, kind: input, shape index: {}]   ;;  %s6342_s7 = inlined_call_operand.vmem [shape: f32[9,9,9], index: 7, kind: input, shape index: {}]   ;;  %s6343_s8 = inlined_call_operand.vmem [shape: f32[2,4,9], index: 8, kind: output, shape index: {}]  }
   0x1 LB: > { %s4877_s28 = sadd.s32 4294967295, %s5624_s27   ;;  %p4881_p0 = scmp.ge.s32.totalorder %s5624_s27, 1  ;;  %s5624_s27 = sphi %s5676_s27, %s18_s27  }
   0x2   : > { %p262_p1 = scmp.lt.s32.totalorder %s5624_s27, 3 }
   0x4   : > { %p263_p2 = pnand %p4881_p0, %p262_p1 }
   0x5   : > { %p295_p3 = scmp.lt.s32.totalorder (!%p263_p2), %s4877_s28, 1  ;;  %vm308_vm0 = vcmask (!%p263_p2), 55296   ;;  %vm360_vm1 = vcmask (!%p263_p2), 79896   ;;  %vm406_vm2 = vcmask (!%p263_p2), 104496   ;;  %vm343_vm3 = vcmask (!%p263_p2), 1041409  }
   0x6   : > { %266 = sbr.rel (%p263_p2) target bundleno = 2396 (0x95c), region = 52  ;;  %vm345_vm4 = vcmask (!%p263_p2), 1042434   ;;  %vm347_vm5 = vcmask (!%p263_p2), 1043459   ;;  %vm350_vm6 = vcmask (!%p263_p2), 52224   ;;  %vm5627_vm7 = vmmov (!%p263_p2), 0  }
   0x7   : > { %vm354_vm8 = vcmask (!%p263_p2), 3072   ;;  %vm400_vm9 = vcmask (!%p263_p2), 11272   ;;  %vm446_vm10 = vcmask (!%p263_p2), 19472   ;;  %vm491_vm11 = vcmask (!%p263_p2), 27672  }
   0x8   : > { %vm536_vm12 = vcmask (!%p263_p2), 35872   ;;  %vm581_vm13 = vcmask (!%p263_p2), 44072   ;;  %vm626_vm14 = vcmask (!%p263_p2), 52272   ;;  %vm671_vm15 = vcmask (!%p263_p2), 60472  }
   0xd   : > { %s6347_s28 = smov (!%p295_p3, %s4877_s28), 1 }
   0xe   : > { %s5035_s29 = sshll.u32 %s6347_s28, 6 }
   0xf   : > { %s5690_s10 = scalar_lea.vmem %s6335_s0, %s5035_s29  ;;  %s4884_s29 = sshll.u32 %s6347_s28, 2 }
  0x10   : > { %v306_v0 = vld [vmem:[%s5690_s10 + $0x20] sm:$0x7f]  ;;  %v305_v5 = vld [vmem:[%s5690_s10 + $0x10] sm:$0x7f] }
  0x11   : > { %v304_v1 = vld [vmem:[%s5690_s10] sm:$0x7f]  ;;  %v315_v3 = vsel %vm308_vm0, %v306_v0, -inf  ;;  %v312_v7 = vsel %vm308_vm0, %v305_v5, -inf  ;;  %v307_v8 = vld [vmem:[%s5690_s10 + $0x30] sm:$0x7f] }
  0x12   : > { %v356_v2 = vld [vmem:[%s5690_s10] sm:$0x7f]  ;;  %v309_v4 = vsel %vm308_vm0, %v304_v1, -inf  ;;  %316 = vmax.xlane.f32.xlu1 %v315_v3  ;;  %v357_v9 = vld [vmem:[%s5690_s10 + $0x10] sm:$0x7f]  ;;  %v318_v10 = vsel %vm308_vm0, %v307_v8, -inf  ;;  %v325_v8 = vlaneseq }
  0x13   : > { %310 = vmax.xlane.f32.xlu0 %v309_v4  ;;  %v361_v6 = vsel %vm360_vm1, %v356_v2, -inf  ;;  %v364_v11 = vsel %vm360_vm1, %v357_v9, -inf  ;;  %v402_v12 = vld [vmem:[%s5690_s10] sm:$0x7f]  ;;  %v359_v16 = vld [vmem:[%s5690_s10 + $0x30] sm:$0x7f] }
  0x14   : > { %v358_v13 = vld [vmem:[%s5690_s10 + $0x20] sm:$0x7f]  ;;  %v407_v14 = vsel %vm406_vm2, %v402_v12, -inf  ;;  %v403_v17 = vld [vmem:[%s5690_s10 + $0x10] sm:$0x7f]  ;;  %v370_v18 = vsel %vm360_vm1, %v359_v16, -inf }
  0x15   : > { %v367_v15 = vsel %vm360_vm1, %v358_v13, -inf  ;;  %v410_v19 = vsel %vm406_vm2, %v403_v17, -inf  ;;  %v448_v20 = vld [vmem:[%s5690_s10 + $0x3] sm:$0x7f]  ;;  %v405_v24 = vld [vmem:[%s5690_s10 + $0x30] sm:$0x7f] }
  0x16   : > { %362 = vmax.xlane.f32.xlu1 %v361_v6  ;;  %v404_v21 = vld [vmem:[%s5690_s10 + $0x20] sm:$0x7f]  ;;  %v452_v22 = vsel %vm308_vm0, %v448_v20, -inf  ;;  %v449_v25 = vld [vmem:[%s5690_s10 + $0x13] sm:$0x7f]  ;;  %v416_v26 = vsel %vm406_vm2, %v405_v24, -inf }
  0x17   : > { %313 = vmax.xlane.f32.xlu0 %v312_v7  ;;  %v413_v23 = vsel %vm406_vm2, %v404_v21, -inf  ;;  %v455_v27 = vsel %vm308_vm0, %v449_v25, -inf  ;;  %v493_v28 = vld [vmem:[%s5690_s10 + $0x3] sm:$0x7f]  ;;  %v451_v32 = vld [vmem:[%s5690_s10 + $0x33] sm:$0x7f] }
  0x18   : > { %v450_v29 = vld [vmem:[%s5690_s10 + $0x23] sm:$0x7f]  ;;  %v497_v30 = vsel %vm360_vm1, %v493_v28, -inf  ;;  %v494_v33 = vld [vmem:[%s5690_s10 + $0x13] sm:$0x7f]  ;;  %v461_v34 = vsel %vm308_vm0, %v451_v32, -inf }
  0x19   : > { %v458_v31 = vsel %vm308_vm0, %v450_v29, -inf  ;;  %v500_v35 = vsel %vm360_vm1, %v494_v33, -inf  ;;  %v538_v36 = vld [vmem:[%s5690_s10 + $0x3] sm:$0x7f]  ;;  %v496_v40 = vld [vmem:[%s5690_s10 + $0x33] sm:$0x7f] }
  0x1a   : > { %319 = vmax.xlane.f32.xlu1 %v318_v10  ;;  %v495_v37 = vld [vmem:[%s5690_s10 + $0x23] sm:$0x7f]  ;;  %v542_v38 = vsel %vm406_vm2, %v538_v36, -inf  ;;  %v539_v41 = vld [vmem:[%s5690_s10 + $0x13] sm:$0x7f]  ;;  %v506_v42 = vsel %vm360_vm1, %v496_v40, -inf }
  0x1b   : > { %365 = vmax.xlane.f32.xlu0 %v364_v11  ;;  %v503_v39 = vsel %vm360_vm1, %v495_v37, -inf  ;;  %v545_v43 = vsel %vm406_vm2, %v539_v41, -inf  ;;  %v583_v44 = vld [vmem:[%s5690_s10 + $0x6] sm:$0x7f]  ;;  %v541_v48 = vld [vmem:[%s5690_s10 + $0x33] sm:$0x7f] }
  0x1c   : > { %v540_v45 = vld [vmem:[%s5690_s10 + $0x23] sm:$0x7f]  ;;  %v587_v46 = vsel %vm308_vm0, %v583_v44, -inf  ;;  %v584_v49 = vld [vmem:[%s5690_s10 + $0x16] sm:$0x7f]  ;;  %v551_v50 = vsel %vm406_vm2, %v541_v48, -inf }
  0x1d   : > { %v548_v47 = vsel %vm406_vm2, %v540_v45, -inf  ;;  %v590_v51 = vsel %vm308_vm0, %v584_v49, -inf  ;;  %v628_v52 = vld [vmem:[%s5690_s10 + $0x6] sm:$0x7f]  ;;  %v586_v56 = vld [vmem:[%s5690_s10 + $0x36] sm:$0x7f] }
  0x1e   : > { %408 = vmax.xlane.f32.xlu1 %v407_v14  ;;  %v585_v53 = vld [vmem:[%s5690_s10 + $0x26] sm:$0x7f]  ;;  %v632_v54 = vsel %vm360_vm1, %v628_v52, -inf  ;;  %v629_v57 = vld [vmem:[%s5690_s10 + $0x16] sm:$0x7f]  ;;  %v596_v58 = vsel %vm308_vm0, %v586_v56, -inf }
  0x1f   : > { %368 = vmax.xlane.f32.xlu0 %v367_v15  ;;  %v593_v55 = vsel %vm308_vm0, %v585_v53, -inf  ;;  %v635_v59 = vsel %vm360_vm1, %v629_v57, -inf  ;;  %v673_v60 = vld [vmem:[%s5690_s10 + $0x6] sm:$0x7f]  ;;  %v631_v0 = vld [vmem:[%s5690_s10 + $0x36] sm:$0x7f] }
  0x20   : > { %v630_v61 = vld [vmem:[%s5690_s10 + $0x26] sm:$0x7f]  ;;  %v677_v62 = vsel %vm406_vm2, %v673_v60, -inf  ;;  %v674_v1 = vld [vmem:[%s5690_s10 + $0x16] sm:$0x7f]  ;;  %v641_v2 = vsel %vm360_vm1, %v631_v0, -inf }
  0x21   : > { %v638_v63 = vsel %vm360_vm1, %v630_v61, -inf  ;;  %v680_v3 = vsel %vm406_vm2, %v674_v1, -inf  ;;  %v675_v4 = vld [vmem:[%s5690_s10 + $0x26] sm:$0x7f]  ;;  %v676_v5 = vld [vmem:[%s5690_s10 + $0x36] sm:$0x7f]  ;;  %s303_s10 = scalar_lea.vmem %s6343_s8, %s4884_s29 }
  0x22   : > { %371 = vmax.xlane.f32.xlu1 %v370_v18  ;;  %v683_v6 = vsel %vm406_vm2, %v675_v4, -inf  ;;  %v686_v7 = vsel %vm406_vm2, %v676_v5, -inf  ;;  %v326_v9 = vand.u32 127, %v325_v8  ;;  %v328_v10 = vshrl.u32 %v325_v8, 7 }
  0x23   : > { %411 = vmax.xlane.f32.xlu0 %v410_v19  ;;  %vm716_vm0 = vcmask 68672   ;;  %vm724_vm1 = vcmask 1043456   ;;  %vm882_vm2 = vcmask 1040384  }
  0x24   : > { %v5764_v13 = vsub.s32 %v326_v9, %v328_v10 }
  0x26   : > { %453 = vmax.xlane.f32.xlu1 %v452_v22 }
  0x27   : > { %414 = vmax.xlane.f32.xlu0 %v413_v23 }
  0x2a   : > { %417 = vmax.xlane.f32.xlu1 %v416_v26 }
  0x2b   : > { %456 = vmax.xlane.f32.xlu0 %v455_v27 }
  0x2e   : > { %498 = vmax.xlane.f32.xlu1 %v497_v30 }
  0x2f   : > { %459 = vmax.xlane.f32.xlu0 %v458_v31 }
  0x32   : > { %462 = vmax.xlane.f32.xlu1 %v461_v34 }
  0x33   : > { %501 = vmax.xlane.f32.xlu0 %v500_v35 }
  0x36   : > { %543 = vmax.xlane.f32.xlu1 %v542_v38 }
  0x37   : > { %504 = vmax.xlane.f32.xlu0 %v503_v39 }
  0x3a   : > { %507 = vmax.xlane.f32.xlu1 %v506_v42 }
  0x3b   : > { %546 = vmax.xlane.f32.xlu0 %v545_v43 }
  0x3e   : > { %588 = vmax.xlane.f32.xlu1 %v587_v46 }
  0x3f   : > { %549 = vmax.xlane.f32.xlu0 %v548_v47 }
  0x42   : > { %552 = vmax.xlane.f32.xlu1 %v551_v50 }
  0x43   : > { %591 = vmax.xlane.f32.xlu0 %v590_v51 }
  0x46   : > { %633 = vmax.xlane.f32.xlu1 %v632_v54 }
  0x47   : > { %594 = vmax.xlane.f32.xlu0 %v593_v55 }
  0x4a   : > { %597 = vmax.xlane.f32.xlu1 %v596_v58 }
  0x4b   : > { %636 = vmax.xlane.f32.xlu0 %v635_v59 }
  0x4e   : > { %678 = vmax.xlane.f32.xlu1 %v677_v62 }
  0x4f   : > { %639 = vmax.xlane.f32.xlu0 %v638_v63 }
  0x52   : > { %642 = vmax.xlane.f32.xlu1 %v641_v2 }
  0x53   : > { %681 = vmax.xlane.f32.xlu0 %v680_v3 }
  0x56   : > { %687 = vmax.xlane.f32.xlu1 %v686_v7 }
  0x57   : > { %684 = vmax.xlane.f32.xlu0 %v683_v6 }
  0x9f   : > { %v317_v11 = vpop.xlane.xlu1 %316 }
  0xa0   : > { %v311_v12 = vpop.xlane.xlu0 %310  ;;  %v338_v19 = vrot.slane %v317_v11, %v5764_v13 }
  0xa1   : > { %v330_v16 = vrot.slane %v311_v12, %v5764_v13 }
  0xa3   : > { %v363_v14 = vpop.xlane.xlu1 %362 }
  0xa4   : > { %v314_v15 = vpop.xlane.xlu0 %313  ;;  %v380_v30 = vrot.slane %v363_v14, %v5764_v13 }
  0xa5   : > { %v334_v17 = vrot.slane %v314_v15, %v5764_v13 }
  0xa7   : > { %v344_v18 = vsel %vm343_vm3, %v334_v17, %v330_v16  ;;  %v320_v20 = vpop.xlane.xlu1 %319 }
  0xa8   : > { %v366_v21 = vpop.xlane.xlu0 %365  ;;  %v342_v22 = vrot.slane %v320_v20, %v5764_v13  ;;  %v346_v23 = vsel %vm345_vm4, %v338_v19, %v344_v18 }
  0xa9   : > { %v384_v28 = vrot.slane %v366_v21, %v5764_v13 }
  0xaa   : > { %v348_v24 = vsel %vm347_vm5, %v342_v22, %v346_v23 }
  0xab   : > { %v409_v25 = vpop.xlane.xlu1 %408  ;;  %v351_v27 = vsel %vm350_vm6, %v348_v24, -inf  ;;  %v393_v33 = vsel %vm343_vm3, %v384_v28, %v380_v30 }
  0xac   : > { %v369_v26 = vpop.xlane.xlu0 %368  ;;  %352 = vmax.xlane.f32.xlu0 %v351_v27  ;;  %v426_v42 = vrot.slane %v409_v25, %v5764_v13 }
  0xad   : > { %v388_v29 = vrot.slane %v369_v26, %v5764_v13 }
  0xaf   : > { %v372_v31 = vpop.xlane.xlu1 %371  ;;  %v394_v35 = vsel %vm345_vm4, %v388_v29, %v393_v33 }
  0xb0   : > { %v412_v32 = vpop.xlane.xlu0 %411  ;;  %v392_v34 = vrot.slane %v372_v31, %v5764_v13 }
  0xb1   : > { %v430_v40 = vrot.slane %v412_v32, %v5764_v13 }
  0xb2   : > { %v395_v36 = vsel %vm347_vm5, %v392_v34, %v394_v35 }
  0xb3   : > { %v454_v37 = vpop.xlane.xlu1 %453  ;;  %v397_v39 = vsel %vm350_vm6, %v395_v36, -inf  ;;  %v439_v45 = vsel %vm343_vm3, %v430_v40, %v426_v42 }
  0xb4   : > { %v415_v38 = vpop.xlane.xlu0 %414  ;;  %398 = vmax.xlane.f32.xlu1 %v397_v39  ;;  %v471_v54 = vrot.slane %v454_v37, %v5764_v13 }
  0xb5   : > { %v434_v41 = vrot.slane %v415_v38, %v5764_v13 }
  0xb7   : > { %v418_v43 = vpop.xlane.xlu1 %417  ;;  %v440_v47 = vsel %vm345_vm4, %v434_v41, %v439_v45 }
  0xb8   : > { %v457_v44 = vpop.xlane.xlu0 %456  ;;  %v438_v46 = vrot.slane %v418_v43, %v5764_v13 }
  0xb9   : > { %v475_v52 = vrot.slane %v457_v44, %v5764_v13 }
  0xba   : > { %v441_v48 = vsel %vm347_vm5, %v438_v46, %v440_v47 }
  0xbb   : > { %v499_v49 = vpop.xlane.xlu1 %498  ;;  %v443_v51 = vsel %vm350_vm6, %v441_v48, -inf  ;;  %v484_v57 = vsel %vm343_vm3, %v475_v52, %v471_v54 }
  0xbc   : > { %v460_v50 = vpop.xlane.xlu0 %459  ;;  %444 = vmax.xlane.f32.xlu0 %v443_v51  ;;  %v516_v2 = vrot.slane %v499_v49, %v5764_v13 }
  0xbd   : > { %v479_v53 = vrot.slane %v460_v50, %v5764_v13 }
  0xbf   : > { %v463_v55 = vpop.xlane.xlu1 %462  ;;  %v485_v59 = vsel %vm345_vm4, %v479_v53, %v484_v57  ;;  %v5626_v57 = vmov 0.0  }
  0xc0   : > { %v502_v56 = vpop.xlane.xlu0 %501  ;;  %v483_v58 = vrot.slane %v463_v55, %v5764_v13  ;;  %5171 = vmatprep.subr.mxu0 %v5626_v57  ;;  %5176 = vmatprep.subr.mxu1 %v5626_v57 }
  0xc1   : > { %v520_v0 = vrot.slane %v502_v56, %v5764_v13  ;;  %5173 = vmatprep.mubr.msk.f32.mxu0 %vm5627_vm7, %v5626_v57  ;;  %5178 = vmatprep.mubr.msk.f32.mxu1 %vm5627_vm7, %v5626_v57 }
  0xc2   : > { %v486_v60 = vsel %vm347_vm5, %v483_v58, %v485_v59 }
  0xc3   : > { %v544_v61 = vpop.xlane.xlu1 %543  ;;  %v488_v63 = vsel %vm350_vm6, %v486_v60, -inf  ;;  %v529_v5 = vsel %vm343_vm3, %v520_v0, %v516_v2  ;;  %v4890_v2 = vld [vmem:[%s6342_s7 + $0x10] sm:$0xff] }
  0xc4   : > { %v505_v62 = vpop.xlane.xlu0 %504  ;;  %489 = vmax.xlane.f32.xlu1 %v488_v63  ;;  %v561_v15 = vrot.slane %v544_v61, %v5764_v13 }
  0xc5   : > { %v524_v1 = vrot.slane %v505_v62, %v5764_v13 }
  0xc7   : > { %v508_v3 = vpop.xlane.xlu1 %507  ;;  %v530_v7 = vsel %vm345_vm4, %v524_v1, %v529_v5  ;;  %v799_v5 = vld [vmem:[%s6342_s7 + $0x8] sm:$0x1] }
  0xc8   : > { %v547_v4 = vpop.xlane.xlu0 %546  ;;  %v528_v6 = vrot.slane %v508_v3, %v5764_v13  ;;  %v4891_v3 = vld [vmem:[%s6342_s7 + $0x18] sm:$0x1] }
  0xc9   : > { %v565_v12 = vrot.slane %v547_v4, %v5764_v13  ;;  %v798_v4 = vld [vmem:[%s6342_s7] sm:$0xff] }
  0xca   : > { %v531_v8 = vsel %vm347_vm5, %v528_v6, %v530_v7  ;;  %v719_v6 = vld [vmem:[%s6336_s1] sm:$0xf]  ;;  %v4887_v7 = vld [vmem:[%s6336_s1 + $0x4] sm:$0xf] }
  0xcb   : > { %v589_v9 = vpop.xlane.xlu1 %588  ;;  %v533_v11 = vsel %vm350_vm6, %v531_v8, -inf  ;;  %v574_v18 = vsel %vm343_vm3, %v565_v12, %v561_v15  ;;  %v5629_v12 = vmov 0.0|0.0  }
  0xcc   : > { %v550_v10 = vpop.xlane.xlu0 %549  ;;  %534 = vmax.xlane.f32.xlu0 %v533_v11  ;;  %v606_v27 = vrot.slane %v589_v9, %v5764_v13  ;;  %v5862_v9 = vpack.c.bf16 %v4891_v3, %v4890_v2 }
  0xcd   : > { %v569_v14 = vrot.slane %v550_v10, %v5764_v13  ;;  %v5864_v10 = vpack.c.bf16 %v799_v5, %v798_v4 }
  0xcf   : > { %v553_v16 = vpop.xlane.xlu1 %552  ;;  %v575_v20 = vsel %vm345_vm4, %v569_v14, %v574_v18  ;;  %v4896_v18 = vld [vmem:[%s6336_s1 + $0x8] sm:$0xf] }
  0xd0   : > { %v592_v17 = vpop.xlane.xlu0 %591  ;;  %v573_v19 = vrot.slane %v553_v16, %v5764_v13 }
  0xd1   : > { %v610_v25 = vrot.slane %v592_v17, %v5764_v13 }
  0xd2   : > { %v576_v21 = vsel %vm347_vm5, %v573_v19, %v575_v20  ;;  %v4903_v19 = vld [vmem:[%s6336_s1 + $0xc] sm:$0xf]  ;;  %v4910_v20 = vld [vmem:[%s6336_s1 + $0x10] sm:$0xf] }
  0xd3   : > { %v634_v22 = vpop.xlane.xlu1 %633  ;;  %v578_v24 = vsel %vm350_vm6, %v576_v21, -inf  ;;  %v619_v30 = vsel %vm343_vm3, %v610_v25, %v606_v27  ;;  %v4917_v21 = vld [vmem:[%s6336_s1 + $0x14] sm:$0xf]  ;;  %v4899_v25 = vld [vmem:[%s6342_s7 + $0x20] sm:$0xff] }
  0xd4   : > { %v595_v23 = vpop.xlane.xlu0 %594  ;;  %579 = vmax.xlane.f32.xlu1 %v578_v24  ;;  %v651_v39 = vrot.slane %v634_v22, %v5764_v13  ;;  %v4924_v22 = vld [vmem:[%s6336_s1 + $0x18] sm:$0xf]  ;;  %v4938_v24 = vld [vmem:[%s6336_s1 + $0x20] sm:$0xf] }
  0xd5   : > { %v614_v26 = vrot.slane %v595_v23, %v5764_v13  ;;  %v4931_v23 = vld [vmem:[%s6336_s1 + $0x1c] sm:$0xf] }
  0xd7   : > { %v598_v28 = vpop.xlane.xlu1 %597  ;;  %v620_v32 = vsel %vm345_vm4, %v614_v26, %v619_v30  ;;  %v4900_v26 = vld [vmem:[%s6342_s7 + $0x28] sm:$0x1]  ;;  %v4815_v30 = vld [vmem:[%s6341_s6] sm:$0xf] }
  0xd8   : > { %v637_v29 = vpop.xlane.xlu0 %636  ;;  %v618_v31 = vrot.slane %v598_v28, %v5764_v13  ;;  %v5956_v27 = vpack.c.bf16 %v4900_v26, %v4899_v25  ;;  %v2117_v28 = vld [vmem:[%s6337_s2] sm:$0xf] }
  0xd9   : > { %v655_v37 = vrot.slane %v637_v29, %v5764_v13  ;;  %v5630_v29 = vmov 0  }
  0xda   : > { %v621_v33 = vsel %vm347_vm5, %v618_v31, %v620_v32  ;;  %5616 = vset.pattern.permute.xlu1 %v5630_v29  ;;  %5617 = vset.pattern.permute.xlu0 %v5630_v29  ;;  %v4906_v31 = vld [vmem:[%s6342_s7 + $0x30] sm:$0xff]  ;;  %v4907_v32 = vld [vmem:[%s6342_s7 + $0x38] sm:$0x1] }
  0xdb   : > { %v679_v34 = vpop.xlane.xlu1 %678  ;;  %v623_v36 = vsel %vm350_vm6, %v621_v33, -inf  ;;  %v664_v42 = vsel %vm343_vm3, %v655_v37, %v651_v39  ;;  %v4913_v39 = vld [vmem:[%s6342_s7 + $0x40] sm:$0xff] }
  0xdc   : > { %v640_v35 = vpop.xlane.xlu0 %639  ;;  %624 = vmax.xlane.f32.xlu0 %v623_v36  ;;  %v696_v47 = vrot.slane %v679_v34, %v5764_v13 }
  0xdd   : > { %v659_v38 = vrot.slane %v640_v35, %v5764_v13 }
  0xdf   : > { %v643_v40 = vpop.xlane.xlu1 %642  ;;  %v665_v45 = vsel %vm345_vm4, %v659_v38, %v664_v42  ;;  %v5974_v38 = vpack.c.bf16 %v4907_v32, %v4906_v31 }
  0xe0   : > { %v682_v41 = vpop.xlane.xlu0 %681  ;;  %v663_v43 = vrot.slane %v643_v40, %v5764_v13  ;;  %v4914_v40 = vld [vmem:[%s6342_s7 + $0x48] sm:$0x1] }
  0xe1   : > { %v700_v44 = vrot.slane %v682_v41, %v5764_v13 }
  0xe2   : > { %v666_v46 = vsel %vm347_vm5, %v663_v43, %v665_v45  ;;  %v5988_v43 = vpack.c.bf16 %v4914_v40, %v4913_v39  ;;  %v4921_v45 = vld [vmem:[%s6342_s7 + $0x58] sm:$0x1] }
  0xe3   : > { %v688_v49 = vpop.xlane.xlu1 %687  ;;  %v668_v50 = vsel %vm350_vm6, %v666_v46, -inf  ;;  %v709_v53 = vsel %vm343_vm3, %v700_v44, %v696_v47  ;;  %vm720_vm3 = vcmask 31744   ;;  %v4920_v44 = vld [vmem:[%s6342_s7 + $0x50] sm:$0xff] }
  0xe4   : > { %v685_v48 = vpop.xlane.xlu0 %684  ;;  %v708_v52 = vrot.slane %v688_v49, %v5764_v13  ;;  %669 = vmax.xlane.f32.xlu1 %v668_v50  ;;  %v4927_v49 = vld [vmem:[%s6342_s7 + $0x60] sm:$0xff]  ;;  %v4928_v50 = vld [vmem:[%s6342_s7 + $0x68] sm:$0x1] }
  0xe5   : > { %v704_v51 = vrot.slane %v685_v48, %v5764_v13  ;;  %v6003_v48 = vpack.c.bf16 %v4921_v45, %v4920_v44  ;;  %v4964_v44 = vld [vmem:[%s6338_s3 + $0x10] sm:$0xf]  ;;  %v4969_v45 = vld [vmem:[%s6338_s3 + $0x14] sm:$0xf] }
  0xe7   : > { %v710_v54 = vsel %vm345_vm4, %v704_v51, %v709_v53  ;;  %vm5628_vm4 = vmmov 1   ;;  %v6018_v53 = vpack.c.bf16 %v4928_v50, %v4927_v49  ;;  %v4984_v49 = vld [vmem:[%s6338_s3 + $0x20] sm:$0xf] }
  0xe8   : > { %v711_v55 = vsel %vm347_vm5, %v708_v52, %v710_v54  ;;  %vm5868_vm5 = vmpackc.low %vm882_vm2, %vm5628_vm4  ;;  %v4934_v54 = vld [vmem:[%s6342_s7 + $0x70] sm:$0xff]  ;;  %v3466_v50 = vld [vmem:[%s6339_s4] sm:$0xf] }
  0xe9   : > { %v713_v56 = vsel %vm350_vm6, %v711_v55, -inf  ;;  %vm878_vm6 = vcmask 72704   ;;  %v4935_v55 = vld [vmem:[%s6342_s7 + $0x78] sm:$0x1] }
  0xea   : > { %714 = vmax.xlane.f32.xlu0 %v713_v56 }
  0xf5   : > { %2120 = vperm.xlu1 %5616, %v2117_v28  }
  0xf9   : > { %4818 = vperm.xlu1 %5616, %v4815_v30  }
 0x100   : > { %3469 = vperm.xlu0 %5617, %v3466_v50   ;;  %v5023_v50 = vld [vmem:[%s6340_s5 + $0x1c] sm:$0xf] }
 0x139   : > { %v353_v13 = vpop.xlane.xlu0 %352 }
 0x13a   : > { %355 = vst.msk [vmem:[#allocation2] sm:$0xf] %vm354_vm8, %v353_v13 }
 0x141   : > { %v399_v58 = vpop.xlane.xlu1 %398 }
 0x142   : > { %401 = vst.msk [vmem:[#allocation2] sm:$0xf] %vm400_vm9, %v399_v58  ;;  %v6033_v58 = vpack.c.bf16 %v4935_v55, %v4934_v54 }
 0x149   : > { %v445_v59 = vpop.xlane.xlu0 %444 }
 0x14a   : > { %447 = vst.msk [vmem:[#allocation2] sm:$0xf] %vm446_vm10, %v445_v59  ;;  %v4941_v59 = vld [vmem:[%s6342_s7 + $0x80] sm:$0xff] }
 0x151   : > { %v490_v60 = vpop.xlane.xlu1 %489 }
 0x152   : > { %492 = vst.msk [vmem:[#allocation2] sm:$0xf] %vm491_vm11, %v490_v60  ;;  %v4942_v60 = vld [vmem:[%s6342_s7 + $0x88] sm:$0x1] }
 0x159   : > { %v535_v61 = vpop.xlane.xlu0 %534 }
 0x15a   : > { %537 = vst.msk [vmem:[#allocation2] sm:$0xf] %vm536_vm12, %v535_v61 }
 0x161   : > { %v580_v62 = vpop.xlane.xlu1 %579 }
 0x162   : > { %582 = vst.msk [vmem:[#allocation2] sm:$0xf] %vm581_vm13, %v580_v62 }
 0x169   : > { %v625_v63 = vpop.xlane.xlu0 %624 }
 0x16a   : > { %627 = vst.msk [vmem:[#allocation2] sm:$0xf] %vm626_vm14, %v625_v63  ;;  %v6048_v63 = vpack.c.bf16 %v4942_v60, %v4941_v59 }
 0x171   : > { %v670_v0 = vpop.xlane.xlu1 %669 }
 0x172   : > { %672 = vst.msk [vmem:[#allocation2] sm:$0xf] %vm671_vm15, %v670_v0 }
 0x175   : > { %v2121_v31 = vpop.permute.xlu1 %2120 }
 0x177   : > { %v715_v1 = vpop.xlane.xlu0 %714 }
 0x178   : > { %717 = vst.msk [vmem:[#allocation2] sm:$0xf] %vm716_vm0, %v715_v1 }
 0x17f   : > { %v718_v8 = vld [vmem:[#allocation2] sm:$0xf] }
 0x180   : > { %5172 = vmatpush3.msk.msra.mxu0 %vm724_vm1, %v718_v8  ;;  %5177 = vmatpush3.msk.msra.mxu1 %vm724_vm1, %v718_v8 }
 0x181   : > { %5174 = vmatmul.mubr.msk.f32.vlgmr.msra.gmra.mrb[0].mxu0 %vm720_vm3, %v719_v6  ;;  %5179 = vmatmul.mubr.msk.f32.vlgmr.msra.gmra.mrb[0].mxu1 %vm720_vm3, %v4887_v7 }
 0x182   : > { %5495 = vmatprep.subr.bf16.mxu0 %v5629_v12  ;;  %5499 = vmatprep.subr.bf16.mxu1 %v5629_v12 }
 0x183   : > { %5498 = vmatpush3.bf16.msk.msra.mxu0 %vm5868_vm5, %v5862_v9  ;;  %5502 = vmatpush3.bf16.msk.msra.mxu1 %vm5868_vm5, %v5864_v10 }
 0x184   : > { %5185 = vmatprep.mubr.msk.f32.mxu0 %vm5627_vm7, %v5626_v57  ;;  %5192 = vmatprep.mubr.msk.f32.mxu1 %vm5627_vm7, %v5626_v57 }
 0x185   : > { %5195 = vmatprep.subr.mxu0 %v5626_v57  ;;  %5503 = vmatprep.subr.bf16.mxu1 %v5629_v12 }
 0x254   : > { %v794_v14 = vpop.f32.mrb[0].mxu0  ;;  %v871_v15 = vpop.f32.mrb[0].mxu1 }
 0x255   : > { %v5180_v16 = vpop.f32.mrb[1].mxu1  ;;  %5186 = vmatmul.mubr.msk.f32.vlgmr.msra.gmra.mrb[2].mxu0 %vm878_vm6, %v871_v15  ;;  %5193 = vmatmul.mubr.msk.f32.vlgmr.msra.gmra.mrb[2].mxu1 %vm878_vm6, %v794_v14  ;;  %v5175_v17 = vpop.f32.mrb[1].mxu0 }
 0x256   : > { %5196 = vmatpush3.msk.msra.mxu0 %vm724_vm1, %v718_v8  ;;  %5197 = vmatprep.mubr.msk.f32.mxu0 %vm5627_vm7, %v5626_v57 }
 0x257   : > { %5207 = vmatprep.subr.mxu0 %v5626_v57  ;;  %5204 = vmatprep.mubr.msk.f32.mxu1 %vm5627_vm7, %v5626_v57 }
 0x258   : > { %5506 = vmatpush3.bf16.msk.msra.mxu1 %vm5868_vm5, %v5956_v27 }
 0x259   : > { %5198 = vmatmul.mubr.msk.f32.vlgmr.msra.gmra.mrb[4].mxu0 %vm720_vm3, %v4896_v18  ;;  %5507 = vmatprep.subr.bf16.mxu1 %v5629_v12 }
 0x25a   : > { %5208 = vmatpush3.msk.msra.mxu0 %vm724_vm1, %v718_v8  ;;  %5209 = vmatprep.mubr.msk.f32.mxu0 %vm5627_vm7, %v5626_v57 }
 0x25b   : > { %5219 = vmatprep.subr.mxu0 %v5626_v57 }
 0x25d   : > { %5210 = vmatmul.mubr.msk.f32.vlgmr.msra.gmra.mrb[6].mxu0 %vm720_vm3, %v4903_v19 }
 0x25e   : > { %5220 = vmatpush3.msk.msra.mxu0 %vm724_vm1, %v718_v8  ;;  %5221 = vmatprep.mubr.msk.f32.mxu0 %vm5627_vm7, %v5626_v57 }
 0x25f   : > { %5231 = vmatprep.subr.mxu0 %v5626_v57 }
 0x261   : > { %5222 = vmatmul.mubr.msk.f32.vlgmr.msra.gmra.mrb[8].mxu0 %vm720_vm3, %v4910_v20 }
 0x262   : > { %5232 = vmatpush3.msk.msra.mxu0 %vm724_vm1, %v718_v8  ;;  %5233 = vmatprep.mubr.msk.f32.mxu0 %vm5627_vm7, %v5626_v57 }
 0x263   : > { %5243 = vmatprep.subr.mxu0 %v5626_v57 }
 0x265   : > { %5234 = vmatmul.mubr.msk.f32.vlgmr.msra.gmra.mrb[10].mxu0 %vm720_vm3, %v4917_v21 }
 0x266   : > { %5244 = vmatpush3.msk.msra.mxu0 %vm724_vm1, %v718_v8  ;;  %5245 = vmatprep.mubr.msk.f32.mxu0 %vm5627_vm7, %v5626_v57 }
 0x267   : > { %5255 = vmatprep.subr.mxu0 %v5626_v57 }
 0x269   : > { %5246 = vmatmul.mubr.msk.f32.vlgmr.msra.gmra.mrb[12].mxu0 %vm720_vm3, %v4924_v22 }
 0x26a   : > { %5256 = vmatpush3.msk.msra.mxu0 %vm724_vm1, %v718_v8  ;;  %5257 = vmatprep.mubr.msk.f32.mxu0 %vm5627_vm7, %v5626_v57 }
 0x26b   : > { %5267 = vmatprep.subr.mxu0 %v5626_v57 }
 0x26d   : > { %5258 = vmatmul.mubr.msk.f32.vlgmr.msra.gmra.mrb[14].mxu0 %vm720_vm3, %v4931_v23 }
 0x26e   : > { %5268 = vmatpush3.msk.msra.mxu0 %vm724_vm1, %v718_v8  ;;  %5269 = vmatprep.mubr.msk.f32.mxu0 %vm5627_vm7, %v5626_v57 }
 0x26f   : > { %5279 = vmatprep.subr.mxu0 %v5626_v57 }
 0x271   : > { %5270 = vmatmul.mubr.msk.f32.vlgmr.msra.gmra.mrb[16].mxu0 %vm720_vm3, %v4938_v24 }
 0x272   : > { %5281 = vmatprep.mubr.msk.f32.mxu0 %vm5627_vm7, %v5626_v57 }
 0x328   : > { %v952_v33 = vpop.f32.mrb[2].mxu0  ;;  %v1028_v34 = vpop.f32.mrb[2].mxu1 }
 0x329   : > { %v1029_v35 = vadd.f32 %v1028_v34, %v952_v33  ;;  %v5187_v36 = vpop.f32.mrb[3].mxu0  ;;  %v5194_v37 = vpop.f32.mrb[3].mxu1  ;;  %v2125_v34 = vld [vmem:[%s6338_s3] sm:$0xf] }
 0x32c   : > { %v1103_v41 = vpop.f32.mrb[4].mxu0 }
 0x32d   : > { %v5199_v42 = vpop.f32.mrb[5].mxu0  ;;  %5205 = vmatmul.mubr.msk.f32.vlgmr.msra.gmra.mrb[4].mxu1 %vm878_vm6, %v1103_v41  ;;  %v4954_v41 = vld [vmem:[%s6338_s3 + $0x8] sm:$0xf] }
 0x32e   : > { %5510 = vmatpush3.bf16.msk.msra.mxu1 %vm5868_vm5, %v5974_v38  ;;  %5216 = vmatprep.mubr.msk.f32.mxu1 %vm5627_vm7, %v5626_v57  ;;  %v4959_v42 = vld [vmem:[%s6338_s3 + $0xc] sm:$0xf] }
 0x32f   : > { %5511 = vmatprep.subr.bf16.mxu1 %v5629_v12 }
 0x330   : > { %v1258_v46 = vpop.f32.mrb[6].mxu0 }
 0x331   : > { %v5211_v47 = vpop.f32.mrb[7].mxu0  ;;  %5217 = vmatmul.mubr.msk.f32.vlgmr.msra.gmra.mrb[6].mxu1 %vm878_vm6, %v1258_v46  ;;  %v4974_v46 = vld [vmem:[%s6338_s3 + $0x18] sm:$0xf] }
 0x332   : > { %5514 = vmatpush3.bf16.msk.msra.mxu1 %vm5868_vm5, %v5988_v43  ;;  %5228 = vmatprep.mubr.msk.f32.mxu1 %vm5627_vm7, %v5626_v57  ;;  %v4979_v47 = vld [vmem:[%s6338_s3 + $0x1c] sm:$0xf] }
 0x333   : > { %5515 = vmatprep.subr.bf16.mxu1 %v5629_v12 }
 0x334   : > { %v1413_v51 = vpop.f32.mrb[8].mxu0 }
 0x335   : > { %v5223_v52 = vpop.f32.mrb[9].mxu0  ;;  %5229 = vmatmul.mubr.msk.f32.vlgmr.msra.gmra.mrb[8].mxu1 %vm878_vm6, %v1413_v51 }
 0x336   : > { %5518 = vmatpush3.bf16.msk.msra.mxu1 %vm5868_vm5, %v6003_v48  ;;  %5240 = vmatprep.mubr.msk.f32.mxu1 %vm5627_vm7, %v5626_v57 }
 0x337   : > { %5519 = vmatprep.subr.bf16.mxu1 %v5629_v12 }
 0x338   : > { %v1568_v56 = vpop.f32.mrb[10].mxu0 }
 0x339   : > { %v5235_v13 = vpop.f32.mrb[11].mxu0  ;;  %5241 = vmatmul.mubr.msk.f32.vlgmr.msra.gmra.mrb[10].mxu1 %vm878_vm6, %v1568_v56 }
 0x33a   : > { %5522 = vmatpush3.bf16.msk.msra.mxu1 %vm5868_vm5, %v6018_v53  ;;  %5252 = vmatprep.mubr.msk.f32.mxu1 %vm5627_vm7, %v5626_v57 }
 0x33b   : > { %5523 = vmatprep.subr.bf16.mxu1 %v5629_v12 }
 0x33c   : > { %v1723_v61 = vpop.f32.mrb[12].mxu0 }
 0x33d   : > { %v5247_v62 = vpop.f32.mrb[13].mxu0  ;;  %5253 = vmatmul.mubr.msk.f32.vlgmr.msra.gmra.mrb[12].mxu1 %vm878_vm6, %v1723_v61 }
 0x33e   : > { %5526 = vmatpush3.bf16.msk.msra.mxu1 %vm5868_vm5, %v6033_v58  ;;  %5264 = vmatprep.mubr.msk.f32.mxu1 %vm5627_vm7, %v5626_v57 }
 0x33f   : > { %5527 = vmatprep.subr.bf16.mxu1 %v5629_v12 }
 0x340   : > { %v1878_v0 = vpop.f32.mrb[14].mxu0 }
 0x341   : > { %v5259_v1 = vpop.f32.mrb[15].mxu0  ;;  %5265 = vmatmul.mubr.msk.f32.vlgmr.msra.gmra.mrb[14].mxu1 %vm878_vm6, %v1878_v0 }
 0x342   : > { %5530 = vmatpush3.bf16.msk.msra.mxu1 %vm5868_vm5, %v6048_v63  ;;  %5276 = vmatprep.mubr.msk.f32.mxu1 %vm5627_vm7, %v5626_v57 }
 0x343   : > { %5284 = vmatprep.subr.mxu1 %v5626_v57 }
 0x344   : > { %v2033_v2 = vpop.f32.mrb[16].mxu0 }
 0x345   : > { %v5271_v3 = vpop.f32.mrb[17].mxu0  ;;  %5277 = vmatmul.mubr.msk.f32.vlgmr.msra.gmra.mrb[16].mxu1 %vm878_vm6, %v2033_v2 }
 0x346   : > { %5286 = vmatprep.mubr.msk.f32.mxu1 %vm5627_vm7, %v5626_v57 }
 0x400   : > { %v1182_v4 = vpop.f32.mrb[4].mxu1 }
 0x401   : > { %v1186_v5 = vadd.f32 %v1182_v4, %v1029_v35  ;;  %v5206_v6 = vpop.f32.mrb[5].mxu1  ;;  %v4947_v35 = vld [vmem:[%s6338_s3 + $0x4] sm:$0xf] }
 0x404   : > { %v1337_v7 = vpop.f32.mrb[6].mxu1 }
 0x405   : > { %v1341_v8 = vadd.f32 %v1337_v7, %v1186_v5  ;;  %v5218_v14 = vpop.f32.mrb[7].mxu1 }
 0x408   : > { %v1492_v15 = vpop.f32.mrb[8].mxu1 }
 0x409   : > { %v1496_v16 = vadd.f32 %v1492_v15, %v1341_v8  ;;  %v5230_v17 = vpop.f32.mrb[9].mxu1 }
 0x40c   : > { %v1647_v18 = vpop.f32.mrb[10].mxu1 }
 0x40d   : > { %v1651_v19 = vadd.f32 %v1647_v18, %v1496_v16  ;;  %v5242_v20 = vpop.f32.mrb[11].mxu1 }
 0x410   : > { %v1802_v21 = vpop.f32.mrb[12].mxu1 }
 0x411   : > { %v1806_v22 = vadd.f32 %v1802_v21, %v1651_v19  ;;  %v5254_v23 = vpop.f32.mrb[13].mxu1 }
 0x414   : > { %v1957_v24 = vpop.f32.mrb[14].mxu1 }
 0x415   : > { %v1961_v25 = vadd.f32 %v1957_v24, %v1806_v22  ;;  %v5266_v26 = vpop.f32.mrb[15].mxu1 }
 0x418   : > { %v2112_v28 = vpop.f32.mrb[16].mxu1 }
 0x419   : > { %v2116_v29 = vadd.f32 %v2112_v28, %v1961_v25  ;;  %v5278_v30 = vpop.f32.mrb[17].mxu1 }
 0x41b   : > { %v2123_v32 = vadd.f32 %v2121_v31, %v2116_v29 }
 0x41d   : > { %v2124_v33 = vmax.f32 %v2123_v32, 0.0 }
 0x41f   : > { %5280 = vmatpush3.msk.msra.mxu0 %vm724_vm1, %v2124_v33  ;;  %5285 = vmatpush3.msk.msra.mxu1 %vm724_vm1, %v2124_v33 }
 0x420   : > { %5282 = vmatmul.mubr.msk.f32.vlgmr.msra.gmra.mrb[18].mxu0 %vm720_vm3, %v2125_v34  ;;  %5287 = vmatmul.mubr.msk.f32.vlgmr.msra.gmra.mrb[18].mxu1 %vm720_vm3, %v4947_v35  ;;  %v3470_v34 = vpop.permute.xlu0 %3469 }
 0x421   : > { %5531 = vmatprep.subr.bf16.mxu0 %v5629_v12  ;;  %5535 = vmatprep.subr.bf16.mxu1 %v5629_v12 }
 0x422   : > { %5534 = vmatpush3.bf16.msk.msra.mxu0 %vm5868_vm5, %v5862_v9  ;;  %5538 = vmatpush3.bf16.msk.msra.mxu1 %vm5868_vm5, %v5864_v10 }
 0x423   : > { %5293 = vmatprep.mubr.msk.f32.mxu0 %vm5627_vm7, %v5626_v57  ;;  %5300 = vmatprep.mubr.msk.f32.mxu1 %vm5627_vm7, %v5626_v57 }
 0x424   : > { %5303 = vmatprep.subr.mxu0 %v5626_v57  ;;  %5539 = vmatprep.subr.bf16.mxu1 %v5629_v12 }
 0x4f3   : > { %v2198_v36 = vpop.f32.mrb[18].mxu0  ;;  %v2273_v37 = vpop.f32.mrb[18].mxu1 }
 0x4f4   : > { %v5288_v39 = vpop.f32.mrb[19].mxu1  ;;  %5294 = vmatmul.mubr.msk.f32.vlgmr.msra.gmra.mrb[20].mxu0 %vm878_vm6, %v2273_v37  ;;  %5301 = vmatmul.mubr.msk.f32.vlgmr.msra.gmra.mrb[20].mxu1 %vm878_vm6, %v2198_v36  ;;  %v5283_v40 = vpop.f32.mrb[19].mxu0 }
 0x4f5   : > { %5304 = vmatpush3.msk.msra.mxu0 %vm724_vm1, %v2124_v33  ;;  %5305 = vmatprep.mubr.msk.f32.mxu0 %vm5627_vm7, %v5626_v57  ;;  %v4991_v40 = vld [vmem:[%s6340_s5 + $0x4] sm:$0xf] }
 0x4f6   : > { %5315 = vmatprep.subr.mxu0 %v5626_v57  ;;  %5542 = vmatpush3.bf16.msk.msra.mxu1 %vm5868_vm5, %v5956_v27 }
 0x4f7   : > { %5312 = vmatprep.mubr.msk.f32.mxu1 %vm5627_vm7, %v5626_v57  ;;  %5543 = vmatprep.subr.bf16.mxu1 %v5629_v12 }
 0x4f8   : > { %5306 = vmatmul.mubr.msk.f32.vlgmr.msra.gmra.mrb[22].mxu0 %vm720_vm3, %v4954_v41  ;;  %v3474_v41 = vld [vmem:[%s6340_s5] sm:$0xf] }
 0x4f9   : > { %5316 = vmatpush3.msk.msra.mxu0 %vm724_vm1, %v2124_v33  ;;  %5317 = vmatprep.mubr.msk.f32.mxu0 %vm5627_vm7, %v5626_v57 }
 0x4fa   : > { %5327 = vmatprep.subr.mxu0 %v5626_v57 }
 0x4fc   : > { %5318 = vmatmul.mubr.msk.f32.vlgmr.msra.gmra.mrb[24].mxu0 %vm720_vm3, %v4959_v42 }
 0x4fd   : > { %5328 = vmatpush3.msk.msra.mxu0 %vm724_vm1, %v2124_v33  ;;  %5329 = vmatprep.mubr.msk.f32.mxu0 %vm5627_vm7, %v5626_v57 }
 0x4fe   : > { %5339 = vmatprep.subr.mxu0 %v5626_v57 }
 0x500   : > { %5330 = vmatmul.mubr.msk.f32.vlgmr.msra.gmra.mrb[26].mxu0 %vm720_vm3, %v4964_v44 }
 0x501   : > { %5340 = vmatpush3.msk.msra.mxu0 %vm724_vm1, %v2124_v33  ;;  %5341 = vmatprep.mubr.msk.f32.mxu0 %vm5627_vm7, %v5626_v57 }
 0x502   : > { %5351 = vmatprep.subr.mxu0 %v5626_v57 }
 0x504   : > { %5342 = vmatmul.mubr.msk.f32.vlgmr.msra.gmra.mrb[28].mxu0 %vm720_vm3, %v4969_v45 }
 0x505   : > { %5352 = vmatpush3.msk.msra.mxu0 %vm724_vm1, %v2124_v33  ;;  %5353 = vmatprep.mubr.msk.f32.mxu0 %vm5627_vm7, %v5626_v57 }
 0x506   : > { %5363 = vmatprep.subr.mxu0 %v5626_v57 }
 0x508   : > { %5354 = vmatmul.mubr.msk.f32.vlgmr.msra.gmra.mrb[30].mxu0 %vm720_vm3, %v4974_v46  ;;  %v5003_v46 = vld [vmem:[%s6340_s5 + $0xc] sm:$0xf] }
 0x509   : > { %5364 = vmatpush3.msk.msra.mxu0 %vm724_vm1, %v2124_v33  ;;  %5365 = vmatprep.mubr.msk.f32.mxu0 %vm5627_vm7, %v5626_v57 }
 0x50a   : > { %5375 = vmatprep.subr.mxu0 %v5626_v57 }
 0x50c   : > { %5366 = vmatmul.mubr.msk.f32.vlgmr.msra.gmra.mrb[32].mxu0 %vm720_vm3, %v4979_v47  ;;  %v5013_v47 = vld [vmem:[%s6340_s5 + $0x14] sm:$0xf] }
 0x50d   : > { %5376 = vmatpush3.msk.msra.mxu0 %vm724_vm1, %v2124_v33  ;;  %5377 = vmatprep.mubr.msk.f32.mxu0 %vm5627_vm7, %v5626_v57 }
 0x50e   : > { %5387 = vmatprep.subr.mxu0 %v5626_v57 }
 0x510   : > { %5378 = vmatmul.mubr.msk.f32.vlgmr.msra.gmra.mrb[34].mxu0 %vm720_vm3, %v4984_v49  ;;  %v5018_v49 = vld [vmem:[%s6340_s5 + $0x18] sm:$0xf] }
 0x511   : > { %5389 = vmatprep.mubr.msk.f32.mxu0 %vm5627_vm7, %v5626_v57 }
 0x5c7   : > { %v2346_v51 = vpop.f32.mrb[20].mxu0  ;;  %v2419_v52 = vpop.f32.mrb[20].mxu1 }
 0x5c8   : > { %v2420_v54 = vadd.f32 %v2419_v52, %v2346_v51  ;;  %v5295_v55 = vpop.f32.mrb[21].mxu0  ;;  %v5302_v56 = vpop.f32.mrb[21].mxu1  ;;  %v5028_v51 = vld [vmem:[%s6340_s5 + $0x20] sm:$0xf] }
 0x5cb   : > { %v2494_v13 = vpop.f32.mrb[22].mxu0 }
 0x5cc   : > { %v5307_v59 = vpop.f32.mrb[23].mxu0  ;;  %5313 = vmatmul.mubr.msk.f32.vlgmr.msra.gmra.mrb[22].mxu1 %vm878_vm6, %v2494_v13 }
 0x5cd   : > { %5546 = vmatpush3.bf16.msk.msra.mxu1 %vm5868_vm5, %v5974_v38  ;;  %5324 = vmatprep.mubr.msk.f32.mxu1 %vm5627_vm7, %v5626_v57 }
 0x5ce   : > { %5547 = vmatprep.subr.bf16.mxu1 %v5629_v12 }
 0x5cf   : > { %v2643_v60 = vpop.f32.mrb[24].mxu0 }
 0x5d0   : > { %v5319_v61 = vpop.f32.mrb[25].mxu0  ;;  %5325 = vmatmul.mubr.msk.f32.vlgmr.msra.gmra.mrb[24].mxu1 %vm878_vm6, %v2643_v60 }
 0x5d1   : > { %5550 = vmatpush3.bf16.msk.msra.mxu1 %vm5868_vm5, %v5988_v43  ;;  %5336 = vmatprep.mubr.msk.f32.mxu1 %vm5627_vm7, %v5626_v57 }
 0x5d2   : > { %5551 = vmatprep.subr.bf16.mxu1 %v5629_v12 }
 0x5d3   : > { %v2792_v62 = vpop.f32.mrb[26].mxu0 }
 0x5d4   : > { %v5331_v0 = vpop.f32.mrb[27].mxu0  ;;  %5337 = vmatmul.mubr.msk.f32.vlgmr.msra.gmra.mrb[26].mxu1 %vm878_vm6, %v2792_v62 }
 0x5d5   : > { %5554 = vmatpush3.bf16.msk.msra.mxu1 %vm5868_vm5, %v6003_v48  ;;  %5348 = vmatprep.mubr.msk.f32.mxu1 %vm5627_vm7, %v5626_v57 }
 0x5d6   : > { %5555 = vmatprep.subr.bf16.mxu1 %v5629_v12 }
 0x5d7   : > { %v2941_v1 = vpop.f32.mrb[28].mxu0 }
 0x5d8   : > { %v5343_v2 = vpop.f32.mrb[29].mxu0  ;;  %5349 = vmatmul.mubr.msk.f32.vlgmr.msra.gmra.mrb[28].mxu1 %vm878_vm6, %v2941_v1 }
 0x5d9   : > { %5558 = vmatpush3.bf16.msk.msra.mxu1 %vm5868_vm5, %v6018_v53  ;;  %5360 = vmatprep.mubr.msk.f32.mxu1 %vm5627_vm7, %v5626_v57 }
 0x5da   : > { %5559 = vmatprep.subr.bf16.mxu1 %v5629_v12 }
 0x5db   : > { %v3090_v3 = vpop.f32.mrb[30].mxu0 }
 0x5dc   : > { %v5355_v4 = vpop.f32.mrb[31].mxu0  ;;  %5361 = vmatmul.mubr.msk.f32.vlgmr.msra.gmra.mrb[30].mxu1 %vm878_vm6, %v3090_v3 }
 0x5dd   : > { %5562 = vmatpush3.bf16.msk.msra.mxu1 %vm5868_vm5, %v6033_v58  ;;  %5372 = vmatprep.mubr.msk.f32.mxu1 %vm5627_vm7, %v5626_v57 }
 0x5de   : > { %5563 = vmatprep.subr.bf16.mxu1 %v5629_v12 }
 0x5df   : > { %v3239_v5 = vpop.f32.mrb[32].mxu0 }
 0x5e0   : > { %v5367_v6 = vpop.f32.mrb[33].mxu0  ;;  %5373 = vmatmul.mubr.msk.f32.vlgmr.msra.gmra.mrb[32].mxu1 %vm878_vm6, %v3239_v5 }
 0x5e1   : > { %5566 = vmatpush3.bf16.msk.msra.mxu1 %vm5868_vm5, %v6048_v63  ;;  %5384 = vmatprep.mubr.msk.f32.mxu1 %vm5627_vm7, %v5626_v57 }
 0x5e2   : > { %5392 = vmatprep.subr.mxu1 %v5626_v57 }
 0x5e3   : > { %v3388_v7 = vpop.f32.mrb[34].mxu0 }
 0x5e4   : > { %v5379_v8 = vpop.f32.mrb[35].mxu0  ;;  %5385 = vmatmul.mubr.msk.f32.vlgmr.msra.gmra.mrb[34].mxu1 %vm878_vm6, %v3388_v7 }
 0x5e5   : > { %5394 = vmatprep.mubr.msk.f32.mxu1 %vm5627_vm7, %v5626_v57 }
 0x69f   : > { %v2567_v14 = vpop.f32.mrb[22].mxu1 }
 0x6a0   : > { %v2571_v15 = vadd.f32 %v2567_v14, %v2420_v54  ;;  %v5314_v16 = vpop.f32.mrb[23].mxu1 }
 0x6a3   : > { %v2716_v17 = vpop.f32.mrb[24].mxu1 }
 0x6a4   : > { %v2720_v18 = vadd.f32 %v2716_v17, %v2571_v15  ;;  %v5326_v19 = vpop.f32.mrb[25].mxu1 }
 0x6a7   : > { %v2865_v20 = vpop.f32.mrb[26].mxu1 }
 0x6a8   : > { %v2869_v21 = vadd.f32 %v2865_v20, %v2720_v18  ;;  %v5338_v22 = vpop.f32.mrb[27].mxu1 }
 0x6ab   : > { %v3014_v23 = vpop.f32.mrb[28].mxu1 }
 0x6ac   : > { %v3018_v24 = vadd.f32 %v3014_v23, %v2869_v21  ;;  %v5350_v25 = vpop.f32.mrb[29].mxu1 }
 0x6af   : > { %v3163_v26 = vpop.f32.mrb[30].mxu1 }
 0x6b0   : > { %v3167_v28 = vadd.f32 %v3163_v26, %v3018_v24  ;;  %v5362_v29 = vpop.f32.mrb[31].mxu1 }
 0x6b3   : > { %v3312_v30 = vpop.f32.mrb[32].mxu1 }
 0x6b4   : > { %v3316_v31 = vadd.f32 %v3312_v30, %v3167_v28  ;;  %v5374_v32 = vpop.f32.mrb[33].mxu1  ;;  %v4819_v28 = vpop.permute.xlu1 %4818 }
 0x6b7   : > { %v3461_v33 = vpop.f32.mrb[34].mxu1 }
 0x6b8   : > { %v3465_v35 = vadd.f32 %v3461_v33, %v3316_v31  ;;  %v5386_v36 = vpop.f32.mrb[35].mxu1 }
 0x6ba   : > { %v3472_v37 = vadd.f32 %v3470_v34, %v3465_v35 }
 0x6bc   : > { %v3473_v39 = vmax.f32 %v3472_v37, 0.0 }
 0x6be   : > { %5388 = vmatpush3.msk.msra.mxu0 %vm724_vm1, %v3473_v39  ;;  %5393 = vmatpush3.msk.msra.mxu1 %vm724_vm1, %v3473_v39 }
 0x6bf   : > { %5395 = vmatmul.mubr.msk.f32.vlgmr.msra.gmra.mrb[36].mxu1 %vm720_vm3, %v4991_v40  ;;  %5390 = vmatmul.mubr.msk.f32.vlgmr.msra.gmra.mrb[36].mxu0 %vm720_vm3, %v3474_v41 }
 0x6c0   : > { %5567 = vmatprep.subr.bf16.mxu0 %v5629_v12  ;;  %5401 = vmatprep.mubr.msk.f32.mxu0 %vm5627_vm7, %v5626_v57 }
 0x6c1   : > { %5570 = vmatpush3.bf16.msk.msra.mxu0 %vm5868_vm5, %v5862_v9  ;;  %5571 = vmatprep.subr.bf16.mxu1 %v5629_v12 }
 0x6c2   : > { %5411 = vmatprep.subr.mxu0 %v5626_v57  ;;  %5574 = vmatpush3.bf16.msk.msra.mxu1 %vm5868_vm5, %v5864_v10  ;;  %v4998_v10 = vld [vmem:[%s6340_s5 + $0x8] sm:$0xf] }
 0x6c3   : > { %5408 = vmatprep.mubr.msk.f32.mxu1 %vm5627_vm7, %v5626_v57  ;;  %5575 = vmatprep.subr.bf16.mxu1 %v5629_v12 }
 0x792   : > { %v3622_v42 = vpop.f32.mrb[36].mxu1  ;;  %v3547_v44 = vpop.f32.mrb[36].mxu0 }
 0x793   : > { %5402 = vmatmul.mubr.msk.f32.vlgmr.msra.gmra.mrb[38].mxu0 %vm878_vm6, %v3622_v42  ;;  %v5396_v45 = vpop.f32.mrb[37].mxu1  ;;  %5409 = vmatmul.mubr.msk.f32.vlgmr.msra.gmra.mrb[38].mxu1 %vm878_vm6, %v3547_v44  ;;  %v5391_v9 = vpop.f32.mrb[37].mxu0 }
 0x794   : > { %5412 = vmatpush3.msk.msra.mxu0 %vm724_vm1, %v3473_v39  ;;  %5413 = vmatprep.mubr.msk.f32.mxu0 %vm5627_vm7, %v5626_v57 }
 0x795   : > { %5423 = vmatprep.subr.mxu0 %v5626_v57  ;;  %5578 = vmatpush3.bf16.msk.msra.mxu1 %vm5868_vm5, %v5956_v27  ;;  %v5008_v27 = vld [vmem:[%s6340_s5 + $0x10] sm:$0xf] }
 0x796   : > { %5420 = vmatprep.mubr.msk.f32.mxu1 %vm5627_vm7, %v5626_v57  ;;  %5579 = vmatprep.subr.bf16.mxu1 %v5629_v12 }
 0x797   : > { %5414 = vmatmul.mubr.msk.f32.vlgmr.msra.gmra.mrb[40].mxu0 %vm720_vm3, %v4998_v10 }
 0x798   : > { %5424 = vmatpush3.msk.msra.mxu0 %vm724_vm1, %v3473_v39  ;;  %5425 = vmatprep.mubr.msk.f32.mxu0 %vm5627_vm7, %v5626_v57 }
 0x799   : > { %5435 = vmatprep.subr.mxu0 %v5626_v57 }
 0x79b   : > { %5426 = vmatmul.mubr.msk.f32.vlgmr.msra.gmra.mrb[42].mxu0 %vm720_vm3, %v5003_v46 }
 0x79c   : > { %5436 = vmatpush3.msk.msra.mxu0 %vm724_vm1, %v3473_v39  ;;  %5437 = vmatprep.mubr.msk.f32.mxu0 %vm5627_vm7, %v5626_v57 }
 0x79d   : > { %5447 = vmatprep.subr.mxu0 %v5626_v57 }
 0x79f   : > { %5438 = vmatmul.mubr.msk.f32.vlgmr.msra.gmra.mrb[44].mxu0 %vm720_vm3, %v5008_v27 }
 0x7a0   : > { %5448 = vmatpush3.msk.msra.mxu0 %vm724_vm1, %v3473_v39  ;;  %5449 = vmatprep.mubr.msk.f32.mxu0 %vm5627_vm7, %v5626_v57 }
 0x7a1   : > { %5459 = vmatprep.subr.mxu0 %v5626_v57 }
 0x7a3   : > { %5450 = vmatmul.mubr.msk.f32.vlgmr.msra.gmra.mrb[46].mxu0 %vm720_vm3, %v5013_v47 }
 0x7a4   : > { %5460 = vmatpush3.msk.msra.mxu0 %vm724_vm1, %v3473_v39  ;;  %5461 = vmatprep.mubr.msk.f32.mxu0 %vm5627_vm7, %v5626_v57 }
 0x7a5   : > { %5471 = vmatprep.subr.mxu0 %v5626_v57 }
 0x7a7   : > { %5462 = vmatmul.mubr.msk.f32.vlgmr.msra.gmra.mrb[48].mxu0 %vm720_vm3, %v5018_v49 }
 0x7a8   : > { %5472 = vmatpush3.msk.msra.mxu0 %vm724_vm1, %v3473_v39  ;;  %5473 = vmatprep.mubr.msk.f32.mxu0 %vm5627_vm7, %v5626_v57 }
 0x7a9   : > { %5483 = vmatprep.subr.mxu0 %v5626_v57 }
 0x7ab   : > { %5474 = vmatmul.mubr.msk.f32.vlgmr.msra.gmra.mrb[50].mxu0 %vm720_vm3, %v5023_v50 }
 0x7ac   : > { %5484 = vmatpush3.msk.msra.mxu0 %vm724_vm1, %v3473_v39  ;;  %5485 = vmatprep.mubr.msk.f32.mxu0 %vm5627_vm7, %v5626_v57 }
 0x7af   : > { %5486 = vmatmul.mubr.msk.f32.vlgmr.msra.gmra.mrb[52].mxu0 %vm720_vm3, %v5028_v51 }
 0x866   : > { %v3695_v52 = vpop.f32.mrb[38].mxu0  ;;  %v3768_v54 = vpop.f32.mrb[38].mxu1 }
 0x867   : > { %v5403_v55 = vpop.f32.mrb[39].mxu0  ;;  %v3769_v56 = vadd.f32 %v3768_v54, %v3695_v52  ;;  %v5410_v13 = vpop.f32.mrb[39].mxu1 }
 0x86a   : > { %v3843_v59 = vpop.f32.mrb[40].mxu0 }
 0x86b   : > { %5421 = vmatmul.mubr.msk.f32.vlgmr.msra.gmra.mrb[40].mxu1 %vm878_vm6, %v3843_v59  ;;  %v5415_v60 = vpop.f32.mrb[41].mxu0 }
 0x86c   : > { %5582 = vmatpush3.bf16.msk.msra.mxu1 %vm5868_vm5, %v5974_v38  ;;  %5432 = vmatprep.mubr.msk.f32.mxu1 %vm5627_vm7, %v5626_v57 }
 0x86d   : > { %5583 = vmatprep.subr.bf16.mxu1 %v5629_v12 }
 0x86e   : > { %v3992_v61 = vpop.f32.mrb[42].mxu0 }
 0x86f   : > { %5433 = vmatmul.mubr.msk.f32.vlgmr.msra.gmra.mrb[42].mxu1 %vm878_vm6, %v3992_v61  ;;  %v5427_v62 = vpop.f32.mrb[43].mxu0 }
 0x870   : > { %5586 = vmatpush3.bf16.msk.msra.mxu1 %vm5868_vm5, %v5988_v43  ;;  %5444 = vmatprep.mubr.msk.f32.mxu1 %vm5627_vm7, %v5626_v57 }
 0x871   : > { %5587 = vmatprep.subr.bf16.mxu1 %v5629_v12 }
 0x872   : > { %v4141_v0 = vpop.f32.mrb[44].mxu0 }
 0x873   : > { %5445 = vmatmul.mubr.msk.f32.vlgmr.msra.gmra.mrb[44].mxu1 %vm878_vm6, %v4141_v0  ;;  %v5439_v38 = vpop.f32.mrb[45].mxu0 }
 0x874   : > { %5590 = vmatpush3.bf16.msk.msra.mxu1 %vm5868_vm5, %v6003_v48  ;;  %5456 = vmatprep.mubr.msk.f32.mxu1 %vm5627_vm7, %v5626_v57 }
 0x875   : > { %5591 = vmatprep.subr.bf16.mxu1 %v5629_v12 }
 0x876   : > { %v4290_v1 = vpop.f32.mrb[46].mxu0 }
 0x877   : > { %5457 = vmatmul.mubr.msk.f32.vlgmr.msra.gmra.mrb[46].mxu1 %vm878_vm6, %v4290_v1  ;;  %v5451_v43 = vpop.f32.mrb[47].mxu0 }
 0x878   : > { %5594 = vmatpush3.bf16.msk.msra.mxu1 %vm5868_vm5, %v6018_v53  ;;  %5468 = vmatprep.mubr.msk.f32.mxu1 %vm5627_vm7, %v5626_v57 }
 0x879   : > { %5595 = vmatprep.subr.bf16.mxu1 %v5629_v12 }
 0x87a   : > { %v4439_v2 = vpop.f32.mrb[48].mxu0 }
 0x87b   : > { %5469 = vmatmul.mubr.msk.f32.vlgmr.msra.gmra.mrb[48].mxu1 %vm878_vm6, %v4439_v2  ;;  %v5463_v48 = vpop.f32.mrb[49].mxu0 }
 0x87c   : > { %5598 = vmatpush3.bf16.msk.msra.mxu1 %vm5868_vm5, %v6033_v58  ;;  %5480 = vmatprep.mubr.msk.f32.mxu1 %vm5627_vm7, %v5626_v57 }
 0x87d   : > { %5599 = vmatprep.subr.bf16.mxu1 %v5629_v12 }
 0x87e   : > { %v4588_v3 = vpop.f32.mrb[50].mxu0 }
 0x87f   : > { %5481 = vmatmul.mubr.msk.f32.vlgmr.msra.gmra.mrb[50].mxu1 %vm878_vm6, %v4588_v3  ;;  %v5475_v53 = vpop.f32.mrb[51].mxu0 }
 0x880   : > { %5602 = vmatpush3.bf16.msk.msra.mxu1 %vm5868_vm5, %v6048_v63  ;;  %5492 = vmatprep.mubr.msk.f32.mxu1 %vm5627_vm7, %v5626_v57  ;;  %vm4822_vm7 = vcmask 68608  }
 0x882   : > { %v4737_v4 = vpop.f32.mrb[52].mxu0 }
 0x883   : > { %5493 = vmatmul.mubr.msk.f32.vlgmr.msra.gmra.mrb[52].mxu1 %vm878_vm6, %v4737_v4  ;;  %v5487_v58 = vpop.f32.mrb[53].mxu0 }
 0x93e   : > { %v3916_v5 = vpop.f32.mrb[40].mxu1 }
 0x93f   : > { %v3920_v6 = vadd.f32 %v3916_v5, %v3769_v56  ;;  %v5422_v7 = vpop.f32.mrb[41].mxu1 }
 0x942   : > { %v4065_v12 = vpop.f32.mrb[42].mxu1 }
 0x943   : > { %v4069_v8 = vadd.f32 %v4065_v12, %v3920_v6  ;;  %v5434_v14 = vpop.f32.mrb[43].mxu1 }
 0x946   : > { %v4214_v15 = vpop.f32.mrb[44].mxu1 }
 0x947   : > { %v4218_v16 = vadd.f32 %v4214_v15, %v4069_v8  ;;  %v5446_v17 = vpop.f32.mrb[45].mxu1 }
 0x94a   : > { %v4363_v18 = vpop.f32.mrb[46].mxu1 }
 0x94b   : > { %v4367_v11 = vadd.f32 %v4363_v18, %v4218_v16  ;;  %v5458_v63 = vpop.f32.mrb[47].mxu1 }
 0x94e   : > { %v4512_v19 = vpop.f32.mrb[48].mxu1 }
 0x94f   : > { %v4516_v20 = vadd.f32 %v4512_v19, %v4367_v11  ;;  %v5470_v57 = vpop.f32.mrb[49].mxu1 }
 0x952   : > { %v4661_v21 = vpop.f32.mrb[50].mxu1 }
 0x953   : > { %v4665_v22 = vadd.f32 %v4661_v21, %v4516_v20  ;;  %v5482_v23 = vpop.f32.mrb[51].mxu1 }
 0x956   : > { %v4810_v24 = vpop.f32.mrb[52].mxu1 }
 0x957   : > { %v4814_v25 = vadd.f32 %v4810_v24, %v4665_v22  ;;  %v5494_v26 = vpop.f32.mrb[53].mxu1 }
 0x959   : > { %v4821_v29 = vadd.f32 %v4819_v28, %v4814_v25 }
 0x95b   : > { %4823 = vst.msk [vmem:[%s303_s10] sm:$0xf] %vm4822_vm7, %v4821_v29 }
 0x95c PF: > { %s18_s27 = sadd.s32 1, %s5624_s27  }
 0x95d   : > { %p15_p4 = scmp.ge.s32.totalorder %s18_s27, 4  }
 0x95f   :  { %17 = sbr.rel (!%p15_p4) target bundleno = 1 (0x1), region = 114 }

</bundles_post_ra>
